<compile_context>
chip_gen: v5e
topology: v5e:2x2
jax: 0.10.0
libtpu: 0.0.40
codegen_flags: <defaults>
</compile_context>

<pallas_src>
import functools

import jax
import jax.numpy as jnp
import numpy as np
from jax.experimental import pallas as pl
from jax.experimental.pallas import tpu as pltpu

BN_EPS = 1e-5

# Row-tile target.  256 keeps the double-buffered (TILE_M, K) bf16 input slabs
# plus the f32 output tile far below every generation's scoped VMEM budget
# (v7x: 64 MiB physical / 32 MiB default scoped).  For COCO-sized inputs raise
# toward 512 (v7x) / 1024 (v5e, v6e).
TILE_M_TARGET = 256
VMEM_LIMIT_BYTES = 32 * 1024 * 1024   # explicit, safe on v5e/v6e/v7x


def _pick_tile_m(m, target=TILE_M_TARGET):
    """Largest multiple of 8 that divides m and is <= target (else m)."""
    if m % 8 != 0:
        return m
    t = min(m, target)
    t -= t % 8
    while t > 8 and m % t != 0:
        t -= 8
    return t if (t > 0 and m % t == 0) else m


# --------------------------------------------------------------------------
# Pallas kernels
# --------------------------------------------------------------------------
def conv_stats_kernel(xcol_ref, w_ref, y_ref, sum_ref, sq_ref):
    """One fused-K matmul tile + global per-channel sum / sumsq accumulation.

    xcol_ref : (TILE_M, K)      bf16   im2col rows, K = taps*Cin
    w_ref    : (K, Cout)        bf16   (same block every grid step -> resident)
    y_ref    : (TILE_M, Cout)   f32    pre-BN conv output tile
    sum_ref  : (1, Cout)        f32    accumulated across the whole M grid axis
    sq_ref   : (1, Cout)        f32
    """
    acc = jnp.dot(xcol_ref[...], w_ref[...],
                  preferred_element_type=jnp.float32)
    y_ref[...] = acc

    @pl.when(pl.program_id(0) == 0)
    def _():
        sum_ref[...] = jnp.zeros_like(sum_ref)
        sq_ref[...] = jnp.zeros_like(sq_ref)

    sum_ref[...] += jnp.sum(acc, axis=0, keepdims=True)
    sq_ref[...] += jnp.sum(acc * acc, axis=0, keepdims=True)


def bn_act_kernel(y_ref, sum_ref, sq_ref, g_ref, b_ref, o_ref, *,
                  inv_m, apply_relu):
    """Fused BN (stats -> affine in-kernel) + optional ReLU."""
    mean = sum_ref[...] * inv_m
    var = jnp.maximum(sq_ref[...] * inv_m - mean * mean, 0.0)   # biased var
    s = g_ref[...] * jax.lax.rsqrt(var + BN_EPS)
    bias = b_ref[...] - mean * s
    y = y_ref[...] * s + bias
    if apply_relu:
        y = jnp.maximum(y, 0.0)
    o_ref[...] = y


def bn_add_relu_kernel(y_ref, sum_ref, sq_ref, g_ref, b_ref, r_ref, o_ref, *,
                       inv_m):
    """c3 epilogue: BN affine + fused residual add + final block ReLU."""
    mean = sum_ref[...] * inv_m
    var = jnp.maximum(sq_ref[...] * inv_m - mean * mean, 0.0)
    s = g_ref[...] * jax.lax.rsqrt(var + BN_EPS)
    bias = b_ref[...] - mean * s
    o_ref[...] = jnp.maximum(y_ref[...] * s + bias + r_ref[...], 0.0)


# --------------------------------------------------------------------------
# Wrappers (glue)
# --------------------------------------------------------------------------
def _im2col(x, ksize, pad):
    """(N,H,W,C) -> (N*H*W, ksize*ksize*C), stride-1 'same' windows."""
    n, h, w, c = x.shape
    if ksize == 1:
        return x.reshape(n * h * w, c)
    xp = jnp.pad(x, ((0, 0), (pad, pad), (pad, pad), (0, 0)))
    slabs = [xp[:, kh:kh + h, kw:kw + w, :]
             for kh in range(ksize) for kw in range(ksize)]
    # channel ordering (kh, kw, cin) matches w.reshape(ks*ks*cin, cout)
    return jnp.concatenate(slabs, axis=-1).reshape(n * h * w, ksize * ksize * c)


def pallas_conv_bn_act(x, p, *, apply_relu, residual=None):
    """stride-1 'same' conv + training-mode BN + ReLU [+ fused residual add]."""
    n, h, w_sp, cin = x.shape
    ksize = p["w"].shape[0]            # static (from array shape) -> jit safe
    pad = (ksize - 1) // 2
    cout = p["w"].shape[-1]
    m = n * h * w_sp
    k = ksize * ksize * cin
    tile_m = _pick_tile_m(m)
    grid = (m // tile_m,)

    xcol = _im2col(x, ksize, pad).astype(jnp.bfloat16)      # bf16 MXU operands
    wmat = p["w"].reshape(k, cout).astype(jnp.bfloat16)

    # ---- pass 1: tiled conv + global per-channel sum / sumsq ----------------
    y, csum, csq = pl.pallas_call(
        conv_stats_kernel,
        out_shape=(jax.ShapeDtypeStruct((m, cout), jnp.float32),
                   jax.ShapeDtypeStruct((1, cout), jnp.float32),
                   jax.ShapeDtypeStruct((1, cout), jnp.float32)),
        grid=grid,
        in_specs=[pl.BlockSpec((tile_m, k), lambda i: (i, 0)),
                  pl.BlockSpec((k, cout), lambda i: (0, 0))],
        out_specs=(pl.BlockSpec((tile_m, cout), lambda i: (i, 0)),
                   pl.BlockSpec((1, cout), lambda i: (0, 0)),
                   pl.BlockSpec((1, cout), lambda i: (0, 0))),
        compiler_params=pltpu.CompilerParams(
            dimension_semantics=("arbitrary",),   # stats carried across M axis
            vmem_limit_bytes=VMEM_LIMIT_BYTES),
    )(xcol, wmat)

    gamma = p["gamma"].reshape(1, cout)
    beta = p["beta"].reshape(1, cout)
    inv_m = 1.0 / float(m)

    # ---- pass 2: fused BN affine (+ residual) (+ ReLU) ----------------------
    row_spec = pl.BlockSpec((tile_m, cout), lambda i: (i, 0))
    vec_spec = pl.BlockSpec((1, cout), lambda i: (0, 0))
    common = dict(
        out_shape=jax.ShapeDtypeStruct((m, cout), jnp.float32),
        grid=grid,
        out_specs=pl.BlockSpec((tile_m, cout), lambda i: (i, 0)),
        compiler_params=pltpu.CompilerParams(
            dimension_semantics=("parallel",),    # shard rows over cores
            vmem_limit_bytes=VMEM_LIMIT_BYTES),
    )
    if residual is None:
        out = pl.pallas_call(
            functools.partial(bn_act_kernel, inv_m=inv_m,
                              apply_relu=apply_relu),
            in_specs=[row_spec, vec_spec, vec_spec, vec_spec, vec_spec],
            **common,
        )(y, csum, csq, gamma, beta)
    else:
        # block's final ReLU is applied after the residual add
        out = pl.pallas_call(
            functools.partial(bn_add_relu_kernel, inv_m=inv_m),
            in_specs=[row_spec, vec_spec, vec_spec, vec_spec, vec_spec,
                      row_spec],
            **common,
        )(y, csum, csq, gamma, beta, residual.reshape(m, cout))
    return out.reshape(n, h, w_sp, cout)


# --------------------------------------------------------------------------
# Bottleneck forward (Pallas)
# --------------------------------------------------------------------------
def bottleneck_forward_pallas(x, params):
    bc = params["c1"]["w"].shape[-1] // 4        # branch_ch (static from shape)
    out = pallas_conv_bn_act(x, params["c1"], apply_relu=True)
    spx = [out[..., i * bc:(i + 1) * bc] for i in range(4)]

    # Inter-branch adds are cheap element-wise glue; XLA fuses them into the
    # following im2col gather.
    o11 = pallas_conv_bn_act(spx[0], params["b2_1_1"], apply_relu=True)
    o21 = pallas_conv_bn_act(spx[1] + o11, params["b2_2_1"], apply_relu=True)
    o22 = pallas_conv_bn_act(o21, params["b2_2_2"], apply_relu=True)
    o31 = pallas_conv_bn_act(spx[2] + o21, params["b2_3_1"], apply_relu=True)
    o32 = pallas_conv_bn_act(o31 + o22, params["b2_3_2"], apply_relu=True)
    o33 = pallas_conv_bn_act(o32, params["b2_3_3"], apply_relu=True)
    o41 = pallas_conv_bn_act(spx[3] + o31, params["b2_4_1"], apply_relu=True)
    o42 = pallas_conv_bn_act(o41 + o32, params["b2_4_2"], apply_relu=True)
    o43 = pallas_conv_bn_act(o42 + o33, params["b2_4_3"], apply_relu=True)
    o44 = pallas_conv_bn_act(o43, params["b2_4_4"], apply_relu=True)

    cat = jnp.concatenate([o11, o22, o33, o44], axis=-1)
    # c3 has no ReLU of its own; the residual add + block ReLU are fused into
    # its pass-2 epilogue (downsample is None -> residual is x itself).
    return pallas_conv_bn_act(cat, params["c3"], apply_relu=True, residual=x)


# --------------------------------------------------------------------------
# Pure-JAX reference (for verification).  Uses the same bf16-operand /
# f32-accumulation MXU precision policy as the kernel, and KEEPS the conv
# bias (which provably cancels under training-mode BN).
# --------------------------------------------------------------------------
def ref_conv_bn_act(x, p, apply_relu):
    ksize = p["w"].shape[0]
    pad = (ksize - 1) // 2
    y = jax.lax.conv_general_dilated(
        x.astype(jnp.bfloat16), p["w"].astype(jnp.bfloat16),
        window_strides=(1, 1), padding=((pad, pad), (pad, pad)),
        dimension_numbers=("NHWC", "HWIO", "NHWC"),
        preferred_element_type=jnp.float32)
    y = y + p["cb"]
    mean = jnp.mean(y, axis=(0, 1, 2), keepdims=True)
    var = jnp.mean(jnp.square(y - mean), axis=(0, 1, 2), keepdims=True)
    y = (y - mean) * jax.lax.rsqrt(var + BN_EPS)
    y = y * p["gamma"] + p["beta"]
    if apply_relu:
        y = jnp.maximum(y, 0.0)
    return y


def bottleneck_forward_ref(x, params):
    bc = params["c1"]["w"].shape[-1] // 4
    out = ref_conv_bn_act(x, params["c1"], True)
    spx = [out[..., i * bc:(i + 1) * bc] for i in range(4)]
    o11 = ref_conv_bn_act(spx[0], params["b2_1_1"], True)
    o21 = ref_conv_bn_act(spx[1] + o11, params["b2_2_1"], True)
    o22 = ref_conv_bn_act(o21, params["b2_2_2"], True)
    o31 = ref_conv_bn_act(spx[2] + o21, params["b2_3_1"], True)
    o32 = ref_conv_bn_act(o31 + o22, params["b2_3_2"], True)
    o33 = ref_conv_bn_act(o32, params["b2_3_3"], True)
    o41 = ref_conv_bn_act(spx[3] + o31, params["b2_4_1"], True)
    o42 = ref_conv_bn_act(o41 + o32, params["b2_4_2"], True)
    o43 = ref_conv_bn_act(o42 + o33, params["b2_4_3"], True)
    o44 = ref_conv_bn_act(o43, params["b2_4_4"], True)
    cat = jnp.concatenate([o11, o22, o33, o44], axis=-1)
    out = ref_conv_bn_act(cat, params["c3"], False)
    return jnp.maximum(out + x, 0.0)


# --------------------------------------------------------------------------
# Parameter init + main
# --------------------------------------------------------------------------
def init_cbr(key, cin, cout, ksize):
    k1, k2, k3, k4 = jax.random.split(key, 4)
    fan_in = cin * ksize * ksize
    return {
        # only jnp arrays in the params pytree -> jit-safe
        "w": jax.random.normal(k1, (ksize, ksize, cin, cout), jnp.float32)
             / jnp.sqrt(float(fan_in)),
        "cb": 0.1 * jax.random.normal(k2, (cout,), jnp.float32),
        "gamma": 1.0 + 0.1 * jax.random.normal(k3, (cout,), jnp.float32),
        "beta": 0.1 * jax.random.normal(k4, (cout,), jnp.float32),
    }


def make_params(key, in_planes, planes):
    bc = in_planes * 26 // 64
    names3 = ["b2_1_1", "b2_2_1", "b2_2_2", "b2_3_1", "b2_3_2", "b2_3_3",
              "b2_4_1", "b2_4_2", "b2_4_3", "b2_4_4"]
    keys = jax.random.split(key, 2 + len(names3))
    params = {"c1": init_cbr(keys[0], in_planes, 4 * bc, 1)}
    for i, name in enumerate(names3):
        params[name] = init_cbr(keys[1 + i], bc, bc, 3)
    params["c3"] = init_cbr(keys[-1], 4 * bc, planes, 1)
    return params


if __name__ == "__main__":
    # Module-consistent small shapes: in_planes == planes, stride=1,
    # downsample=None (so `out += x` is shape-valid).  branch_ch = 26.
    N, H, W = 2, 16, 16
    in_planes = planes = 64          # M = N*H*W = 512 -> 2 row tiles of 256

    key = jax.random.PRNGKey(0)
    kx, kp = jax.random.split(key)
    x = jax.random.normal(kx, (N, H, W, in_planes), jnp.float32)   # NHWC
    params = make_params(kp, in_planes, planes)

    fwd = jax.jit(bottleneck_forward_pallas)
    out = jax.block_until_ready(fwd(x, params))

    ref = jax.block_until_ready(bottleneck_forward_ref(x, params))
    assert out.shape == (N, H, W, planes)
    np.testing.assert_allclose(np.asarray(out), np.asarray(ref),
                               rtol=2e-2, atol=2e-2)
    print("KERNEL_OK")
</pallas_src>

<mosaic_0001>
module attributes {stable_mosaic.version = 11 : i64} {
  func.func @conv_stats_kernel(%arg0: i32, %arg1: memref<256x64xbf16, #tpu.memory_space<vmem>>, %arg2: memref<64x104xbf16, #tpu.memory_space<vmem>>, %arg3: memref<256x104xf32, #tpu.memory_space<vmem>>, %arg4: memref<1x104xf32, #tpu.memory_space<vmem>>, %arg5: memref<1x104xf32, #tpu.memory_space<vmem>>) attributes {dimension_semantics = [#tpu.dimension_semantics<arbitrary>], iteration_bounds = array<i64: 2>, scalar_prefetch = 0 : i64, scratch_operands = 0 : i64, tpu.core_type = #tpu.core_type<tc>, window_params = [{transform_indices = @transform_0, window_bounds = array<i64: 256, 64>}, {pipeline_mode = #tpu.pipeline_mode<synchronous>, transform_indices = @transform_1, window_bounds = array<i64: 64, 104>}, {transform_indices = @transform_2, window_bounds = array<i64: 256, 104>}, {pipeline_mode = #tpu.pipeline_mode<synchronous>, transform_indices = @transform_3, window_bounds = array<i64: 1, 104>}, {pipeline_mode = #tpu.pipeline_mode<synchronous>, transform_indices = @transform_4, window_bounds = array<i64: 1, 104>}]} {
    %c0 = arith.constant 0 : index
    %c0_0 = arith.constant 0 : index
    %0 = vector.load %arg1[%c0, %c0_0] : memref<256x64xbf16, #tpu.memory_space<vmem>>, vector<256x64xbf16>
    %c0_1 = arith.constant 0 : index
    %c0_2 = arith.constant 0 : index
    %1 = vector.load %arg2[%c0_1, %c0_2] : memref<64x104xbf16, #tpu.memory_space<vmem>>, vector<64x104xbf16>
    %cst = arith.constant dense<0.000000e+00> : vector<256x104xf32>
    %2 = tpu.matmul %0, %1, %cst {dimension_numbers = #tpu.dot_dimension_numbers<[1], [0], [0], [1], [0, 0, 1, 1], [], []>} : vector<256x64xbf16>, vector<64x104xbf16>, vector<256x104xf32> -> vector<256x104xf32>
    %c0_3 = arith.constant 0 : index
    %c0_4 = arith.constant 0 : index
    %3 = vector.load %arg3[%c0_3, %c0_4] : memref<256x104xf32, #tpu.memory_space<vmem>>, vector<256x104xf32>
    tpu.vector_store %arg3[%c0_3, %c0_4], %2 {strides = array<i32>} : memref<256x104xf32, #tpu.memory_space<vmem>>, vector<256x104xf32>,
    %c0_i32 = arith.constant 0 : i32
    %4 = arith.cmpi eq, %arg0, %c0_i32 : i32
    %5 = arith.extui %4 : i1 to i32
    %c0_i32_5 = arith.constant 0 : i32
    %6 = arith.cmpi ne, %5, %c0_i32_5 : i32
    scf.if %6 {
      %cst_16 = arith.constant 0.000000e+00 : f32
      %18 = vector.broadcast %cst_16 : f32 to vector<1x104xf32>
      %c0_17 = arith.constant 0 : index
      %c0_18 = arith.constant 0 : index
      %19 = vector.load %arg4[%c0_17, %c0_18] : memref<1x104xf32, #tpu.memory_space<vmem>>, vector<1x104xf32>
      tpu.vector_store %arg4[%c0_17, %c0_18], %18 {strides = array<i32>} : memref<1x104xf32, #tpu.memory_space<vmem>>, vector<1x104xf32>,
      %cst_19 = arith.constant 0.000000e+00 : f32
      %20 = vector.broadcast %cst_19 : f32 to vector<1x104xf32>
      %c0_20 = arith.constant 0 : index
      %c0_21 = arith.constant 0 : index
      %21 = vector.load %arg5[%c0_20, %c0_21] : memref<1x104xf32, #tpu.memory_space<vmem>>, vector<1x104xf32>
      tpu.vector_store %arg5[%c0_20, %c0_21], %20 {strides = array<i32>} : memref<1x104xf32, #tpu.memory_space<vmem>>, vector<1x104xf32>,
    } else {
    }
    %c0_6 = arith.constant 0 : index
    %c0_7 = arith.constant 0 : index
    %7 = vector.load %arg4[%c0_6, %c0_7] : memref<1x104xf32, #tpu.memory_space<vmem>>, vector<1x104xf32>
    %cst_8 = arith.constant dense<0.000000e+00> : vector<104xf32>
    %8 = vector.multi_reduction <add>, %2, %cst_8 [0] : vector<256x104xf32> to vector<104xf32>
    %9 = vector.shape_cast %8 : vector<104xf32> to vector<1x104xf32>
    %10 = arith.addf %7, %9 : vector<1x104xf32>
    %c0_9 = arith.constant 0 : index
    %c0_10 = arith.constant 0 : index
    %11 = vector.load %arg4[%c0_9, %c0_10] : memref<1x104xf32, #tpu.memory_space<vmem>>, vector<1x104xf32>
    tpu.vector_store %arg4[%c0_9, %c0_10], %10 {strides = array<i32>} : memref<1x104xf32, #tpu.memory_space<vmem>>, vector<1x104xf32>,
    %c0_11 = arith.constant 0 : index
    %c0_12 = arith.constant 0 : index
    %12 = vector.load %arg5[%c0_11, %c0_12] : memref<1x104xf32, #tpu.memory_space<vmem>>, vector<1x104xf32>
    %13 = arith.mulf %2, %2 : vector<256x104xf32>
    %cst_13 = arith.constant dense<0.000000e+00> : vector<104xf32>
    %14 = vector.multi_reduction <add>, %13, %cst_13 [0] : vector<256x104xf32> to vector<104xf32>
    %15 = vector.shape_cast %14 : vector<104xf32> to vector<1x104xf32>
    %16 = arith.addf %12, %15 : vector<1x104xf32>
    %c0_14 = arith.constant 0 : index
    %c0_15 = arith.constant 0 : index
    %17 = vector.load %arg5[%c0_14, %c0_15] : memref<1x104xf32, #tpu.memory_space<vmem>>, vector<1x104xf32>
    tpu.vector_store %arg5[%c0_14, %c0_15], %16 {strides = array<i32>} : memref<1x104xf32, #tpu.memory_space<vmem>>, vector<1x104xf32>,
    return
  }
  func.func @transform_0(%arg0: i32) -> (i32, i32) {
    %c0_i32 = arith.constant 0 : i32
    %c0_i32_0 = arith.constant 0 : i32
    return %arg0, %c0_i32 : i32, i32
  }
  func.func @transform_1(%arg0: i32) -> (i32, i32) {
    %c0_i32 = arith.constant 0 : i32
    %c0_i32_0 = arith.constant 0 : i32
    %c0_i32_1 = arith.constant 0 : i32
    return %c0_i32, %c0_i32_0 : i32, i32
  }
  func.func @transform_2(%arg0: i32) -> (i32, i32) {
    %c0_i32 = arith.constant 0 : i32
    %c0_i32_0 = arith.constant 0 : i32
    return %arg0, %c0_i32 : i32, i32
  }
  func.func @transform_3(%arg0: i32) -> (i32, i32) {
    %c0_i32 = arith.constant 0 : i32
    %c0_i32_0 = arith.constant 0 : i32
    %c0_i32_1 = arith.constant 0 : i32
    return %c0_i32, %c0_i32_0 : i32, i32
  }
  func.func @transform_4(%arg0: i32) -> (i32, i32) {
    %c0_i32 = arith.constant 0 : i32
    %c0_i32_0 = arith.constant 0 : i32
    %c0_i32_1 = arith.constant 0 : i32
    return %c0_i32, %c0_i32_0 : i32, i32
  }
}

module attributes {stable_mosaic.version = 11 : i64} {
  func.func @bn_act_kernel(%arg0: i32, %arg1: memref<256x104xf32, #tpu.memory_space<vmem>>, %arg2: memref<1x104xf32, #tpu.memory_space<vmem>>, %arg3: memref<1x104xf32, #tpu.memory_space<vmem>>, %arg4: memref<1x104xf32, #tpu.memory_space<vmem>>, %arg5: memref<1x104xf32, #tpu.memory_space<vmem>>, %arg6: memref<256x104xf32, #tpu.memory_space<vmem>>) attributes {dimension_semantics = [#tpu.dimension_semantics<parallel>], iteration_bounds = array<i64: 2>, scalar_prefetch = 0 : i64, scratch_operands = 0 : i64, tpu.core_type = #tpu.core_type<tc>, window_params = [{transform_indices = @transform_0, window_bounds = array<i64: 256, 104>}, {pipeline_mode = #tpu.pipeline_mode<synchronous>, transform_indices = @transform_1, window_bounds = array<i64: 1, 104>}, {pipeline_mode = #tpu.pipeline_mode<synchronous>, transform_indices = @transform_2, window_bounds = array<i64: 1, 104>}, {pipeline_mode = #tpu.pipeline_mode<synchronous>, transform_indices = @transform_3, window_bounds = array<i64: 1, 104>}, {pipeline_mode = #tpu.pipeline_mode<synchronous>, transform_indices = @transform_4, window_bounds = array<i64: 1, 104>}, {transform_indices = @transform_5, window_bounds = array<i64: 256, 104>}]} {
    %c0 = arith.constant 0 : index
    %c0_0 = arith.constant 0 : index
    %0 = vector.load %arg2[%c0, %c0_0] : memref<1x104xf32, #tpu.memory_space<vmem>>, vector<1x104xf32>
    %cst = arith.constant 0.001953125 : f32
    %1 = vector.broadcast %cst : f32 to vector<1x104xf32>
    %2 = arith.mulf %0, %1 : vector<1x104xf32>
    %c0_1 = arith.constant 0 : index
    %c0_2 = arith.constant 0 : index
    %3 = vector.load %arg3[%c0_1, %c0_2] : memref<1x104xf32, #tpu.memory_space<vmem>>, vector<1x104xf32>
    %cst_3 = arith.constant 0.001953125 : f32
    %4 = vector.broadcast %cst_3 : f32 to vector<1x104xf32>
    %5 = arith.mulf %3, %4 : vector<1x104xf32>
    %6 = arith.mulf %2, %2 : vector<1x104xf32>
    %7 = arith.subf %5, %6 : vector<1x104xf32>
    %cst_4 = arith.constant 0.000000e+00 : f32
    %8 = vector.broadcast %cst_4 : f32 to vector<1x104xf32>
    %9 = arith.maximumf %7, %8 : vector<1x104xf32>
    %c0_5 = arith.constant 0 : index
    %c0_6 = arith.constant 0 : index
    %10 = vector.load %arg4[%c0_5, %c0_6] : memref<1x104xf32, #tpu.memory_space<vmem>>, vector<1x104xf32>
    %cst_7 = arith.constant 9.99999974E-6 : f32
    %11 = vector.broadcast %cst_7 : f32 to vector<1x104xf32>
    %12 = arith.addf %9, %11 : vector<1x104xf32>
    %13 = math.rsqrt %12 : vector<1x104xf32>
    %14 = arith.mulf %10, %13 : vector<1x104xf32>
    %c0_8 = arith.constant 0 : index
    %c0_9 = arith.constant 0 : index
    %15 = vector.load %arg5[%c0_8, %c0_9] : memref<1x104xf32, #tpu.memory_space<vmem>>, vector<1x104xf32>
    %16 = arith.mulf %2, %14 : vector<1x104xf32>
    %17 = arith.subf %15, %16 : vector<1x104xf32>
    %c0_10 = arith.constant 0 : index
    %c0_11 = arith.constant 0 : index
    %18 = vector.load %arg1[%c0_10, %c0_11] : memref<256x104xf32, #tpu.memory_space<vmem>>, vector<256x104xf32>
    %19 = vector.broadcast %14 : vector<1x104xf32> to vector<256x104xf32>
    %20 = arith.mulf %18, %19 : vector<256x104xf32>
    %21 = vector.broadcast %17 : vector<1x104xf32> to vector<256x104xf32>
    %22 = arith.addf %20, %21 : vector<256x104xf32>
    %cst_12 = arith.constant 0.000000e+00 : f32
    %23 = vector.broadcast %cst_12 : f32 to vector<256x104xf32>
    %24 = arith.maximumf %22, %23 : vector<256x104xf32>
    %c0_13 = arith.constant 0 : index
    %c0_14 = arith.constant 0 : index
    %25 = vector.load %arg6[%c0_13, %c0_14] : memref<256x104xf32, #tpu.memory_space<vmem>>, vector<256x104xf32>
    tpu.vector_store %arg6[%c0_13, %c0_14], %24 {strides = array<i32>} : memref<256x104xf32, #tpu.memory_space<vmem>>, vector<256x104xf32>,
    return
  }
  func.func @transform_0(%arg0: i32) -> (i32, i32) {
    %c0_i32 = arith.constant 0 : i32
    %c0_i32_0 = arith.constant 0 : i32
    return %arg0, %c0_i32 : i32, i32
  }
  func.func @transform_1(%arg0: i32) -> (i32, i32) {
    %c0_i32 = arith.constant 0 : i32
    %c0_i32_0 = arith.constant 0 : i32
    %c0_i32_1 = arith.constant 0 : i32
    return %c0_i32, %c0_i32_0 : i32, i32
  }
  func.func @transform_2(%arg0: i32) -> (i32, i32) {
    %c0_i32 = arith.constant 0 : i32
    %c0_i32_0 = arith.constant 0 : i32
    %c0_i32_1 = arith.constant 0 : i32
    return %c0_i32, %c0_i32_0 : i32, i32
  }
  func.func @transform_3(%arg0: i32) -> (i32, i32) {
    %c0_i32 = arith.constant 0 : i32
    %c0_i32_0 = arith.constant 0 : i32
    %c0_i32_1 = arith.constant 0 : i32
    return %c0_i32, %c0_i32_0 : i32, i32
  }
  func.func @transform_4(%arg0: i32) -> (i32, i32) {
    %c0_i32 = arith.constant 0 : i32
    %c0_i32_0 = arith.constant 0 : i32
    %c0_i32_1 = arith.constant 0 : i32
    return %c0_i32, %c0_i32_0 : i32, i32
  }
  func.func @transform_5(%arg0: i32) -> (i32, i32) {
    %c0_i32 = arith.constant 0 : i32
    %c0_i32_0 = arith.constant 0 : i32
    return %arg0, %c0_i32 : i32, i32
  }
}

module attributes {stable_mosaic.version = 11 : i64} {
  func.func @conv_stats_kernel(%arg0: i32, %arg1: memref<256x234xbf16, #tpu.memory_space<vmem>>, %arg2: memref<234x26xbf16, #tpu.memory_space<vmem>>, %arg3: memref<256x26xf32, #tpu.memory_space<vmem>>, %arg4: memref<1x26xf32, #tpu.memory_space<vmem>>, %arg5: memref<1x26xf32, #tpu.memory_space<vmem>>) attributes {dimension_semantics = [#tpu.dimension_semantics<arbitrary>], iteration_bounds = array<i64: 2>, scalar_prefetch = 0 : i64, scratch_operands = 0 : i64, tpu.core_type = #tpu.core_type<tc>, window_params = [{transform_indices = @transform_0, window_bounds = array<i64: 256, 234>}, {pipeline_mode = #tpu.pipeline_mode<synchronous>, transform_indices = @transform_1, window_bounds = array<i64: 234, 26>}, {transform_indices = @transform_2, window_bounds = array<i64: 256, 26>}, {pipeline_mode = #tpu.pipeline_mode<synchronous>, transform_indices = @transform_3, window_bounds = array<i64: 1, 26>}, {pipeline_mode = #tpu.pipeline_mode<synchronous>, transform_indices = @transform_4, window_bounds = array<i64: 1, 26>}]} {
    %c0 = arith.constant 0 : index
    %c0_0 = arith.constant 0 : index
    %0 = vector.load %arg1[%c0, %c0_0] : memref<256x234xbf16, #tpu.memory_space<vmem>>, vector<256x234xbf16>
    %c0_1 = arith.constant 0 : index
    %c0_2 = arith.constant 0 : index
    %1 = vector.load %arg2[%c0_1, %c0_2] : memref<234x26xbf16, #tpu.memory_space<vmem>>, vector<234x26xbf16>
    %cst = arith.constant dense<0.000000e+00> : vector<256x26xf32>
    %2 = tpu.matmul %0, %1, %cst {dimension_numbers = #tpu.dot_dimension_numbers<[1], [0], [0], [1], [0, 0, 1, 1], [], []>} : vector<256x234xbf16>, vector<234x26xbf16>, vector<256x26xf32> -> vector<256x26xf32>
    %c0_3 = arith.constant 0 : index
    %c0_4 = arith.constant 0 : index
    %3 = vector.load %arg3[%c0_3, %c0_4] : memref<256x26xf32, #tpu.memory_space<vmem>>, vector<256x26xf32>
    tpu.vector_store %arg3[%c0_3, %c0_4], %2 {strides = array<i32>} : memref<256x26xf32, #tpu.memory_space<vmem>>, vector<256x26xf32>,
    %c0_i32 = arith.constant 0 : i32
    %4 = arith.cmpi eq, %arg0, %c0_i32 : i32
    %5 = arith.extui %4 : i1 to i32
    %c0_i32_5 = arith.constant 0 : i32
    %6 = arith.cmpi ne, %5, %c0_i32_5 : i32
    scf.if %6 {
      %cst_16 = arith.constant 0.000000e+00 : f32
      %18 = vector.broadcast %cst_16 : f32 to vector<1x26xf32>
      %c0_17 = arith.constant 0 : index
      %c0_18 = arith.constant 0 : index
      %19 = vector.load %arg4[%c0_17, %c0_18] : memref<1x26xf32, #tpu.memory_space<vmem>>, vector<1x26xf32>
      tpu.vector_store %arg4[%c0_17, %c0_18], %18 {strides = array<i32>} : memref<1x26xf32, #tpu.memory_space<vmem>>, vector<1x26xf32>,
      %cst_19 = arith.constant 0.000000e+00 : f32
      %20 = vector.broadcast %cst_19 : f32 to vector<1x26xf32>
      %c0_20 = arith.constant 0 : index
      %c0_21 = arith.constant 0 : index
      %21 = vector.load %arg5[%c0_20, %c0_21] : memref<1x26xf32, #tpu.memory_space<vmem>>, vector<1x26xf32>
      tpu.vector_store %arg5[%c0_20, %c0_21], %20 {strides = array<i32>} : memref<1x26xf32, #tpu.memory_space<vmem>>, vector<1x26xf32>,
    } else {
    }
    %c0_6 = arith.constant 0 : index
    %c0_7 = arith.constant 0 : index
    %7 = vector.load %arg4[%c0_6, %c0_7] : memref<1x26xf32, #tpu.memory_space<vmem>>, vector<1x26xf32>
    %cst_8 = arith.constant dense<0.000000e+00> : vector<26xf32>
    %8 = vector.multi_reduction <add>, %2, %cst_8 [0] : vector<256x26xf32> to vector<26xf32>
    %9 = vector.shape_cast %8 : vector<26xf32> to vector<1x26xf32>
    %10 = arith.addf %7, %9 : vector<1x26xf32>
    %c0_9 = arith.constant 0 : index
    %c0_10 = arith.constant 0 : index
    %11 = vector.load %arg4[%c0_9, %c0_10] : memref<1x26xf32, #tpu.memory_space<vmem>>, vector<1x26xf32>
    tpu.vector_store %arg4[%c0_9, %c0_10], %10 {strides = array<i32>} : memref<1x26xf32, #tpu.memory_space<vmem>>, vector<1x26xf32>,
    %c0_11 = arith.constant 0 : index
    %c0_12 = arith.constant 0 : index
    %12 = vector.load %arg5[%c0_11, %c0_12] : memref<1x26xf32, #tpu.memory_space<vmem>>, vector<1x26xf32>
    %13 = arith.mulf %2, %2 : vector<256x26xf32>
    %cst_13 = arith.constant dense<0.000000e+00> : vector<26xf32>
    %14 = vector.multi_reduction <add>, %13, %cst_13 [0] : vector<256x26xf32> to vector<26xf32>
    %15 = vector.shape_cast %14 : vector<26xf32> to vector<1x26xf32>
    %16 = arith.addf %12, %15 : vector<1x26xf32>
    %c0_14 = arith.constant 0 : index
    %c0_15 = arith.constant 0 : index
    %17 = vector.load %arg5[%c0_14, %c0_15] : memref<1x26xf32, #tpu.memory_space<vmem>>, vector<1x26xf32>
    tpu.vector_store %arg5[%c0_14, %c0_15], %16 {strides = array<i32>} : memref<1x26xf32, #tpu.memory_space<vmem>>, vector<1x26xf32>,
    return
  }
  func.func @transform_0(%arg0: i32) -> (i32, i32) {
    %c0_i32 = arith.constant 0 : i32
    %c0_i32_0 = arith.constant 0 : i32
    return %arg0, %c0_i32 : i32, i32
  }
  func.func @transform_1(%arg0: i32) -> (i32, i32) {
    %c0_i32 = arith.constant 0 : i32
    %c0_i32_0 = arith.constant 0 : i32
    %c0_i32_1 = arith.constant 0 : i32
    return %c0_i32, %c0_i32_0 : i32, i32
  }
  func.func @transform_2(%arg0: i32) -> (i32, i32) {
    %c0_i32 = arith.constant 0 : i32
    %c0_i32_0 = arith.constant 0 : i32
    return %arg0, %c0_i32 : i32, i32
  }
  func.func @transform_3(%arg0: i32) -> (i32, i32) {
    %c0_i32 = arith.constant 0 : i32
    %c0_i32_0 = arith.constant 0 : i32
    %c0_i32_1 = arith.constant 0 : i32
    return %c0_i32, %c0_i32_0 : i32, i32
  }
  func.func @transform_4(%arg0: i32) -> (i32, i32) {
    %c0_i32 = arith.constant 0 : i32
    %c0_i32_0 = arith.constant 0 : i32
    %c0_i32_1 = arith.constant 0 : i32
    return %c0_i32, %c0_i32_0 : i32, i32
  }
}

module attributes {stable_mosaic.version = 11 : i64} {
  func.func @bn_act_kernel(%arg0: i32, %arg1: memref<256x26xf32, #tpu.memory_space<vmem>>, %arg2: memref<1x26xf32, #tpu.memory_space<vmem>>, %arg3: memref<1x26xf32, #tpu.memory_space<vmem>>, %arg4: memref<1x26xf32, #tpu.memory_space<vmem>>, %arg5: memref<1x26xf32, #tpu.memory_space<vmem>>, %arg6: memref<256x26xf32, #tpu.memory_space<vmem>>) attributes {dimension_semantics = [#tpu.dimension_semantics<parallel>], iteration_bounds = array<i64: 2>, scalar_prefetch = 0 : i64, scratch_operands = 0 : i64, tpu.core_type = #tpu.core_type<tc>, window_params = [{transform_indices = @transform_0, window_bounds = array<i64: 256, 26>}, {pipeline_mode = #tpu.pipeline_mode<synchronous>, transform_indices = @transform_1, window_bounds = array<i64: 1, 26>}, {pipeline_mode = #tpu.pipeline_mode<synchronous>, transform_indices = @transform_2, window_bounds = array<i64: 1, 26>}, {pipeline_mode = #tpu.pipeline_mode<synchronous>, transform_indices = @transform_3, window_bounds = array<i64: 1, 26>}, {pipeline_mode = #tpu.pipeline_mode<synchronous>, transform_indices = @transform_4, window_bounds = array<i64: 1, 26>}, {transform_indices = @transform_5, window_bounds = array<i64: 256, 26>}]} {
    %c0 = arith.constant 0 : index
    %c0_0 = arith.constant 0 : index
    %0 = vector.load %arg2[%c0, %c0_0] : memref<1x26xf32, #tpu.memory_space<vmem>>, vector<1x26xf32>
    %cst = arith.constant 0.001953125 : f32
    %1 = vector.broadcast %cst : f32 to vector<1x26xf32>
    %2 = arith.mulf %0, %1 : vector<1x26xf32>
    %c0_1 = arith.constant 0 : index
    %c0_2 = arith.constant 0 : index
    %3 = vector.load %arg3[%c0_1, %c0_2] : memref<1x26xf32, #tpu.memory_space<vmem>>, vector<1x26xf32>
    %cst_3 = arith.constant 0.001953125 : f32
    %4 = vector.broadcast %cst_3 : f32 to vector<1x26xf32>
    %5 = arith.mulf %3, %4 : vector<1x26xf32>
    %6 = arith.mulf %2, %2 : vector<1x26xf32>
    %7 = arith.subf %5, %6 : vector<1x26xf32>
    %cst_4 = arith.constant 0.000000e+00 : f32
    %8 = vector.broadcast %cst_4 : f32 to vector<1x26xf32>
    %9 = arith.maximumf %7, %8 : vector<1x26xf32>
    %c0_5 = arith.constant 0 : index
    %c0_6 = arith.constant 0 : index
    %10 = vector.load %arg4[%c0_5, %c0_6] : memref<1x26xf32, #tpu.memory_space<vmem>>, vector<1x26xf32>
    %cst_7 = arith.constant 9.99999974E-6 : f32
    %11 = vector.broadcast %cst_7 : f32 to vector<1x26xf32>
    %12 = arith.addf %9, %11 : vector<1x26xf32>
    %13 = math.rsqrt %12 : vector<1x26xf32>
    %14 = arith.mulf %10, %13 : vector<1x26xf32>
    %c0_8 = arith.constant 0 : index
    %c0_9 = arith.constant 0 : index
    %15 = vector.load %arg5[%c0_8, %c0_9] : memref<1x26xf32, #tpu.memory_space<vmem>>, vector<1x26xf32>
    %16 = arith.mulf %2, %14 : vector<1x26xf32>
    %17 = arith.subf %15, %16 : vector<1x26xf32>
    %c0_10 = arith.constant 0 : index
    %c0_11 = arith.constant 0 : index
    %18 = vector.load %arg1[%c0_10, %c0_11] : memref<256x26xf32, #tpu.memory_space<vmem>>, vector<256x26xf32>
    %19 = vector.broadcast %14 : vector<1x26xf32> to vector<256x26xf32>
    %20 = arith.mulf %18, %19 : vector<256x26xf32>
    %21 = vector.broadcast %17 : vector<1x26xf32> to vector<256x26xf32>
    %22 = arith.addf %20, %21 : vector<256x26xf32>
    %cst_12 = arith.constant 0.000000e+00 : f32
    %23 = vector.broadcast %cst_12 : f32 to vector<256x26xf32>
    %24 = arith.maximumf %22, %23 : vector<256x26xf32>
    %c0_13 = arith.constant 0 : index
    %c0_14 = arith.constant 0 : index
    %25 = vector.load %arg6[%c0_13, %c0_14] : memref<256x26xf32, #tpu.memory_space<vmem>>, vector<256x26xf32>
    tpu.vector_store %arg6[%c0_13, %c0_14], %24 {strides = array<i32>} : memref<256x26xf32, #tpu.memory_space<vmem>>, vector<256x26xf32>,
    return
  }
  func.func @transform_0(%arg0: i32) -> (i32, i32) {
    %c0_i32 = arith.constant 0 : i32
    %c0_i32_0 = arith.constant 0 : i32
    return %arg0, %c0_i32 : i32, i32
  }
  func.func @transform_1(%arg0: i32) -> (i32, i32) {
    %c0_i32 = arith.constant 0 : i32
    %c0_i32_0 = arith.constant 0 : i32
    %c0_i32_1 = arith.constant 0 : i32
    return %c0_i32, %c0_i32_0 : i32, i32
  }
  func.func @transform_2(%arg0: i32) -> (i32, i32) {
    %c0_i32 = arith.constant 0 : i32
    %c0_i32_0 = arith.constant 0 : i32
    %c0_i32_1 = arith.constant 0 : i32
    return %c0_i32, %c0_i32_0 : i32, i32
  }
  func.func @transform_3(%arg0: i32) -> (i32, i32) {
    %c0_i32 = arith.constant 0 : i32
    %c0_i32_0 = arith.constant 0 : i32
    %c0_i32_1 = arith.constant 0 : i32
    return %c0_i32, %c0_i32_0 : i32, i32
  }
  func.func @transform_4(%arg0: i32) -> (i32, i32) {
    %c0_i32 = arith.constant 0 : i32
    %c0_i32_0 = arith.constant 0 : i32
    %c0_i32_1 = arith.constant 0 : i32
    return %c0_i32, %c0_i32_0 : i32, i32
  }
  func.func @transform_5(%arg0: i32) -> (i32, i32) {
    %c0_i32 = arith.constant 0 : i32
    %c0_i32_0 = arith.constant 0 : i32
    return %arg0, %c0_i32 : i32, i32
  }
}

module attributes {stable_mosaic.version = 11 : i64} {
  func.func @conv_stats_kernel(%arg0: i32, %arg1: memref<256x104xbf16, #tpu.memory_space<vmem>>, %arg2: memref<104x64xbf16, #tpu.memory_space<vmem>>, %arg3: memref<256x64xf32, #tpu.memory_space<vmem>>, %arg4: memref<1x64xf32, #tpu.memory_space<vmem>>, %arg5: memref<1x64xf32, #tpu.memory_space<vmem>>) attributes {dimension_semantics = [#tpu.dimension_semantics<arbitrary>], iteration_bounds = array<i64: 2>, scalar_prefetch = 0 : i64, scratch_operands = 0 : i64, tpu.core_type = #tpu.core_type<tc>, window_params = [{transform_indices = @transform_0, window_bounds = array<i64: 256, 104>}, {pipeline_mode = #tpu.pipeline_mode<synchronous>, transform_indices = @transform_1, window_bounds = array<i64: 104, 64>}, {transform_indices = @transform_2, window_bounds = array<i64: 256, 64>}, {pipeline_mode = #tpu.pipeline_mode<synchronous>, transform_indices = @transform_3, window_bounds = array<i64: 1, 64>}, {pipeline_mode = #tpu.pipeline_mode<synchronous>, transform_indices = @transform_4, window_bounds = array<i64: 1, 64>}]} {
    %c0 = arith.constant 0 : index
    %c0_0 = arith.constant 0 : index
    %0 = vector.load %arg1[%c0, %c0_0] : memref<256x104xbf16, #tpu.memory_space<vmem>>, vector<256x104xbf16>
    %c0_1 = arith.constant 0 : index
    %c0_2 = arith.constant 0 : index
    %1 = vector.load %arg2[%c0_1, %c0_2] : memref<104x64xbf16, #tpu.memory_space<vmem>>, vector<104x64xbf16>
    %cst = arith.constant dense<0.000000e+00> : vector<256x64xf32>
    %2 = tpu.matmul %0, %1, %cst {dimension_numbers = #tpu.dot_dimension_numbers<[1], [0], [0], [1], [0, 0, 1, 1], [], []>} : vector<256x104xbf16>, vector<104x64xbf16>, vector<256x64xf32> -> vector<256x64xf32>
    %c0_3 = arith.constant 0 : index
    %c0_4 = arith.constant 0 : index
    %3 = vector.load %arg3[%c0_3, %c0_4] : memref<256x64xf32, #tpu.memory_space<vmem>>, vector<256x64xf32>
    tpu.vector_store %arg3[%c0_3, %c0_4], %2 {strides = array<i32>} : memref<256x64xf32, #tpu.memory_space<vmem>>, vector<256x64xf32>,
    %c0_i32 = arith.constant 0 : i32
    %4 = arith.cmpi eq, %arg0, %c0_i32 : i32
    %5 = arith.extui %4 : i1 to i32
    %c0_i32_5 = arith.constant 0 : i32
    %6 = arith.cmpi ne, %5, %c0_i32_5 : i32
    scf.if %6 {
      %cst_16 = arith.constant 0.000000e+00 : f32
      %18 = vector.broadcast %cst_16 : f32 to vector<1x64xf32>
      %c0_17 = arith.constant 0 : index
      %c0_18 = arith.constant 0 : index
      %19 = vector.load %arg4[%c0_17, %c0_18] : memref<1x64xf32, #tpu.memory_space<vmem>>, vector<1x64xf32>
      tpu.vector_store %arg4[%c0_17, %c0_18], %18 {strides = array<i32>} : memref<1x64xf32, #tpu.memory_space<vmem>>, vector<1x64xf32>,
      %cst_19 = arith.constant 0.000000e+00 : f32
      %20 = vector.broadcast %cst_19 : f32 to vector<1x64xf32>
      %c0_20 = arith.constant 0 : index
      %c0_21 = arith.constant 0 : index
      %21 = vector.load %arg5[%c0_20, %c0_21] : memref<1x64xf32, #tpu.memory_space<vmem>>, vector<1x64xf32>
      tpu.vector_store %arg5[%c0_20, %c0_21], %20 {strides = array<i32>} : memref<1x64xf32, #tpu.memory_space<vmem>>, vector<1x64xf32>,
    } else {
    }
    %c0_6 = arith.constant 0 : index
    %c0_7 = arith.constant 0 : index
    %7 = vector.load %arg4[%c0_6, %c0_7] : memref<1x64xf32, #tpu.memory_space<vmem>>, vector<1x64xf32>
    %cst_8 = arith.constant dense<0.000000e+00> : vector<64xf32>
    %8 = vector.multi_reduction <add>, %2, %cst_8 [0] : vector<256x64xf32> to vector<64xf32>
    %9 = vector.shape_cast %8 : vector<64xf32> to vector<1x64xf32>
    %10 = arith.addf %7, %9 : vector<1x64xf32>
    %c0_9 = arith.constant 0 : index
    %c0_10 = arith.constant 0 : index
    %11 = vector.load %arg4[%c0_9, %c0_10] : memref<1x64xf32, #tpu.memory_space<vmem>>, vector<1x64xf32>
    tpu.vector_store %arg4[%c0_9, %c0_10], %10 {strides = array<i32>} : memref<1x64xf32, #tpu.memory_space<vmem>>, vector<1x64xf32>,
    %c0_11 = arith.constant 0 : index
    %c0_12 = arith.constant 0 : index
    %12 = vector.load %arg5[%c0_11, %c0_12] : memref<1x64xf32, #tpu.memory_space<vmem>>, vector<1x64xf32>
    %13 = arith.mulf %2, %2 : vector<256x64xf32>
    %cst_13 = arith.constant dense<0.000000e+00> : vector<64xf32>
    %14 = vector.multi_reduction <add>, %13, %cst_13 [0] : vector<256x64xf32> to vector<64xf32>
    %15 = vector.shape_cast %14 : vector<64xf32> to vector<1x64xf32>
    %16 = arith.addf %12, %15 : vector<1x64xf32>
    %c0_14 = arith.constant 0 : index
    %c0_15 = arith.constant 0 : index
    %17 = vector.load %arg5[%c0_14, %c0_15] : memref<1x64xf32, #tpu.memory_space<vmem>>, vector<1x64xf32>
    tpu.vector_store %arg5[%c0_14, %c0_15], %16 {strides = array<i32>} : memref<1x64xf32, #tpu.memory_space<vmem>>, vector<1x64xf32>,
    return
  }
  func.func @transform_0(%arg0: i32) -> (i32, i32) {
    %c0_i32 = arith.constant 0 : i32
    %c0_i32_0 = arith.constant 0 : i32
    return %arg0, %c0_i32 : i32, i32
  }
  func.func @transform_1(%arg0: i32) -> (i32, i32) {
    %c0_i32 = arith.constant 0 : i32
    %c0_i32_0 = arith.constant 0 : i32
    %c0_i32_1 = arith.constant 0 : i32
    return %c0_i32, %c0_i32_0 : i32, i32
  }
  func.func @transform_2(%arg0: i32) -> (i32, i32) {
    %c0_i32 = arith.constant 0 : i32
    %c0_i32_0 = arith.constant 0 : i32
    return %arg0, %c0_i32 : i32, i32
  }
  func.func @transform_3(%arg0: i32) -> (i32, i32) {
    %c0_i32 = arith.constant 0 : i32
    %c0_i32_0 = arith.constant 0 : i32
    %c0_i32_1 = arith.constant 0 : i32
    return %c0_i32, %c0_i32_0 : i32, i32
  }
  func.func @transform_4(%arg0: i32) -> (i32, i32) {
    %c0_i32 = arith.constant 0 : i32
    %c0_i32_0 = arith.constant 0 : i32
    %c0_i32_1 = arith.constant 0 : i32
    return %c0_i32, %c0_i32_0 : i32, i32
  }
}

module attributes {stable_mosaic.version = 11 : i64} {
  func.func @bn_add_relu_kernel(%arg0: i32, %arg1: memref<256x64xf32, #tpu.memory_space<vmem>>, %arg2: memref<1x64xf32, #tpu.memory_space<vmem>>, %arg3: memref<1x64xf32, #tpu.memory_space<vmem>>, %arg4: memref<1x64xf32, #tpu.memory_space<vmem>>, %arg5: memref<1x64xf32, #tpu.memory_space<vmem>>, %arg6: memref<256x64xf32, #tpu.memory_space<vmem>>, %arg7: memref<256x64xf32, #tpu.memory_space<vmem>>) attributes {dimension_semantics = [#tpu.dimension_semantics<parallel>], iteration_bounds = array<i64: 2>, scalar_prefetch = 0 : i64, scratch_operands = 0 : i64, tpu.core_type = #tpu.core_type<tc>, window_params = [{transform_indices = @transform_0, window_bounds = array<i64: 256, 64>}, {pipeline_mode = #tpu.pipeline_mode<synchronous>, transform_indices = @transform_1, window_bounds = array<i64: 1, 64>}, {pipeline_mode = #tpu.pipeline_mode<synchronous>, transform_indices = @transform_2, window_bounds = array<i64: 1, 64>}, {pipeline_mode = #tpu.pipeline_mode<synchronous>, transform_indices = @transform_3, window_bounds = array<i64: 1, 64>}, {pipeline_mode = #tpu.pipeline_mode<synchronous>, transform_indices = @transform_4, window_bounds = array<i64: 1, 64>}, {transform_indices = @transform_5, window_bounds = array<i64: 256, 64>}, {transform_indices = @transform_6, window_bounds = array<i64: 256, 64>}]} {
    %c0 = arith.constant 0 : index
    %c0_0 = arith.constant 0 : index
    %0 = vector.load %arg2[%c0, %c0_0] : memref<1x64xf32, #tpu.memory_space<vmem>>, vector<1x64xf32>
    %cst = arith.constant 0.001953125 : f32
    %1 = vector.broadcast %cst : f32 to vector<1x64xf32>
    %2 = arith.mulf %0, %1 : vector<1x64xf32>
    %c0_1 = arith.constant 0 : index
    %c0_2 = arith.constant 0 : index
    %3 = vector.load %arg3[%c0_1, %c0_2] : memref<1x64xf32, #tpu.memory_space<vmem>>, vector<1x64xf32>
    %cst_3 = arith.constant 0.001953125 : f32
    %4 = vector.broadcast %cst_3 : f32 to vector<1x64xf32>
    %5 = arith.mulf %3, %4 : vector<1x64xf32>
    %6 = arith.mulf %2, %2 : vector<1x64xf32>
    %7 = arith.subf %5, %6 : vector<1x64xf32>
    %cst_4 = arith.constant 0.000000e+00 : f32
    %8 = vector.broadcast %cst_4 : f32 to vector<1x64xf32>
    %9 = arith.maximumf %7, %8 : vector<1x64xf32>
    %c0_5 = arith.constant 0 : index
    %c0_6 = arith.constant 0 : index
    %10 = vector.load %arg4[%c0_5, %c0_6] : memref<1x64xf32, #tpu.memory_space<vmem>>, vector<1x64xf32>
    %cst_7 = arith.constant 9.99999974E-6 : f32
    %11 = vector.broadcast %cst_7 : f32 to vector<1x64xf32>
    %12 = arith.addf %9, %11 : vector<1x64xf32>
    %13 = math.rsqrt %12 : vector<1x64xf32>
    %14 = arith.mulf %10, %13 : vector<1x64xf32>
    %c0_8 = arith.constant 0 : index
    %c0_9 = arith.constant 0 : index
    %15 = vector.load %arg5[%c0_8, %c0_9] : memref<1x64xf32, #tpu.memory_space<vmem>>, vector<1x64xf32>
    %16 = arith.mulf %2, %14 : vector<1x64xf32>
    %17 = arith.subf %15, %16 : vector<1x64xf32>
    %c0_10 = arith.constant 0 : index
    %c0_11 = arith.constant 0 : index
    %18 = vector.load %arg1[%c0_10, %c0_11] : memref<256x64xf32, #tpu.memory_space<vmem>>, vector<256x64xf32>
    %19 = vector.broadcast %14 : vector<1x64xf32> to vector<256x64xf32>
    %20 = arith.mulf %18, %19 : vector<256x64xf32>
    %21 = vector.broadcast %17 : vector<1x64xf32> to vector<256x64xf32>
    %22 = arith.addf %20, %21 : vector<256x64xf32>
    %c0_12 = arith.constant 0 : index
    %c0_13 = arith.constant 0 : index
    %23 = vector.load %arg6[%c0_12, %c0_13] : memref<256x64xf32, #tpu.memory_space<vmem>>, vector<256x64xf32>
    %24 = arith.addf %22, %23 : vector<256x64xf32>
    %cst_14 = arith.constant 0.000000e+00 : f32
    %25 = vector.broadcast %cst_14 : f32 to vector<256x64xf32>
    %26 = arith.maximumf %24, %25 : vector<256x64xf32>
    %c0_15 = arith.constant 0 : index
    %c0_16 = arith.constant 0 : index
    %27 = vector.load %arg7[%c0_15, %c0_16] : memref<256x64xf32, #tpu.memory_space<vmem>>, vector<256x64xf32>
    tpu.vector_store %arg7[%c0_15, %c0_16], %26 {strides = array<i32>} : memref<256x64xf32, #tpu.memory_space<vmem>>, vector<256x64xf32>,
    return
  }
  func.func @transform_0(%arg0: i32) -> (i32, i32) {
    %c0_i32 = arith.constant 0 : i32
    %c0_i32_0 = arith.constant 0 : i32
    return %arg0, %c0_i32 : i32, i32
  }
  func.func @transform_1(%arg0: i32) -> (i32, i32) {
    %c0_i32 = arith.constant 0 : i32
    %c0_i32_0 = arith.constant 0 : i32
    %c0_i32_1 = arith.constant 0 : i32
    return %c0_i32, %c0_i32_0 : i32, i32
  }
  func.func @transform_2(%arg0: i32) -> (i32, i32) {
    %c0_i32 = arith.constant 0 : i32
    %c0_i32_0 = arith.constant 0 : i32
    %c0_i32_1 = arith.constant 0 : i32
    return %c0_i32, %c0_i32_0 : i32, i32
  }
  func.func @transform_3(%arg0: i32) -> (i32, i32) {
    %c0_i32 = arith.constant 0 : i32
    %c0_i32_0 = arith.constant 0 : i32
    %c0_i32_1 = arith.constant 0 : i32
    return %c0_i32, %c0_i32_0 : i32, i32
  }
  func.func @transform_4(%arg0: i32) -> (i32, i32) {
    %c0_i32 = arith.constant 0 : i32
    %c0_i32_0 = arith.constant 0 : i32
    %c0_i32_1 = arith.constant 0 : i32
    return %c0_i32, %c0_i32_0 : i32, i32
  }
  func.func @transform_5(%arg0: i32) -> (i32, i32) {
    %c0_i32 = arith.constant 0 : i32
    %c0_i32_0 = arith.constant 0 : i32
    return %arg0, %c0_i32 : i32, i32
  }
  func.func @transform_6(%arg0: i32) -> (i32, i32) {
    %c0_i32 = arith.constant 0 : i32
    %c0_i32_0 = arith.constant 0 : i32
    return %arg0, %c0_i32 : i32, i32
  }
}

</mosaic_0001>

<bundles_post_ra>
// kernel: bottleneck_forward_pallas.24
= control target key start
LH: loop header
LB: loop body
LE: loop exit
PB: predicated region body
PF: predicated region fallthrough
CT: control target
= control target key end

     0   :  { %s947_s15 = smov 0   ;;  %s1334_s0 = inlined_call_operand.vmem [shape: bf16[512,64], index: 0, kind: input, shape index: {}]   ;;  %s1335_s1 = inlined_call_operand.vmem [shape: bf16[64,104], index: 1, kind: input, shape index: {}]   ;;  %s1336_s2 = inlined_call_operand.vmem [shape: f32[512,104], index: 2, kind: output, shape index: {0}]   ;;  %s1337_s3 = inlined_call_operand.vmem [shape: f32[1,104], index: 3, kind: output, shape index: {1}]   ;;  %s1338_s4 = inlined_call_operand.vmem [shape: f32[1,104], index: 4, kind: output, shape index: {2}]  }
   0x1 LB: > { %s764_s16 = sadd.s32 4294967295, %s919_s15   ;;  %p768_p0 = scmp.ge.s32.totalorder %s919_s15, 1  ;;  %s919_s15 = sphi %s947_s15, %s15_s15  }
   0x2   : > { %p158_p1 = scmp.lt.s32.totalorder %s919_s15, 3 }
   0x4   : > { %p159_p2 = pnand %p768_p0, %p158_p1 }
   0x5   : > { %s769_s19 = sshll.u32 (!%p159_p2), %s764_s16, 5  ;;  %p869_p4 = scmp.ne.s32.totalorder (!%p159_p2), %s764_s16, 0 }
   0x6   : > { %162 = sbr.rel (%p159_p2) target bundleno = 303 (0x12f), region = 28  ;;  %p185_p3 = scmp.lt.s32.totalorder (!%p159_p2), %s769_s19, 63 }
   0xb   : > { %v891_v0 = vld [vmem:[%s1335_s1 + $0x18] sm:$0xff]  ;;  %v890_v1 = vld [vmem:[%s1335_s1 + $0x10] sm:$0xff]  ;;  %s1340_s19 = smov (!%p185_p3, %s769_s19), 63  ;;  %v889_v2 = vld [vmem:[%s1335_s1 + $0x8] sm:$0xff]  ;;  %vm341_vm0 = vcmask 523264   ;;  %vm479_vm1 = vcmask 850944  }
   0xc   : > { %394 = vmatpush.bf16.msra.mxu0 %v891_v0  ;;  %892 = vmatpush.bf16.msra.mxu1 %v891_v0  ;;  %s770_s24 = sshll.u32 %s1340_s19, 2  ;;  %v888_v3 = vld [vmem:[%s1335_s1] sm:$0xff]  ;;  %s772_s30 = sshll.u32 %s1340_s19, 3 }
   0xd   : > { %893 = vmatpush.bf16.msra.mxu2 %v891_v0  ;;  %894 = vmatpush.bf16.msra.mxu3 %v891_v0  ;;  %s975_s29 = scalar_lea.vmem %s1334_s0, %s770_s24  ;;  %s1013_s7 = scalar_lea.vmem %s1336_s2, %s772_s30 }
   0xe   : > { %v872_v4 = vld [vmem:[%s975_s29] sm:$0xff]  ;;  %v873_v8 = vld [vmem:[%s975_s29 + $0x8] sm:$0xff]  ;;  %v874_v12 = vld [vmem:[%s975_s29 + $0x10] sm:$0xff] }
   0xf   : > { %v876_v5 = vld [vmem:[%s975_s29 + $0x20] sm:$0xff]  ;;  %v877_v9 = vld [vmem:[%s975_s29 + $0x28] sm:$0xff]  ;;  %v878_v13 = vld [vmem:[%s975_s29 + $0x30] sm:$0xff] }
  0x10   : > { %395 = vmatpush.bf16.msra.mxu0 %v890_v1  ;;  %895 = vmatpush.bf16.msra.mxu1 %v890_v1  ;;  %v880_v6 = vld [vmem:[%s975_s29 + $0x40] sm:$0xff]  ;;  %v881_v10 = vld [vmem:[%s975_s29 + $0x48] sm:$0xff]  ;;  %v882_v14 = vld [vmem:[%s975_s29 + $0x50] sm:$0xff] }
  0x11   : > { %896 = vmatpush.bf16.msra.mxu2 %v890_v1  ;;  %897 = vmatpush.bf16.msra.mxu3 %v890_v1  ;;  %v884_v7 = vld [vmem:[%s975_s29 + $0x60] sm:$0xff]  ;;  %v885_v11 = vld [vmem:[%s975_s29 + $0x68] sm:$0xff]  ;;  %v886_v15 = vld [vmem:[%s975_s29 + $0x70] sm:$0xff] }
  0x12   : > { %v875_v16 = vld [vmem:[%s975_s29 + $0x18] sm:$0xff] }
  0x13   : > { %v879_v17 = vld [vmem:[%s975_s29 + $0x38] sm:$0xff] }
  0x14   : > { %396 = vmatpush.bf16.msra.mxu0 %v889_v2  ;;  %898 = vmatpush.bf16.msra.mxu1 %v889_v2  ;;  %v883_v18 = vld [vmem:[%s975_s29 + $0x58] sm:$0xff] }
  0x15   : > { %899 = vmatpush.bf16.msra.mxu2 %v889_v2  ;;  %900 = vmatpush.bf16.msra.mxu3 %v889_v2  ;;  %v887_v19 = vld [vmem:[%s975_s29 + $0x78] sm:$0xff] }
  0x18   : > { %397 = vmatpush.bf16.msra.mxu0 %v888_v3  ;;  %901 = vmatpush.bf16.msra.mxu1 %v888_v3 }
  0x19   : > { %902 = vmatpush.bf16.msra.mxu2 %v888_v3  ;;  %903 = vmatpush.bf16.msra.mxu3 %v888_v3 }
  0x1b   : > { %853 = vmatmul.msk.bf16.vlgmr.msra.gmra.mxu0 %vm341_vm0, %v872_v4  ;;  %857 = vmatmul.msk.bf16.vlgmr.msra.gmra.mxu1 %vm341_vm0, %v876_v5 }
  0x1c   : > { %861 = vmatmul.msk.bf16.vlgmr.msra.gmra.mxu2 %vm341_vm0, %v880_v6  ;;  %865 = vmatmul.msk.bf16.vlgmr.msra.gmra.mxu3 %vm341_vm0, %v884_v7 }
  0x2b   : > { %854 = vmatmul.msk.bf16.gmra.mxu0 %vm341_vm0, %v873_v8  ;;  %858 = vmatmul.msk.bf16.gmra.mxu1 %vm341_vm0, %v877_v9 }
  0x2c   : > { %862 = vmatmul.msk.bf16.gmra.mxu2 %vm341_vm0, %v881_v10  ;;  %866 = vmatmul.msk.bf16.gmra.mxu3 %vm341_vm0, %v885_v11 }
  0x3b   : > { %855 = vmatmul.msk.bf16.gmra.mxu0 %vm341_vm0, %v874_v12  ;;  %859 = vmatmul.msk.bf16.gmra.mxu1 %vm341_vm0, %v878_v13 }
  0x3c   : > { %863 = vmatmul.msk.bf16.gmra.mxu2 %vm341_vm0, %v882_v14  ;;  %867 = vmatmul.msk.bf16.gmra.mxu3 %vm341_vm0, %v886_v15 }
  0x4b   : > { %856 = vmatmul.msk.bf16.gmra.mxu0 %vm341_vm0, %v875_v16  ;;  %860 = vmatmul.msk.bf16.gmra.mxu1 %vm341_vm0, %v879_v17 }
  0x4c   : > { %864 = vmatmul.msk.bf16.gmra.mxu2 %vm341_vm0, %v883_v18  ;;  %868 = vmatmul.msk.bf16.gmra.mxu3 %vm341_vm0, %v887_v19 }
  0x98   : > { %v1015_v20 = vpop.f32.mrf.mxu0  ;;  %v1017_v21 = vpop.f32.mrf.mxu1 }
  0x99   : > { %480 = vst.msk [vmem:[%s1013_s7] sm:$0xff] %vm479_vm1, %v1015_v20 }
  0x9a   : > { %488 = vst.msk [vmem:[%s1013_s7 + $0x40] sm:$0xff] %vm479_vm1, %v1017_v21 }
  0x9f   : > { %v1025_v22 = vpop.f32.mrf.mxu2  ;;  %v1027_v23 = vpop.f32.mrf.mxu3 }
  0xa0   : > { %496 = vst.msk [vmem:[%s1013_s7 + $0x80] sm:$0xff] %vm479_vm1, %v1025_v22  ;;  %v1032_v24 = vpop.f32.mrf.mxu0  ;;  %v1034_v25 = vpop.f32.mrf.mxu1 }
  0xa1   : > { %504 = vst.msk [vmem:[%s1013_s7 + $0xc0] sm:$0xff] %vm479_vm1, %v1027_v23 }
  0xa2   : > { %481 = vst.msk [vmem:[%s1013_s7 + $0x8] sm:$0xff] %vm479_vm1, %v1032_v24 }
  0xa3   : > { %489 = vst.msk [vmem:[%s1013_s7 + $0x48] sm:$0xff] %vm479_vm1, %v1034_v25 }
  0xa7   : > { %v1045_v26 = vpop.f32.mrf.mxu2  ;;  %v1047_v27 = vpop.f32.mrf.mxu3 }
  0xa8   : > { %497 = vst.msk [vmem:[%s1013_s7 + $0x88] sm:$0xff] %vm479_vm1, %v1045_v26  ;;  %v1052_v28 = vpop.f32.mrf.mxu0  ;;  %v1054_v29 = vpop.f32.mrf.mxu1 }
  0xa9   : > { %505 = vst.msk [vmem:[%s1013_s7 + $0xc8] sm:$0xff] %vm479_vm1, %v1047_v27 }
  0xaa   : > { %482 = vst.msk [vmem:[%s1013_s7 + $0x10] sm:$0xff] %vm479_vm1, %v1052_v28 }
  0xab   : > { %490 = vst.msk [vmem:[%s1013_s7 + $0x50] sm:$0xff] %vm479_vm1, %v1054_v29 }
  0xaf   : > { %v1065_v30 = vpop.f32.mrf.mxu2  ;;  %v1067_v31 = vpop.f32.mrf.mxu3 }
  0xb0   : > { %498 = vst.msk [vmem:[%s1013_s7 + $0x90] sm:$0xff] %vm479_vm1, %v1065_v30  ;;  %v1072_v32 = vpop.f32.mrf.mxu0  ;;  %v1074_v33 = vpop.f32.mrf.mxu1 }
  0xb1   : > { %506 = vst.msk [vmem:[%s1013_s7 + $0xd0] sm:$0xff] %vm479_vm1, %v1067_v31 }
  0xb2   : > { %483 = vst.msk [vmem:[%s1013_s7 + $0x18] sm:$0xff] %vm479_vm1, %v1072_v32 }
  0xb3   : > { %491 = vst.msk [vmem:[%s1013_s7 + $0x58] sm:$0xff] %vm479_vm1, %v1074_v33 }
  0xb7   : > { %v1085_v34 = vpop.f32.mrf.mxu2  ;;  %v1087_v35 = vpop.f32.mrf.mxu3 }
  0xb8   : > { %499 = vst.msk [vmem:[%s1013_s7 + $0x98] sm:$0xff] %vm479_vm1, %v1085_v34  ;;  %v409_v36 = vpop.f32.mrf.mxu0  ;;  %v1092_v37 = vpop.f32.mrf.mxu1 }
  0xb9   : > { %507 = vst.msk [vmem:[%s1013_s7 + $0xd8] sm:$0xff] %vm479_vm1, %v1087_v35 }
  0xba   : > { %484 = vst.msk [vmem:[%s1013_s7 + $0x20] sm:$0xff] %vm479_vm1, %v409_v36 }
  0xbb   : > { %492 = vst.msk [vmem:[%s1013_s7 + $0x60] sm:$0xff] %vm479_vm1, %v1092_v37 }
  0xbf   : > { %v1102_v38 = vpop.f32.mrf.mxu2  ;;  %v1104_v39 = vpop.f32.mrf.mxu3 }
  0xc0   : > { %500 = vst.msk [vmem:[%s1013_s7 + $0xa0] sm:$0xff] %vm479_vm1, %v1102_v38  ;;  %v411_v40 = vpop.f32.mrf.mxu0  ;;  %v1109_v41 = vpop.f32.mrf.mxu1 }
  0xc1   : > { %508 = vst.msk [vmem:[%s1013_s7 + $0xe0] sm:$0xff] %vm479_vm1, %v1104_v39 }
  0xc2   : > { %485 = vst.msk [vmem:[%s1013_s7 + $0x28] sm:$0xff] %vm479_vm1, %v411_v40 }
  0xc3   : > { %493 = vst.msk [vmem:[%s1013_s7 + $0x68] sm:$0xff] %vm479_vm1, %v1109_v41 }
  0xc7   : > { %v1119_v42 = vpop.f32.mrf.mxu2  ;;  %v1121_v43 = vpop.f32.mrf.mxu3 }
  0xc8   : > { %501 = vst.msk [vmem:[%s1013_s7 + $0xa8] sm:$0xff] %vm479_vm1, %v1119_v42  ;;  %v414_v44 = vpop.f32.mrf.mxu0  ;;  %v1126_v45 = vpop.f32.mrf.mxu1 }
  0xc9   : > { %509 = vst.msk [vmem:[%s1013_s7 + $0xe8] sm:$0xff] %vm479_vm1, %v1121_v43 }
  0xca   : > { %486 = vst.msk [vmem:[%s1013_s7 + $0x30] sm:$0xff] %vm479_vm1, %v414_v44 }
  0xcb   : > { %494 = vst.msk [vmem:[%s1013_s7 + $0x70] sm:$0xff] %vm479_vm1, %v1126_v45 }
  0xcf   : > { %v1136_v46 = vpop.f32.mrf.mxu2  ;;  %v1138_v47 = vpop.f32.mrf.mxu3 }
  0xd0   : > { %502 = vst.msk [vmem:[%s1013_s7 + $0xb0] sm:$0xff] %vm479_vm1, %v1136_v46  ;;  %v416_v48 = vpop.f32.mrf.mxu0  ;;  %v1143_v49 = vpop.f32.mrf.mxu1 }
  0xd1   : > { %510 = vst.msk [vmem:[%s1013_s7 + $0xf0] sm:$0xff] %vm479_vm1, %v1138_v47 }
  0xd2   : > { %487 = vst.msk [vmem:[%s1013_s7 + $0x38] sm:$0xff] %vm479_vm1, %v416_v48 }
  0xd3   : > { %495 = vst.msk [vmem:[%s1013_s7 + $0x78] sm:$0xff] %vm479_vm1, %v1143_v49 }
  0xd5   : > { %515 = sbr.rel (%p869_p4) target bundleno = 221 (0xdd), region = 32 }
  0xd7   : > { %v1153_v50 = vpop.f32.mrf.mxu2  ;;  %v1155_v51 = vpop.f32.mrf.mxu3 }
  0xd8   : > { %503 = vst.msk [vmem:[%s1013_s7 + $0xb8] sm:$0xff] %vm479_vm1, %v1153_v50 }
  0xd9   : > { %511 = vst.msk [vmem:[%s1013_s7 + $0xf8] sm:$0xff] %vm479_vm1, %v1155_v51 }
  0xda   : > { %vm516_vm2 = vcmask 843776   ;;  %v921_v52 = vmov 0.0  }
  0xdb   : > { %517 = vst.msk [vmem:[%s1337_s3] sm:$0x1] %vm516_vm2, %v921_v52 }
  0xdc   : > { %518 = vst.msk [vmem:[%s1338_s4] sm:$0x1] %vm516_vm2, %v921_v52 }
  0xdd PF: > { %v520_v53 = vsel %vm479_vm1, %v1015_v20, 0.0  ;;  %v521_v54 = vsel %vm479_vm1, %v1032_v24, 0.0  ;;  %v523_v55 = vsel %vm479_vm1, %v1052_v28, 0.0  ;;  %v525_v57 = vsel %vm479_vm1, %v1072_v32, 0.0 }
  0xde   : > { %v522_v56 = vadd.f32 %v521_v54, %v520_v53  ;;  %v527_v59 = vsel %vm479_vm1, %v409_v36, 0.0  ;;  %v529_v61 = vsel %vm479_vm1, %v411_v40, 0.0  ;;  %v531_v63 = vsel %vm479_vm1, %v414_v44, 0.0 }
  0xdf   : > { %v593_v0 = vmul.f32 %v1015_v20, %v1015_v20  ;;  %v594_v2 = vmul.f32 %v1032_v24, %v1032_v24  ;;  %v595_v3 = vmul.f32 %v1052_v28, %v1052_v28  ;;  %v533_v4 = vsel %vm479_vm1, %v416_v48, 0.0 }
  0xe0   : > { %v524_v58 = vadd.f32 %v523_v55, %v522_v56  ;;  %v596_v6 = vmul.f32 %v1072_v32, %v1072_v32  ;;  %v535_v7 = vsel %vm479_vm1, %v1017_v21, 0.0  ;;  %v597_v10 = vmul.f32 %v409_v36, %v409_v36 }
  0xe1   : > { %v625_v8 = vsel %vm479_vm1, %v593_v0, 0.0  ;;  %v626_v11 = vsel %vm479_vm1, %v594_v2, 0.0  ;;  %v628_v12 = vsel %vm479_vm1, %v595_v3, 0.0  ;;  %v537_v13 = vsel %vm479_vm1, %v1034_v25, 0.0 }
  0xe2   : > { %v526_v60 = vadd.f32 %v525_v57, %v524_v58  ;;  %v627_v14 = vadd.f32 %v626_v11, %v625_v8  ;;  %v598_v16 = vmul.f32 %v411_v40, %v411_v40  ;;  %v630_v17 = vsel %vm479_vm1, %v596_v6, 0.0 }
  0xe3   : > { %v539_v18 = vsel %vm479_vm1, %v1054_v29, 0.0  ;;  %v599_v24 = vmul.f32 %v414_v44, %v414_v44  ;;  %v632_v28 = vsel %vm479_vm1, %v597_v10, 0.0  ;;  %v541_v32 = vsel %vm479_vm1, %v1074_v33, 0.0 }
  0xe4   : > { %v528_v62 = vadd.f32 %v527_v59, %v526_v60  ;;  %v629_v19 = vadd.f32 %v628_v12, %v627_v14  ;;  %v600_v53 = vmul.f32 %v416_v48, %v416_v48  ;;  %v634_v54 = vsel %vm479_vm1, %v598_v16, 0.0 }
  0xe5   : > { %v543_v40 = vsel %vm479_vm1, %v1092_v37, 0.0  ;;  %v601_v57 = vmul.f32 %v1017_v21, %v1017_v21  ;;  %v636_v44 = vsel %vm479_vm1, %v599_v24, 0.0  ;;  %v545_v58 = vsel %vm479_vm1, %v1109_v41, 0.0 }
  0xe6   : > { %v530_v1 = vadd.f32 %v529_v61, %v528_v62  ;;  %v631_v36 = vadd.f32 %v630_v17, %v629_v19  ;;  %v602_v48 = vmul.f32 %v1034_v25, %v1034_v25  ;;  %v638_v61 = vsel %vm479_vm1, %v600_v53, 0.0 }
  0xe7   : > { %v547_v62 = vsel %vm479_vm1, %v1126_v45, 0.0  ;;  %v603_v21 = vmul.f32 %v1054_v29, %v1054_v29  ;;  %v549_v2 = vsel %vm479_vm1, %v1143_v49, 0.0  ;;  %v604_v25 = vmul.f32 %v1074_v33, %v1074_v33 }
  0xe8   : > { %v532_v5 = vadd.f32 %v531_v63, %v530_v1  ;;  %v633_v55 = vadd.f32 %v632_v28, %v631_v36  ;;  %v640_v1 = vsel %vm479_vm1, %v601_v57, 0.0  ;;  %v551_v6 = vsel %vm479_vm1, %v1025_v22, 0.0 }
  0xe9   : > { %v605_v29 = vmul.f32 %v1092_v37, %v1092_v37  ;;  %v553_v10 = vsel %vm479_vm1, %v1045_v26, 0.0  ;;  %v606_v33 = vmul.f32 %v1109_v41, %v1109_v41  ;;  %v555_v14 = vsel %vm479_vm1, %v1065_v30, 0.0 }
  0xea   : > { %v534_v9 = vadd.f32 %v533_v4, %v532_v5  ;;  %v635_v59 = vadd.f32 %v634_v54, %v633_v55  ;;  %v642_v5 = vsel %vm479_vm1, %v602_v48, 0.0  ;;  %v607_v37 = vmul.f32 %v1126_v45, %v1126_v45 }
  0xeb   : > { %v648_v17 = vsel %vm479_vm1, %v605_v29, 0.0  ;;  %v608_v41 = vmul.f32 %v1143_v49, %v1143_v49  ;;  %v650_v24 = vsel %vm479_vm1, %v606_v33, 0.0  ;;  %v559_v28 = vsel %vm479_vm1, %v1102_v38, 0.0 }
  0xec   : > { %v536_v15 = vadd.f32 %v535_v7, %v534_v9  ;;  %v637_v63 = vadd.f32 %v636_v44, %v635_v59  ;;  %v644_v9 = vsel %vm479_vm1, %v603_v21, 0.0  ;;  %v609_v45 = vmul.f32 %v1025_v22, %v1025_v22 }
  0xed   : > { %v561_v53 = vsel %vm479_vm1, %v1119_v42, 0.0  ;;  %v610_v49 = vmul.f32 %v1045_v26, %v1045_v26  ;;  %v654_v55 = vsel %vm479_vm1, %v608_v41, 0.0  ;;  %v611_v22 = vmul.f32 %v1065_v30, %v1065_v30 }
  0xee   : > { %v538_v20 = vadd.f32 %v537_v13, %v536_v15  ;;  %v639_v3 = vadd.f32 %v638_v61, %v637_v63  ;;  %v646_v13 = vsel %vm479_vm1, %v604_v25, 0.0  ;;  %v565_v59 = vsel %vm479_vm1, %v1153_v50, 0.0 }
  0xef   : > { %v612_v26 = vmul.f32 %v1085_v34, %v1085_v34  ;;  %v658_v61 = vsel %vm479_vm1, %v610_v49, 0.0  ;;  %v613_v30 = vmul.f32 %v1102_v38, %v1102_v38  ;;  %v660_v21 = vsel %vm479_vm1, %v611_v22, 0.0 }
  0xf0   : > { %v540_v52 = vadd.f32 %v539_v18, %v538_v20  ;;  %v641_v7 = vadd.f32 %v640_v1, %v639_v3  ;;  %v557_v18 = vsel %vm479_vm1, %v1085_v34, 0.0  ;;  %v569_v1 = vsel %vm479_vm1, %v1047_v27, 0.0 }
  0xf1   : > { %v614_v34 = vmul.f32 %v1119_v42, %v1119_v42  ;;  %v571_v25 = vsel %vm479_vm1, %v1067_v31, 0.0  ;;  %v615_v38 = vmul.f32 %v1136_v46, %v1136_v46  ;;  %v616_v42 = vmul.f32 %v1153_v50, %v1153_v50 }
  0xf2   : > { %v542_v56 = vadd.f32 %v541_v32, %v540_v52  ;;  %v643_v11 = vadd.f32 %v642_v5, %v641_v7  ;;  %v652_v52 = vsel %vm479_vm1, %v607_v37, 0.0  ;;  %v664_v7 = vsel %vm479_vm1, %v613_v30, 0.0 }
  0xf3   : > { %v618_v50 = vmul.f32 %v1047_v27, %v1047_v27  ;;  %v670_v37 = vsel %vm479_vm1, %v616_v42, 0.0  ;;  %v581_v41 = vsel %vm479_vm1, %v1155_v51, 0.0  ;;  %v620_v27 = vmul.f32 %v1087_v35, %v1087_v35 }
  0xf4   : > { %v544_v60 = vadd.f32 %v543_v40, %v542_v56  ;;  %v645_v15 = vadd.f32 %v644_v9, %v643_v11  ;;  %v563_v56 = vsel %vm479_vm1, %v1136_v46, 0.0  ;;  %v575_v11 = vsel %vm479_vm1, %v1104_v39, 0.0 }
  0xf5   : > { %v617_v46 = vmul.f32 %v1027_v23, %v1027_v23  ;;  %v678_v49 = vsel %vm479_vm1, %v620_v27, 0.0  ;;  %vm590_vm3 = vcmask 843776  }
  0xf6   : > { %v546_v0 = vadd.f32 %v545_v58, %v544_v60  ;;  %v647_v19 = vadd.f32 %v646_v13, %v645_v15  ;;  %v656_v58 = vsel %vm479_vm1, %v609_v45, 0.0  ;;  %v668_v13 = vsel %vm479_vm1, %v615_v38, 0.0 }
  0xf8   : > { %v548_v4 = vadd.f32 %v547_v62, %v546_v0  ;;  %v649_v32 = vadd.f32 %v648_v17, %v647_v19  ;;  %v567_v62 = vsel %vm479_vm1, %v1027_v23, 0.0  ;;  %v579_v17 = vsel %vm479_vm1, %v1138_v47, 0.0 }
  0xf9   : > { %v619_v23 = vmul.f32 %v1067_v31, %v1067_v31 }
  0xfa   : > { %v550_v8 = vadd.f32 %v549_v2, %v548_v4  ;;  %v651_v54 = vadd.f32 %v650_v24, %v649_v32  ;;  %v662_v4 = vsel %vm479_vm1, %v612_v26, 0.0  ;;  %v674_v32 = vsel %vm479_vm1, %v618_v50, 0.0 }
  0xfc   : > { %v552_v12 = vadd.f32 %v551_v6, %v550_v8  ;;  %v653_v57 = vadd.f32 %v652_v52, %v651_v54  ;;  %v573_v8 = vsel %vm479_vm1, %v1087_v35, 0.0  ;;  %v621_v52 = vmul.f32 %v1104_v39, %v1104_v39 }
  0xfd   : > { %v623_v35 = vmul.f32 %v1138_v47, %v1138_v47  ;;  %v624_v39 = vmul.f32 %v1155_v51, %v1155_v51  ;;  %v519_v47 = vld [vmem:[%s1337_s3] sm:$0x1] }
  0xfe   : > { %v554_v16 = vadd.f32 %v553_v10, %v552_v12  ;;  %v655_v60 = vadd.f32 %v654_v55, %v653_v57  ;;  %v666_v10 = vsel %vm479_vm1, %v614_v34, 0.0  ;;  %v680_v57 = vsel %vm479_vm1, %v621_v52, 0.0  ;;  %v592_v34 = vld [vmem:[%s1338_s4] sm:$0x1] }
 0x100   : > { %v556_v20 = vadd.f32 %v555_v14, %v554_v16  ;;  %v657_v63 = vadd.f32 %v656_v58, %v655_v60  ;;  %v577_v14 = vsel %vm479_vm1, %v1121_v43, 0.0 }
 0x102   : > { %v558_v36 = vadd.f32 %v557_v18, %v556_v20  ;;  %v659_v2 = vadd.f32 %v658_v61, %v657_v63  ;;  %v672_v20 = vsel %vm479_vm1, %v617_v46, 0.0  ;;  %v686_v61 = vsel %vm479_vm1, %v624_v39, 0.0 }
 0x104   : > { %v560_v40 = vadd.f32 %v559_v28, %v558_v36  ;;  %v661_v5 = vadd.f32 %v660_v21, %v659_v2 }
 0x106   : > { %v562_v44 = vadd.f32 %v561_v53, %v560_v40  ;;  %v663_v29 = vadd.f32 %v662_v4, %v661_v5  ;;  %v676_v53 = vsel %vm479_vm1, %v619_v23, 0.0  ;;  %v622_v40 = vmul.f32 %v1121_v43, %v1121_v43 }
 0x107   : > { %v684_v43 = vsel %vm479_vm1, %v623_v35, 0.0 }
 0x108   : > { %v564_v48 = vadd.f32 %v563_v56, %v562_v44  ;;  %v665_v12 = vadd.f32 %v664_v7, %v663_v29  ;;  %v682_v58 = vsel %vm479_vm1, %v622_v40, 0.0 }
 0x10a   : > { %v566_v0 = vadd.f32 %v565_v59, %v564_v48  ;;  %v667_v15 = vadd.f32 %v666_v10, %v665_v12 }
 0x10c   : > { %v568_v3 = vadd.f32 %v567_v62, %v566_v0  ;;  %v669_v18 = vadd.f32 %v668_v13, %v667_v15 }
 0x10e   : > { %v570_v6 = vadd.f32 %v569_v1, %v568_v3  ;;  %v671_v24 = vadd.f32 %v670_v37, %v669_v18 }
 0x110   : > { %v572_v9 = vadd.f32 %v571_v25, %v570_v6  ;;  %v673_v36 = vadd.f32 %v672_v20, %v671_v24 }
 0x112   : > { %v574_v33 = vadd.f32 %v573_v8, %v572_v9  ;;  %v675_v31 = vadd.f32 %v674_v32, %v673_v36 }
 0x114   : > { %v576_v16 = vadd.f32 %v575_v11, %v574_v33  ;;  %v677_v55 = vadd.f32 %v676_v53, %v675_v31 }
 0x116   : > { %v578_v19 = vadd.f32 %v577_v14, %v576_v16  ;;  %v679_v44 = vadd.f32 %v678_v49, %v677_v55 }
 0x118   : > { %v580_v28 = vadd.f32 %v579_v17, %v578_v19  ;;  %v681_v59 = vadd.f32 %v680_v57, %v679_v44 }
 0x11a   : > { %v582_v45 = vadd.f32 %v581_v41, %v580_v28  ;;  %v683_v48 = vadd.f32 %v682_v58, %v681_v59 }
 0x11c   : > { %v583_v54 = vrot.slane %v582_v45, 4  ;;  %v685_v62 = vadd.f32 %v684_v43, %v683_v48 }
 0x11e   : > { %v584_v56 = vadd.f32 %v583_v54, %v582_v45  ;;  %v687_v0 = vadd.f32 %v686_v61, %v685_v62 }
 0x120   : > { %v585_v22 = vrot.slane %v584_v56, 2  ;;  %v688_v51 = vrot.slane %v687_v0, 4 }
 0x122   : > { %v586_v60 = vadd.f32 %v585_v22, %v584_v56  ;;  %v689_v21 = vadd.f32 %v688_v51, %v687_v0 }
 0x124   : > { %v587_v26 = vrot.slane %v586_v60, 1  ;;  %v690_v1 = vrot.slane %v689_v21, 2 }
 0x126   : > { %v588_v63 = vadd.f32 %v587_v26, %v586_v60  ;;  %v691_v2 = vadd.f32 %v690_v1, %v689_v21 }
 0x128   : > { %v589_v30 = vadd.f32 %v588_v63, %v519_v47  ;;  %v692_v3 = vrot.slane %v691_v2, 1 }
 0x12a   : > { %591 = vst.msk [vmem:[%s1337_s3] sm:$0x1] %vm590_vm3, %v589_v30  ;;  %v693_v4 = vadd.f32 %v692_v3, %v691_v2 }
 0x12c   : > { %v694_v25 = vadd.f32 %v693_v4, %v592_v34 }
 0x12e   : > { %695 = vst.msk [vmem:[%s1338_s4] sm:$0x1] %vm590_vm3, %v694_v25 }
 0x12f PF: > { %s15_s15 = sadd.s32 1, %s919_s15  }
 0x130   : > { %p12_p5 = scmp.ge.s32.totalorder %s15_s15, 4  }
 0x132   :  { %14 = sbr.rel (!%p12_p5) target bundleno = 1 (0x1), region = 78 }

// kernel: bottleneck_forward_pallas.25
= control target key start
LH: loop header
LB: loop body
LE: loop exit
PB: predicated region body
PF: predicated region fallthrough
CT: control target
= control target key end

     0   :  { %s533_s18 = smov 0   ;;  %s737_s0 = inlined_call_operand.vmem [shape: f32[512,104], index: 0, kind: input, shape index: {}]   ;;  %s738_s1 = inlined_call_operand.vmem [shape: f32[1,104], index: 1, kind: input, shape index: {}]   ;;  %s739_s2 = inlined_call_operand.vmem [shape: f32[1,104], index: 2, kind: input, shape index: {}]   ;;  %s740_s3 = inlined_call_operand.vmem [shape: f32[1,104], index: 3, kind: input, shape index: {}]   ;;  %s741_s4 = inlined_call_operand.vmem [shape: f32[1,104], index: 4, kind: input, shape index: {}]   ;;  %s742_s5 = inlined_call_operand.vmem [shape: f32[512,104], index: 5, kind: output, shape index: {}]  }
   0x1 LB: > { %s474_s19 = sadd.s32 4294967295, %s501_s18   ;;  %p478_p0 = scmp.ge.s32.totalorder %s501_s18, 1  ;;  %s501_s18 = sphi %s533_s18, %s15_s18  }
   0x2   : > { %p188_p1 = scmp.lt.s32.totalorder %s501_s18, 3 }
   0x4   : > { %p189_p2 = pnand %p478_p0, %p188_p1 }
   0x5   : > { %s479_s24 = sshll.u32 (!%p189_p2), %s474_s19, 5 }
   0x6   : > { %192 = sbr.rel (%p189_p2) target bundleno = 84 (0x54), region = 40  ;;  %p217_p3 = scmp.lt.s32.totalorder (!%p189_p2), %s479_s24, 63 }
   0xb   : > { %v228_v0 = vld [vmem:[%s738_s1] sm:$0x1]  ;;  %s744_s24 = smov (!%p217_p3, %s479_s24), 63  ;;  %vm385_vm3 = vcmask 850944  }
   0xc   : > { %v230_v1 = vld [vmem:[%s739_s2] sm:$0x1]  ;;  %v229_v2 = vmul.f32 0.001953125, %v228_v0  ;;  %s480_s25 = sshll.u32 %s744_s24, 3 }
   0xd   : > { %v231_v3 = vmul.f32 0.001953125, %v230_v1  ;;  %v235_v13 = vld [vmem:[%s740_s3] sm:$0x1]  ;;  %s558_s30 = scalar_lea.vmem %s737_s0, %s480_s25  ;;  %s597_s10 = scalar_lea.vmem %s742_s5, %s480_s25 }
   0xe   : > { %v232_v4 = vmul.f32 %v229_v2, %v229_v2  ;;  %v248_v17 = vld [vmem:[%s741_s4] sm:$0x1]  ;;  %v252_v19 = vld [vmem:[%s558_s30 + $0x8] sm:$0xff]  ;;  %v253_v20 = vld [vmem:[%s558_s30 + $0x10] sm:$0xff] }
   0xf   : > { %v251_v18 = vld [vmem:[%s558_s30] sm:$0xff]  ;;  %v254_v23 = vld [vmem:[%s558_s30 + $0x18] sm:$0xff]  ;;  %v256_v25 = vld [vmem:[%s558_s30 + $0x28] sm:$0xff] }
  0x10   : > { %v233_v5 = vsub.f32 %v231_v3, %v232_v4  ;;  %v255_v24 = vld [vmem:[%s558_s30 + $0x20] sm:$0xff]  ;;  %v257_v26 = vld [vmem:[%s558_s30 + $0x30] sm:$0xff]  ;;  %v258_v31 = vld [vmem:[%s558_s30 + $0x38] sm:$0xff] }
  0x11   : > { %v259_v32 = vld [vmem:[%s558_s30 + $0x40] sm:$0xff]  ;;  %v260_v38 = vld [vmem:[%s558_s30 + $0x48] sm:$0xff]  ;;  %v261_v39 = vld [vmem:[%s558_s30 + $0x50] sm:$0xff] }
  0x12   : > { %v234_v6 = vmax.f32 %v233_v5, 0.0  ;;  %v262_v46 = vld [vmem:[%s558_s30 + $0x58] sm:$0xff]  ;;  %v263_v51 = vld [vmem:[%s558_s30 + $0x60] sm:$0xff]  ;;  %v264_v56 = vld [vmem:[%s558_s30 + $0x68] sm:$0xff] }
  0x13   : > { %v265_v60 = vld [vmem:[%s558_s30 + $0x70] sm:$0xff]  ;;  %v266_v0 = vld [vmem:[%s558_s30 + $0x78] sm:$0xff]  ;;  %v267_v4 = vld [vmem:[%s558_s30 + $0x80] sm:$0xff] }
  0x14   : > { %v236_v7 = vadd.f32 1e-05, %v234_v6 }
  0x16   : > { %493 = vrsqrt.f32 %v236_v7  ;;  %vm243_vm0 = vweird.f32 %v236_v7 }
  0x1c   : > { %v494_v8 = vpop.eup %493 }
  0x1d   : > { %v238_v9 = vmul.f32 %v494_v8, %v236_v7  ;;  %vm244_vm1 = vweird.f32 %v494_v8 }
  0x1e   : > { %vm245_vm2 = vmor %vm243_vm0, %vm244_vm1 }
  0x1f   : > { %v239_v10 = vmul.f32 %v494_v8, %v238_v9 }
  0x21   : > { %v240_v11 = vmul.f32 0.5, %v239_v10 }
  0x23   : > { %v241_v12 = vsub.f32 1.5, %v240_v11 }
  0x25   : > { %v242_v14 = vmul.f32 %v494_v8, %v241_v12  ;;  %v269_v12 = vld [vmem:[%s558_s30 + $0x90] sm:$0xff] }
  0x27   : > { %v246_v15 = vsel %vm245_vm2, %v494_v8, %v242_v14  ;;  %v268_v8 = vld [vmem:[%s558_s30 + $0x88] sm:$0xff] }
  0x28   : > { %v247_v16 = vmul.f32 %v246_v15, %v235_v13 }
  0x2a   : > { %v249_v21 = vmul.f32 %v247_v16, %v229_v2  ;;  %v566_v22 = vperm.slane %v247_v16, 0  ;;  %v270_v16 = vld [vmem:[%s558_s30 + $0x98] sm:$0xff] }
  0x2c   : > { %v250_v27 = vsub.f32 %v248_v17, %v249_v21  ;;  %v286_v28 = vmul.f32 %v566_v22, %v251_v18  ;;  %v287_v29 = vmul.f32 %v566_v22, %v252_v19  ;;  %v288_v30 = vmul.f32 %v566_v22, %v253_v20  ;;  %v271_v20 = vld [vmem:[%s558_s30 + $0xa0] sm:$0xff] }
  0x2d   : > { %v289_v33 = vmul.f32 %v566_v22, %v254_v23  ;;  %v290_v34 = vmul.f32 %v566_v22, %v255_v24  ;;  %v291_v35 = vmul.f32 %v566_v22, %v256_v25  ;;  %v292_v37 = vmul.f32 %v566_v22, %v257_v26  ;;  %v272_v25 = vld [vmem:[%s558_s30 + $0xa8] sm:$0xff] }
  0x2e   : > { %v580_v36 = vperm.slane %v250_v27, 0  ;;  %v293_v40 = vmul.f32 %v566_v22, %v258_v31  ;;  %v294_v41 = vmul.f32 %v566_v22, %v259_v32  ;;  %v295_v49 = vmul.f32 %v566_v22, %v260_v38  ;;  %v275_v38 = vld [vmem:[%s558_s30 + $0xc0] sm:$0xff] }
  0x2f   : > { %v296_v50 = vmul.f32 %v566_v22, %v261_v39  ;;  %v297_v59 = vmul.f32 %v566_v22, %v262_v46  ;;  %v298_v63 = vmul.f32 %v566_v22, %v263_v51  ;;  %v299_v3 = vmul.f32 %v566_v22, %v264_v56  ;;  %v277_v46 = vld [vmem:[%s558_s30 + $0xd0] sm:$0xff] }
  0x30   : > { %v321_v42 = vadd.f32 %v580_v36, %v286_v28  ;;  %v322_v43 = vadd.f32 %v580_v36, %v287_v29  ;;  %v323_v44 = vadd.f32 %v580_v36, %v288_v30  ;;  %v324_v45 = vadd.f32 %v580_v36, %v289_v33  ;;  %v273_v29 = vld [vmem:[%s558_s30 + $0xb0] sm:$0xff]  ;;  %v274_v33 = vld [vmem:[%s558_s30 + $0xb8] sm:$0xff] }
  0x31   : > { %v325_v47 = vadd.f32 %v580_v36, %v290_v34  ;;  %v326_v48 = vadd.f32 %v580_v36, %v291_v35  ;;  %v327_v55 = vadd.f32 %v580_v36, %v292_v37  ;;  %v328_v58 = vadd.f32 %v580_v36, %v293_v40 }
  0x32   : > { %v353_v52 = vmax.f32 %v321_v42, 0.0  ;;  %v354_v53 = vmax.f32 %v322_v43, 0.0  ;;  %v355_v54 = vmax.f32 %v323_v44, 0.0  ;;  %v356_v57 = vmax.f32 %v324_v45, 0.0  ;;  %v276_v42 = vld [vmem:[%s558_s30 + $0xc8] sm:$0xff] }
  0x33   : > { %v357_v61 = vmax.f32 %v325_v47, 0.0  ;;  %v329_v62 = vadd.f32 %v580_v36, %v294_v41  ;;  %v358_v1 = vmax.f32 %v326_v48, 0.0  ;;  %v330_v2 = vadd.f32 %v580_v36, %v295_v49 }
  0x34   : > { %386 = vst.msk [vmem:[%s597_s10] sm:$0xff] %vm385_vm3, %v353_v52  ;;  %v359_v5 = vmax.f32 %v327_v55, 0.0  ;;  %v331_v6 = vadd.f32 %v580_v36, %v296_v50  ;;  %v300_v7 = vmul.f32 %v566_v22, %v265_v60  ;;  %v360_v9 = vmax.f32 %v328_v58, 0.0  ;;  %v278_v50 = vld [vmem:[%s558_s30 + $0xd8] sm:$0xff]  ;;  %v280_v58 = vld [vmem:[%s558_s30 + $0xe8] sm:$0xff] }
  0x35   : > { %387 = vst.msk [vmem:[%s597_s10 + $0x8] sm:$0xff] %vm385_vm3, %v354_v53  ;;  %v332_v10 = vadd.f32 %v580_v36, %v297_v59  ;;  %v301_v11 = vmul.f32 %v566_v22, %v266_v0  ;;  %v361_v13 = vmax.f32 %v329_v62, 0.0  ;;  %v333_v14 = vadd.f32 %v580_v36, %v298_v63  ;;  %v281_v62 = vld [vmem:[%s558_s30 + $0xf0] sm:$0xff] }
  0x36   : > { %388 = vst.msk [vmem:[%s597_s10 + $0x10] sm:$0xff] %vm385_vm3, %v355_v54  ;;  %v302_v15 = vmul.f32 %v566_v22, %v267_v4  ;;  %v362_v17 = vmax.f32 %v330_v2, 0.0  ;;  %v334_v18 = vadd.f32 %v580_v36, %v299_v3  ;;  %v303_v19 = vmul.f32 %v566_v22, %v268_v8  ;;  %v279_v54 = vld [vmem:[%s558_s30 + $0xe0] sm:$0xff]  ;;  %v282_v2 = vld [vmem:[%s558_s30 + $0xf8] sm:$0xff] }
  0x37   : > { %389 = vst.msk [vmem:[%s597_s10 + $0x18] sm:$0xff] %vm385_vm3, %v356_v57  ;;  %v363_v21 = vmax.f32 %v331_v6, 0.0  ;;  %v335_v23 = vadd.f32 %v580_v36, %v300_v7  ;;  %v304_v24 = vmul.f32 %v566_v22, %v269_v12  ;;  %v364_v26 = vmax.f32 %v332_v10, 0.0 }
  0x38   : > { %390 = vst.msk [vmem:[%s597_s10 + $0x20] sm:$0xff] %vm385_vm3, %v357_v61  ;;  %v336_v27 = vadd.f32 %v580_v36, %v301_v11  ;;  %v305_v28 = vmul.f32 %v566_v22, %v270_v16  ;;  %v365_v30 = vmax.f32 %v333_v14, 0.0  ;;  %v337_v31 = vadd.f32 %v580_v36, %v302_v15 }
  0x39   : > { %391 = vst.msk [vmem:[%s597_s10 + $0x28] sm:$0xff] %vm385_vm3, %v358_v1  ;;  %v306_v32 = vmul.f32 %v566_v22, %v271_v20  ;;  %v366_v34 = vmax.f32 %v334_v18, 0.0  ;;  %v338_v35 = vadd.f32 %v580_v36, %v303_v19  ;;  %v307_v37 = vmul.f32 %v566_v22, %v272_v25 }
  0x3a   : > { %392 = vst.msk [vmem:[%s597_s10 + $0x30] sm:$0xff] %vm385_vm3, %v359_v5  ;;  %v367_v39 = vmax.f32 %v335_v23, 0.0  ;;  %v339_v40 = vadd.f32 %v580_v36, %v304_v24  ;;  %v308_v41 = vmul.f32 %v566_v22, %v273_v29  ;;  %v368_v43 = vmax.f32 %v336_v27, 0.0 }
  0x3b   : > { %393 = vst.msk [vmem:[%s597_s10 + $0x38] sm:$0xff] %vm385_vm3, %v360_v9  ;;  %v340_v44 = vadd.f32 %v580_v36, %v305_v28  ;;  %v309_v45 = vmul.f32 %v566_v22, %v274_v33  ;;  %v369_v47 = vmax.f32 %v337_v31, 0.0  ;;  %v341_v48 = vadd.f32 %v580_v36, %v306_v32 }
  0x3c   : > { %394 = vst.msk [vmem:[%s597_s10 + $0x40] sm:$0xff] %vm385_vm3, %v361_v13  ;;  %v310_v49 = vmul.f32 %v566_v22, %v275_v38  ;;  %v370_v51 = vmax.f32 %v338_v35, 0.0  ;;  %v342_v52 = vadd.f32 %v580_v36, %v307_v37  ;;  %v311_v53 = vmul.f32 %v566_v22, %v276_v42 }
  0x3d   : > { %395 = vst.msk [vmem:[%s597_s10 + $0x48] sm:$0xff] %vm385_vm3, %v362_v17  ;;  %v371_v55 = vmax.f32 %v339_v40, 0.0  ;;  %v343_v56 = vadd.f32 %v580_v36, %v308_v41  ;;  %v312_v57 = vmul.f32 %v566_v22, %v277_v46  ;;  %v372_v59 = vmax.f32 %v340_v44, 0.0 }
  0x3e   : > { %396 = vst.msk [vmem:[%s597_s10 + $0x50] sm:$0xff] %vm385_vm3, %v363_v21  ;;  %v344_v60 = vadd.f32 %v580_v36, %v309_v45  ;;  %v313_v61 = vmul.f32 %v566_v22, %v278_v50  ;;  %v373_v63 = vmax.f32 %v341_v48, 0.0  ;;  %v345_v0 = vadd.f32 %v580_v36, %v310_v49 }
  0x3f   : > { %397 = vst.msk [vmem:[%s597_s10 + $0x58] sm:$0xff] %vm385_vm3, %v364_v26  ;;  %v314_v1 = vmul.f32 %v566_v22, %v279_v54  ;;  %v374_v3 = vmax.f32 %v342_v52, 0.0  ;;  %v346_v4 = vadd.f32 %v580_v36, %v311_v53  ;;  %v315_v5 = vmul.f32 %v566_v22, %v280_v58 }
  0x40   : > { %398 = vst.msk [vmem:[%s597_s10 + $0x60] sm:$0xff] %vm385_vm3, %v365_v30  ;;  %v375_v6 = vmax.f32 %v343_v56, 0.0  ;;  %v347_v7 = vadd.f32 %v580_v36, %v312_v57  ;;  %v316_v8 = vmul.f32 %v566_v22, %v281_v62  ;;  %v376_v9 = vmax.f32 %v344_v60, 0.0 }
  0x41   : > { %399 = vst.msk [vmem:[%s597_s10 + $0x68] sm:$0xff] %vm385_vm3, %v366_v34  ;;  %v348_v10 = vadd.f32 %v580_v36, %v313_v61  ;;  %v317_v11 = vmul.f32 %v566_v22, %v282_v2  ;;  %v377_v12 = vmax.f32 %v345_v0, 0.0  ;;  %v349_v13 = vadd.f32 %v580_v36, %v314_v1 }
  0x42   : > { %400 = vst.msk [vmem:[%s597_s10 + $0x70] sm:$0xff] %vm385_vm3, %v367_v39  ;;  %v378_v14 = vmax.f32 %v346_v4, 0.0  ;;  %v350_v15 = vadd.f32 %v580_v36, %v315_v5  ;;  %v379_v16 = vmax.f32 %v347_v7, 0.0  ;;  %v351_v22 = vadd.f32 %v580_v36, %v316_v8 }
  0x43   : > { %401 = vst.msk [vmem:[%s597_s10 + $0x78] sm:$0xff] %vm385_vm3, %v368_v43  ;;  %v380_v17 = vmax.f32 %v348_v10, 0.0  ;;  %v352_v18 = vadd.f32 %v580_v36, %v317_v11  ;;  %v381_v19 = vmax.f32 %v349_v13, 0.0 }
  0x44   : > { %402 = vst.msk [vmem:[%s597_s10 + $0x80] sm:$0xff] %vm385_vm3, %v369_v47  ;;  %v382_v20 = vmax.f32 %v350_v15, 0.0  ;;  %v383_v21 = vmax.f32 %v351_v22, 0.0 }
  0x45   : > { %403 = vst.msk [vmem:[%s597_s10 + $0x88] sm:$0xff] %vm385_vm3, %v370_v51  ;;  %v384_v23 = vmax.f32 %v352_v18, 0.0 }
  0x46   : > { %404 = vst.msk [vmem:[%s597_s10 + $0x90] sm:$0xff] %vm385_vm3, %v371_v55 }
  0x47   : > { %405 = vst.msk [vmem:[%s597_s10 + $0x98] sm:$0xff] %vm385_vm3, %v372_v59 }
  0x48   : > { %406 = vst.msk [vmem:[%s597_s10 + $0xa0] sm:$0xff] %vm385_vm3, %v373_v63 }
  0x49   : > { %407 = vst.msk [vmem:[%s597_s10 + $0xa8] sm:$0xff] %vm385_vm3, %v374_v3 }
  0x4a   : > { %408 = vst.msk [vmem:[%s597_s10 + $0xb0] sm:$0xff] %vm385_vm3, %v375_v6 }
  0x4b   : > { %409 = vst.msk [vmem:[%s597_s10 + $0xb8] sm:$0xff] %vm385_vm3, %v376_v9 }
  0x4c   : > { %410 = vst.msk [vmem:[%s597_s10 + $0xc0] sm:$0xff] %vm385_vm3, %v377_v12 }
  0x4d   : > { %411 = vst.msk [vmem:[%s597_s10 + $0xc8] sm:$0xff] %vm385_vm3, %v378_v14 }
  0x4e   : > { %412 = vst.msk [vmem:[%s597_s10 + $0xd0] sm:$0xff] %vm385_vm3, %v379_v16 }
  0x4f   : > { %413 = vst.msk [vmem:[%s597_s10 + $0xd8] sm:$0xff] %vm385_vm3, %v380_v17 }
  0x50   : > { %414 = vst.msk [vmem:[%s597_s10 + $0xe0] sm:$0xff] %vm385_vm3, %v381_v19 }
  0x51   : > { %415 = vst.msk [vmem:[%s597_s10 + $0xe8] sm:$0xff] %vm385_vm3, %v382_v20 }
  0x52   : > { %416 = vst.msk [vmem:[%s597_s10 + $0xf0] sm:$0xff] %vm385_vm3, %v383_v21 }
  0x53   : > { %417 = vst.msk [vmem:[%s597_s10 + $0xf8] sm:$0xff] %vm385_vm3, %v384_v23 }
  0x54 PF: > { %s15_s18 = sadd.s32 1, %s501_s18  }
  0x55   : > { %p12_p4 = scmp.ge.s32.totalorder %s15_s18, 4  }
  0x57   :  { %14 = sbr.rel (!%p12_p4) target bundleno = 1 (0x1), region = 70 }

// kernel: bottleneck_forward_pallas.27
= control target key start
LH: loop header
LB: loop body
LE: loop exit
PB: predicated region body
PF: predicated region fallthrough
CT: control target
= control target key end

     0   :  { %s533_s18 = smov 0   ;;  %s737_s0 = inlined_call_operand.vmem [shape: f32[512,26], index: 0, kind: input, shape index: {}]   ;;  %s738_s1 = inlined_call_operand.vmem [shape: f32[1,26], index: 1, kind: input, shape index: {}]   ;;  %s739_s2 = inlined_call_operand.vmem [shape: f32[1,26], index: 2, kind: input, shape index: {}]   ;;  %s740_s3 = inlined_call_operand.vmem [shape: f32[1,26], index: 3, kind: input, shape index: {}]   ;;  %s741_s4 = inlined_call_operand.vmem [shape: f32[1,26], index: 4, kind: input, shape index: {}]   ;;  %s742_s5 = inlined_call_operand.vmem [shape: f32[512,26], index: 5, kind: output, shape index: {}]  }
   0x1 LB: > { %s474_s19 = sadd.s32 4294967295, %s501_s18   ;;  %p478_p0 = scmp.ge.s32.totalorder %s501_s18, 1  ;;  %s501_s18 = sphi %s533_s18, %s15_s18  }
   0x2   : > { %p188_p1 = scmp.lt.s32.totalorder %s501_s18, 3 }
   0x4   : > { %p189_p2 = pnand %p478_p0, %p188_p1 }
   0x5   : > { %s479_s24 = sshll.u32 (!%p189_p2), %s474_s19, 5 }
   0x6   : > { %192 = sbr.rel (%p189_p2) target bundleno = 84 (0x54), region = 40  ;;  %p217_p3 = scmp.lt.s32.totalorder (!%p189_p2), %s479_s24, 63 }
   0xb   : > { %v228_v0 = vld [vmem:[%s738_s1] sm:$0x1]  ;;  %s744_s24 = smov (!%p217_p3, %s479_s24), 63  ;;  %vm385_vm3 = vcmask 211968  }
   0xc   : > { %v230_v1 = vld [vmem:[%s739_s2] sm:$0x1]  ;;  %v229_v2 = vmul.f32 0.001953125, %v228_v0  ;;  %s480_s25 = sshll.u32 %s744_s24, 3 }
   0xd   : > { %v231_v3 = vmul.f32 0.001953125, %v230_v1  ;;  %v235_v13 = vld [vmem:[%s740_s3] sm:$0x1]  ;;  %s558_s30 = scalar_lea.vmem %s737_s0, %s480_s25  ;;  %s597_s10 = scalar_lea.vmem %s742_s5, %s480_s25 }
   0xe   : > { %v232_v4 = vmul.f32 %v229_v2, %v229_v2  ;;  %v248_v17 = vld [vmem:[%s741_s4] sm:$0x1]  ;;  %v252_v19 = vld [vmem:[%s558_s30 + $0x8] sm:$0xff]  ;;  %v253_v20 = vld [vmem:[%s558_s30 + $0x10] sm:$0xff] }
   0xf   : > { %v251_v18 = vld [vmem:[%s558_s30] sm:$0xff]  ;;  %v254_v23 = vld [vmem:[%s558_s30 + $0x18] sm:$0xff]  ;;  %v256_v25 = vld [vmem:[%s558_s30 + $0x28] sm:$0xff] }
  0x10   : > { %v233_v5 = vsub.f32 %v231_v3, %v232_v4  ;;  %v255_v24 = vld [vmem:[%s558_s30 + $0x20] sm:$0xff]  ;;  %v257_v26 = vld [vmem:[%s558_s30 + $0x30] sm:$0xff]  ;;  %v258_v31 = vld [vmem:[%s558_s30 + $0x38] sm:$0xff] }
  0x11   : > { %v259_v32 = vld [vmem:[%s558_s30 + $0x40] sm:$0xff]  ;;  %v260_v38 = vld [vmem:[%s558_s30 + $0x48] sm:$0xff]  ;;  %v261_v39 = vld [vmem:[%s558_s30 + $0x50] sm:$0xff] }
  0x12   : > { %v234_v6 = vmax.f32 %v233_v5, 0.0  ;;  %v262_v46 = vld [vmem:[%s558_s30 + $0x58] sm:$0xff]  ;;  %v263_v51 = vld [vmem:[%s558_s30 + $0x60] sm:$0xff]  ;;  %v264_v56 = vld [vmem:[%s558_s30 + $0x68] sm:$0xff] }
  0x13   : > { %v265_v60 = vld [vmem:[%s558_s30 + $0x70] sm:$0xff]  ;;  %v266_v0 = vld [vmem:[%s558_s30 + $0x78] sm:$0xff]  ;;  %v267_v4 = vld [vmem:[%s558_s30 + $0x80] sm:$0xff] }
  0x14   : > { %v236_v7 = vadd.f32 1e-05, %v234_v6 }
  0x16   : > { %493 = vrsqrt.f32 %v236_v7  ;;  %vm243_vm0 = vweird.f32 %v236_v7 }
  0x1c   : > { %v494_v8 = vpop.eup %493 }
  0x1d   : > { %v238_v9 = vmul.f32 %v494_v8, %v236_v7  ;;  %vm244_vm1 = vweird.f32 %v494_v8 }
  0x1e   : > { %vm245_vm2 = vmor %vm243_vm0, %vm244_vm1 }
  0x1f   : > { %v239_v10 = vmul.f32 %v494_v8, %v238_v9 }
  0x21   : > { %v240_v11 = vmul.f32 0.5, %v239_v10 }
  0x23   : > { %v241_v12 = vsub.f32 1.5, %v240_v11 }
  0x25   : > { %v242_v14 = vmul.f32 %v494_v8, %v241_v12  ;;  %v269_v12 = vld [vmem:[%s558_s30 + $0x90] sm:$0xff] }
  0x27   : > { %v246_v15 = vsel %vm245_vm2, %v494_v8, %v242_v14  ;;  %v268_v8 = vld [vmem:[%s558_s30 + $0x88] sm:$0xff] }
  0x28   : > { %v247_v16 = vmul.f32 %v246_v15, %v235_v13 }
  0x2a   : > { %v249_v21 = vmul.f32 %v247_v16, %v229_v2  ;;  %v566_v22 = vperm.slane %v247_v16, 0  ;;  %v270_v16 = vld [vmem:[%s558_s30 + $0x98] sm:$0xff] }
  0x2c   : > { %v250_v27 = vsub.f32 %v248_v17, %v249_v21  ;;  %v286_v28 = vmul.f32 %v566_v22, %v251_v18  ;;  %v287_v29 = vmul.f32 %v566_v22, %v252_v19  ;;  %v288_v30 = vmul.f32 %v566_v22, %v253_v20  ;;  %v271_v20 = vld [vmem:[%s558_s30 + $0xa0] sm:$0xff] }
  0x2d   : > { %v289_v33 = vmul.f32 %v566_v22, %v254_v23  ;;  %v290_v34 = vmul.f32 %v566_v22, %v255_v24  ;;  %v291_v35 = vmul.f32 %v566_v22, %v256_v25  ;;  %v292_v37 = vmul.f32 %v566_v22, %v257_v26  ;;  %v272_v25 = vld [vmem:[%s558_s30 + $0xa8] sm:$0xff] }
  0x2e   : > { %v580_v36 = vperm.slane %v250_v27, 0  ;;  %v293_v40 = vmul.f32 %v566_v22, %v258_v31  ;;  %v294_v41 = vmul.f32 %v566_v22, %v259_v32  ;;  %v295_v49 = vmul.f32 %v566_v22, %v260_v38  ;;  %v275_v38 = vld [vmem:[%s558_s30 + $0xc0] sm:$0xff] }
  0x2f   : > { %v296_v50 = vmul.f32 %v566_v22, %v261_v39  ;;  %v297_v59 = vmul.f32 %v566_v22, %v262_v46  ;;  %v298_v63 = vmul.f32 %v566_v22, %v263_v51  ;;  %v299_v3 = vmul.f32 %v566_v22, %v264_v56  ;;  %v277_v46 = vld [vmem:[%s558_s30 + $0xd0] sm:$0xff] }
  0x30   : > { %v321_v42 = vadd.f32 %v580_v36, %v286_v28  ;;  %v322_v43 = vadd.f32 %v580_v36, %v287_v29  ;;  %v323_v44 = vadd.f32 %v580_v36, %v288_v30  ;;  %v324_v45 = vadd.f32 %v580_v36, %v289_v33  ;;  %v273_v29 = vld [vmem:[%s558_s30 + $0xb0] sm:$0xff]  ;;  %v274_v33 = vld [vmem:[%s558_s30 + $0xb8] sm:$0xff] }
  0x31   : > { %v325_v47 = vadd.f32 %v580_v36, %v290_v34  ;;  %v326_v48 = vadd.f32 %v580_v36, %v291_v35  ;;  %v327_v55 = vadd.f32 %v580_v36, %v292_v37  ;;  %v328_v58 = vadd.f32 %v580_v36, %v293_v40 }
  0x32   : > { %v353_v52 = vmax.f32 %v321_v42, 0.0  ;;  %v354_v53 = vmax.f32 %v322_v43, 0.0  ;;  %v355_v54 = vmax.f32 %v323_v44, 0.0  ;;  %v356_v57 = vmax.f32 %v324_v45, 0.0  ;;  %v276_v42 = vld [vmem:[%s558_s30 + $0xc8] sm:$0xff] }
  0x33   : > { %v357_v61 = vmax.f32 %v325_v47, 0.0  ;;  %v329_v62 = vadd.f32 %v580_v36, %v294_v41  ;;  %v358_v1 = vmax.f32 %v326_v48, 0.0  ;;  %v330_v2 = vadd.f32 %v580_v36, %v295_v49 }
  0x34   : > { %386 = vst.msk [vmem:[%s597_s10] sm:$0xff] %vm385_vm3, %v353_v52  ;;  %v359_v5 = vmax.f32 %v327_v55, 0.0  ;;  %v331_v6 = vadd.f32 %v580_v36, %v296_v50  ;;  %v300_v7 = vmul.f32 %v566_v22, %v265_v60  ;;  %v360_v9 = vmax.f32 %v328_v58, 0.0  ;;  %v278_v50 = vld [vmem:[%s558_s30 + $0xd8] sm:$0xff]  ;;  %v280_v58 = vld [vmem:[%s558_s30 + $0xe8] sm:$0xff] }
  0x35   : > { %387 = vst.msk [vmem:[%s597_s10 + $0x8] sm:$0xff] %vm385_vm3, %v354_v53  ;;  %v332_v10 = vadd.f32 %v580_v36, %v297_v59  ;;  %v301_v11 = vmul.f32 %v566_v22, %v266_v0  ;;  %v361_v13 = vmax.f32 %v329_v62, 0.0  ;;  %v333_v14 = vadd.f32 %v580_v36, %v298_v63  ;;  %v281_v62 = vld [vmem:[%s558_s30 + $0xf0] sm:$0xff] }
  0x36   : > { %388 = vst.msk [vmem:[%s597_s10 + $0x10] sm:$0xff] %vm385_vm3, %v355_v54  ;;  %v302_v15 = vmul.f32 %v566_v22, %v267_v4  ;;  %v362_v17 = vmax.f32 %v330_v2, 0.0  ;;  %v334_v18 = vadd.f32 %v580_v36, %v299_v3  ;;  %v303_v19 = vmul.f32 %v566_v22, %v268_v8  ;;  %v279_v54 = vld [vmem:[%s558_s30 + $0xe0] sm:$0xff]  ;;  %v282_v2 = vld [vmem:[%s558_s30 + $0xf8] sm:$0xff] }
  0x37   : > { %389 = vst.msk [vmem:[%s597_s10 + $0x18] sm:$0xff] %vm385_vm3, %v356_v57  ;;  %v363_v21 = vmax.f32 %v331_v6, 0.0  ;;  %v335_v23 = vadd.f32 %v580_v36, %v300_v7  ;;  %v304_v24 = vmul.f32 %v566_v22, %v269_v12  ;;  %v364_v26 = vmax.f32 %v332_v10, 0.0 }
  0x38   : > { %390 = vst.msk [vmem:[%s597_s10 + $0x20] sm:$0xff] %vm385_vm3, %v357_v61  ;;  %v336_v27 = vadd.f32 %v580_v36, %v301_v11  ;;  %v305_v28 = vmul.f32 %v566_v22, %v270_v16  ;;  %v365_v30 = vmax.f32 %v333_v14, 0.0  ;;  %v337_v31 = vadd.f32 %v580_v36, %v302_v15 }
  0x39   : > { %391 = vst.msk [vmem:[%s597_s10 + $0x28] sm:$0xff] %vm385_vm3, %v358_v1  ;;  %v306_v32 = vmul.f32 %v566_v22, %v271_v20  ;;  %v366_v34 = vmax.f32 %v334_v18, 0.0  ;;  %v338_v35 = vadd.f32 %v580_v36, %v303_v19  ;;  %v307_v37 = vmul.f32 %v566_v22, %v272_v25 }
  0x3a   : > { %392 = vst.msk [vmem:[%s597_s10 + $0x30] sm:$0xff] %vm385_vm3, %v359_v5  ;;  %v367_v39 = vmax.f32 %v335_v23, 0.0  ;;  %v339_v40 = vadd.f32 %v580_v36, %v304_v24  ;;  %v308_v41 = vmul.f32 %v566_v22, %v273_v29  ;;  %v368_v43 = vmax.f32 %v336_v27, 0.0 }
  0x3b   : > { %393 = vst.msk [vmem:[%s597_s10 + $0x38] sm:$0xff] %vm385_vm3, %v360_v9  ;;  %v340_v44 = vadd.f32 %v580_v36, %v305_v28  ;;  %v309_v45 = vmul.f32 %v566_v22, %v274_v33  ;;  %v369_v47 = vmax.f32 %v337_v31, 0.0  ;;  %v341_v48 = vadd.f32 %v580_v36, %v306_v32 }
  0x3c   : > { %394 = vst.msk [vmem:[%s597_s10 + $0x40] sm:$0xff] %vm385_vm3, %v361_v13  ;;  %v310_v49 = vmul.f32 %v566_v22, %v275_v38  ;;  %v370_v51 = vmax.f32 %v338_v35, 0.0  ;;  %v342_v52 = vadd.f32 %v580_v36, %v307_v37  ;;  %v311_v53 = vmul.f32 %v566_v22, %v276_v42 }
  0x3d   : > { %395 = vst.msk [vmem:[%s597_s10 + $0x48] sm:$0xff] %vm385_vm3, %v362_v17  ;;  %v371_v55 = vmax.f32 %v339_v40, 0.0  ;;  %v343_v56 = vadd.f32 %v580_v36, %v308_v41  ;;  %v312_v57 = vmul.f32 %v566_v22, %v277_v46  ;;  %v372_v59 = vmax.f32 %v340_v44, 0.0 }
  0x3e   : > { %396 = vst.msk [vmem:[%s597_s10 + $0x50] sm:$0xff] %vm385_vm3, %v363_v21  ;;  %v344_v60 = vadd.f32 %v580_v36, %v309_v45  ;;  %v313_v61 = vmul.f32 %v566_v22, %v278_v50  ;;  %v373_v63 = vmax.f32 %v341_v48, 0.0  ;;  %v345_v0 = vadd.f32 %v580_v36, %v310_v49 }
  0x3f   : > { %397 = vst.msk [vmem:[%s597_s10 + $0x58] sm:$0xff] %vm385_vm3, %v364_v26  ;;  %v314_v1 = vmul.f32 %v566_v22, %v279_v54  ;;  %v374_v3 = vmax.f32 %v342_v52, 0.0  ;;  %v346_v4 = vadd.f32 %v580_v36, %v311_v53  ;;  %v315_v5 = vmul.f32 %v566_v22, %v280_v58 }
  0x40   : > { %398 = vst.msk [vmem:[%s597_s10 + $0x60] sm:$0xff] %vm385_vm3, %v365_v30  ;;  %v375_v6 = vmax.f32 %v343_v56, 0.0  ;;  %v347_v7 = vadd.f32 %v580_v36, %v312_v57  ;;  %v316_v8 = vmul.f32 %v566_v22, %v281_v62  ;;  %v376_v9 = vmax.f32 %v344_v60, 0.0 }
  0x41   : > { %399 = vst.msk [vmem:[%s597_s10 + $0x68] sm:$0xff] %vm385_vm3, %v366_v34  ;;  %v348_v10 = vadd.f32 %v580_v36, %v313_v61  ;;  %v317_v11 = vmul.f32 %v566_v22, %v282_v2  ;;  %v377_v12 = vmax.f32 %v345_v0, 0.0  ;;  %v349_v13 = vadd.f32 %v580_v36, %v314_v1 }
  0x42   : > { %400 = vst.msk [vmem:[%s597_s10 + $0x70] sm:$0xff] %vm385_vm3, %v367_v39  ;;  %v378_v14 = vmax.f32 %v346_v4, 0.0  ;;  %v350_v15 = vadd.f32 %v580_v36, %v315_v5  ;;  %v379_v16 = vmax.f32 %v347_v7, 0.0  ;;  %v351_v22 = vadd.f32 %v580_v36, %v316_v8 }
  0x43   : > { %401 = vst.msk [vmem:[%s597_s10 + $0x78] sm:$0xff] %vm385_vm3, %v368_v43  ;;  %v380_v17 = vmax.f32 %v348_v10, 0.0  ;;  %v352_v18 = vadd.f32 %v580_v36, %v317_v11  ;;  %v381_v19 = vmax.f32 %v349_v13, 0.0 }
  0x44   : > { %402 = vst.msk [vmem:[%s597_s10 + $0x80] sm:$0xff] %vm385_vm3, %v369_v47  ;;  %v382_v20 = vmax.f32 %v350_v15, 0.0  ;;  %v383_v21 = vmax.f32 %v351_v22, 0.0 }
  0x45   : > { %403 = vst.msk [vmem:[%s597_s10 + $0x88] sm:$0xff] %vm385_vm3, %v370_v51  ;;  %v384_v23 = vmax.f32 %v352_v18, 0.0 }
  0x46   : > { %404 = vst.msk [vmem:[%s597_s10 + $0x90] sm:$0xff] %vm385_vm3, %v371_v55 }
  0x47   : > { %405 = vst.msk [vmem:[%s597_s10 + $0x98] sm:$0xff] %vm385_vm3, %v372_v59 }
  0x48   : > { %406 = vst.msk [vmem:[%s597_s10 + $0xa0] sm:$0xff] %vm385_vm3, %v373_v63 }
  0x49   : > { %407 = vst.msk [vmem:[%s597_s10 + $0xa8] sm:$0xff] %vm385_vm3, %v374_v3 }
  0x4a   : > { %408 = vst.msk [vmem:[%s597_s10 + $0xb0] sm:$0xff] %vm385_vm3, %v375_v6 }
  0x4b   : > { %409 = vst.msk [vmem:[%s597_s10 + $0xb8] sm:$0xff] %vm385_vm3, %v376_v9 }
  0x4c   : > { %410 = vst.msk [vmem:[%s597_s10 + $0xc0] sm:$0xff] %vm385_vm3, %v377_v12 }
  0x4d   : > { %411 = vst.msk [vmem:[%s597_s10 + $0xc8] sm:$0xff] %vm385_vm3, %v378_v14 }
  0x4e   : > { %412 = vst.msk [vmem:[%s597_s10 + $0xd0] sm:$0xff] %vm385_vm3, %v379_v16 }
  0x4f   : > { %413 = vst.msk [vmem:[%s597_s10 + $0xd8] sm:$0xff] %vm385_vm3, %v380_v17 }
  0x50   : > { %414 = vst.msk [vmem:[%s597_s10 + $0xe0] sm:$0xff] %vm385_vm3, %v381_v19 }
  0x51   : > { %415 = vst.msk [vmem:[%s597_s10 + $0xe8] sm:$0xff] %vm385_vm3, %v382_v20 }
  0x52   : > { %416 = vst.msk [vmem:[%s597_s10 + $0xf0] sm:$0xff] %vm385_vm3, %v383_v21 }
  0x53   : > { %417 = vst.msk [vmem:[%s597_s10 + $0xf8] sm:$0xff] %vm385_vm3, %v384_v23 }
  0x54 PF: > { %s15_s18 = sadd.s32 1, %s501_s18  }
  0x55   : > { %p12_p4 = scmp.ge.s32.totalorder %s15_s18, 4  }
  0x57   :  { %14 = sbr.rel (!%p12_p4) target bundleno = 1 (0x1), region = 70 }

// kernel: bottleneck_forward_pallas.26
= control target key start
LH: loop header
LB: loop body
LE: loop exit
PB: predicated region body
PF: predicated region fallthrough
CT: control target
= control target key end

     0   :  { %s1334_s15 = smov 0   ;;  %s1838_s0 = inlined_call_operand.vmem [shape: bf16[512,234], index: 0, kind: input, shape index: {}]   ;;  %s1839_s1 = inlined_call_operand.vmem [shape: bf16[234,26], index: 1, kind: input, shape index: {}]   ;;  %s1840_s2 = inlined_call_operand.vmem [shape: f32[512,26], index: 2, kind: output, shape index: {0}]   ;;  %s1841_s3 = inlined_call_operand.vmem [shape: f32[1,26], index: 3, kind: output, shape index: {1}]   ;;  %s1842_s4 = inlined_call_operand.vmem [shape: f32[1,26], index: 4, kind: output, shape index: {2}]  }
   0x1 LB: > { %s1011_s16 = sadd.s32 4294967295, %s1306_s15   ;;  %p1015_p0 = scmp.ge.s32.totalorder %s1306_s15, 1  ;;  %s1306_s15 = sphi %s1334_s15, %s15_s15  }
   0x2   : > { %p159_p1 = scmp.lt.s32.totalorder %s1306_s15, 3 }
   0x4   : > { %p160_p2 = pnand %p1015_p0, %p159_p1 }
   0x5   : > { %s1016_s29 = sshll.u32 (!%p160_p2), %s1011_s16, 5  ;;  %p1225_p4 = scmp.ne.s32.totalorder (!%p160_p2), %s1011_s16, 0 }
   0x6   : > { %163 = sbr.rel (%p160_p2) target bundleno = 392 (0x188), region = 28  ;;  %p187_p3 = scmp.lt.s32.totalorder (!%p160_p2), %s1016_s29, 63 }
   0xb   : > { %v1268_v0 = vld [vmem:[%s1839_s1 + $0x38] sm:$0xff]  ;;  %v1207_v1 = vld [vmem:[%s1839_s1 + $0x70] sm:$0xf]  ;;  %v1275_v2 = vld [vmem:[%s1839_s1 + $0x70] sm:$0x10]  ;;  %vm544_vm0 = vcmask 1044480  }
   0xc   : > { %v1208_v3 = vor.u32 %v1275_v2, %v1207_v1  ;;  %548 = vmatpush.bf16.msra.mxu0 %v1268_v0  ;;  %1276 = vmatpush.bf16.msra.mxu2 %v1268_v0  ;;  %v1267_v4 = vld [vmem:[%s1839_s1 + $0x30] sm:$0xff]  ;;  %v1274_v6 = vld [vmem:[%s1839_s1 + $0x68] sm:$0xff]  ;;  %v1273_v8 = vld [vmem:[%s1839_s1 + $0x60] sm:$0xff]  ;;  %s1844_s29 = smov (!%p187_p3, %s1016_s29), 63  ;;  %vm495_vm1 = vcmask 867328   ;;  %vm726_vm2 = vcmask 211968  }
   0xd   : > { %v1266_v7 = vld [vmem:[%s1839_s1 + $0x28] sm:$0xff]  ;;  %v1265_v9 = vld [vmem:[%s1839_s1 + $0x20] sm:$0xff]  ;;  %v1272_v10 = vld [vmem:[%s1839_s1 + $0x58] sm:$0xff]  ;;  %s1228_s14 = sshll.u32 %s1844_s29, 3 }
   0xe   : > { %v546_v5 = vsel %vm544_vm0, %v1208_v3, 0  ;;  %v1264_v11 = vld [vmem:[%s1839_s1 + $0x18] sm:$0xff]  ;;  %v1271_v12 = vld [vmem:[%s1839_s1 + $0x50] sm:$0xff]  ;;  %v1270_v14 = vld [vmem:[%s1839_s1 + $0x48] sm:$0xff]  ;;  %s1391_s23 = scalar_lea.vmem %s1838_s0, %s1228_s14  ;;  %s1486_s7 = scalar_lea.vmem %s1840_s2, %s1228_s14 }
   0xf   : > { %638 = vmatpush.bf16.msra.mxu1 %v546_v5  ;;  %1284 = vmatpush.bf16.msra.mxu3 %v546_v5  ;;  %v1263_v13 = vld [vmem:[%s1839_s1 + $0x10] sm:$0xff]  ;;  %v1262_v15 = vld [vmem:[%s1839_s1 + $0x8] sm:$0xff]  ;;  %v1269_v16 = vld [vmem:[%s1839_s1 + $0x40] sm:$0xff] }
  0x10   : > { %549 = vmatpush.bf16.msra.mxu0 %v1267_v4  ;;  %1277 = vmatpush.bf16.msra.mxu2 %v1267_v4  ;;  %v1229_v17 = vld [vmem:[%s1391_s23 + $0x4] sm:$0xf]  ;;  %v1025_v18 = vld [vmem:[%s1391_s23 + $0x8] sm:$0xf0]  ;;  %v1247_v19 = vld [vmem:[%s1391_s23 + $0x94] sm:$0xf] }
  0x11   : > { %v1097_v20 = vld [vmem:[%s1391_s23 + $0x98] sm:$0xf0]  ;;  %v1261_v21 = vld [vmem:[%s1839_s1] sm:$0xff]  ;;  %v1230_v23 = vld [vmem:[%s1391_s23 + $0x4] sm:$0xf0]  ;;  %v1028_v26 = vor.u32 %v1229_v17, %v1025_v18 }
  0x12   : > { %v1023_v22 = vld [vmem:[%s1391_s23] sm:$0xf]  ;;  %v1246_v25 = vld [vmem:[%s1391_s23 + $0x84] sm:$0xf0]  ;;  %v1100_v27 = vor.u32 %v1247_v19, %v1097_v20  ;;  %v1231_v30 = vld [vmem:[%s1391_s23 + $0x14] sm:$0xf] }
  0x13   : > { %639 = vmatpush.bf16.msra.mxu1 %v1274_v6  ;;  %1285 = vmatpush.bf16.msra.mxu3 %v1274_v6  ;;  %v1087_v24 = vld [vmem:[%s1391_s23 + $0x80] sm:$0xf]  ;;  %v1024_v28 = vor.u32 %v1230_v23, %v1023_v22  ;;  %v1033_v31 = vld [vmem:[%s1391_s23 + $0x18] sm:$0xf0]  ;;  %v1249_v32 = vld [vmem:[%s1391_s23 + $0xa4] sm:$0xf] }
  0x14   : > { %550 = vmatpush.bf16.msra.mxu0 %v1266_v7  ;;  %1278 = vmatpush.bf16.msra.mxu2 %v1266_v7  ;;  %v1088_v29 = vor.u32 %v1246_v25, %v1087_v24  ;;  %v1105_v33 = vld [vmem:[%s1391_s23 + $0xa8] sm:$0xf0]  ;;  %v1031_v34 = vld [vmem:[%s1391_s23 + $0x10] sm:$0xf]  ;;  %v1232_v35 = vld [vmem:[%s1391_s23 + $0x14] sm:$0xf0]  ;;  %v1036_v38 = vor.u32 %v1231_v30, %v1033_v31 }
  0x15   : > { %v1095_v36 = vld [vmem:[%s1391_s23 + $0x90] sm:$0xf]  ;;  %v1248_v37 = vld [vmem:[%s1391_s23 + $0x94] sm:$0xf0]  ;;  %v1108_v39 = vor.u32 %v1249_v32, %v1105_v33  ;;  %v1032_v40 = vor.u32 %v1232_v35, %v1031_v34  ;;  %v1233_v42 = vld [vmem:[%s1391_s23 + $0x24] sm:$0xf] }
  0x16   : > { %v1096_v41 = vor.u32 %v1248_v37, %v1095_v36  ;;  %v1041_v43 = vld [vmem:[%s1391_s23 + $0x28] sm:$0xf0]  ;;  %v1251_v44 = vld [vmem:[%s1391_s23 + $0xb4] sm:$0xf]  ;;  %v1113_v45 = vld [vmem:[%s1391_s23 + $0xb8] sm:$0xf0] }
  0x17   : > { %640 = vmatpush.bf16.msra.mxu1 %v1273_v8  ;;  %1286 = vmatpush.bf16.msra.mxu3 %v1273_v8  ;;  %v1039_v46 = vld [vmem:[%s1391_s23 + $0x20] sm:$0xf]  ;;  %v1234_v47 = vld [vmem:[%s1391_s23 + $0x24] sm:$0xf0]  ;;  %v1044_v50 = vor.u32 %v1233_v42, %v1041_v43  ;;  %v1116_v51 = vor.u32 %v1251_v44, %v1113_v45  ;;  %v1235_v54 = vld [vmem:[%s1391_s23 + $0x34] sm:$0xf] }
  0x18   : > { %551 = vmatpush.bf16.msra.mxu0 %v1265_v9  ;;  %1279 = vmatpush.bf16.msra.mxu2 %v1265_v9  ;;  %v1103_v48 = vld [vmem:[%s1391_s23 + $0xa0] sm:$0xf]  ;;  %v1250_v49 = vld [vmem:[%s1391_s23 + $0xa4] sm:$0xf0]  ;;  %v1040_v52 = vor.u32 %v1234_v47, %v1039_v46  ;;  %v1049_v55 = vld [vmem:[%s1391_s23 + $0x38] sm:$0xf0] }
  0x19   : > { %v1104_v53 = vor.u32 %v1250_v49, %v1103_v48  ;;  %v1253_v56 = vld [vmem:[%s1391_s23 + $0xc4] sm:$0xf]  ;;  %v1121_v57 = vld [vmem:[%s1391_s23 + $0xc8] sm:$0xf0]  ;;  %v1047_v58 = vld [vmem:[%s1391_s23 + $0x30] sm:$0xf]  ;;  %v1052_v62 = vor.u32 %v1235_v54, %v1049_v55 }
  0x1a   : > { %v1236_v59 = vld [vmem:[%s1391_s23 + $0x34] sm:$0xf0]  ;;  %v1111_v60 = vld [vmem:[%s1391_s23 + $0xb0] sm:$0xf]  ;;  %v1124_v63 = vor.u32 %v1253_v56, %v1121_v57  ;;  %v1237_v2 = vld [vmem:[%s1391_s23 + $0x44] sm:$0xf] }
  0x1b   : > { %641 = vmatpush.bf16.msra.mxu1 %v1272_v10  ;;  %1287 = vmatpush.bf16.msra.mxu3 %v1272_v10  ;;  %v1252_v61 = vld [vmem:[%s1391_s23 + $0xb4] sm:$0xf0]  ;;  %v1048_v0 = vor.u32 %v1236_v59, %v1047_v58  ;;  %v1057_v3 = vld [vmem:[%s1391_s23 + $0x48] sm:$0xf0]  ;;  %v1255_v4 = vld [vmem:[%s1391_s23 + $0xd4] sm:$0xf] }
  0x1c   : > { %552 = vmatpush.bf16.msra.mxu0 %v1264_v11  ;;  %1280 = vmatpush.bf16.msra.mxu2 %v1264_v11  ;;  %v1112_v1 = vor.u32 %v1252_v61, %v1111_v60  ;;  %v1129_v5 = vld [vmem:[%s1391_s23 + $0xd8] sm:$0xf0]  ;;  %v1055_v6 = vld [vmem:[%s1391_s23 + $0x40] sm:$0xf]  ;;  %v1238_v7 = vld [vmem:[%s1391_s23 + $0x44] sm:$0xf0]  ;;  %v1060_v10 = vor.u32 %v1237_v2, %v1057_v3 }
  0x1d   : > { %v1119_v8 = vld [vmem:[%s1391_s23 + $0xc0] sm:$0xf]  ;;  %v1254_v9 = vld [vmem:[%s1391_s23 + $0xc4] sm:$0xf0]  ;;  %v1132_v11 = vor.u32 %v1255_v4, %v1129_v5  ;;  %v1137_v17 = vld [vmem:[%s1391_s23 + $0xe8] sm:$0xf0] }
  0x1e   : > { %v1063_v18 = vld [vmem:[%s1391_s23 + $0x50] sm:$0xf]  ;;  %v1240_v19 = vld [vmem:[%s1391_s23 + $0x54] sm:$0xf0]  ;;  %v1071_v30 = vld [vmem:[%s1391_s23 + $0x60] sm:$0xf] }
  0x1f   : > { %642 = vmatpush.bf16.msra.mxu1 %v1271_v12  ;;  %1288 = vmatpush.bf16.msra.mxu3 %v1271_v12  ;;  %v1056_v12 = vor.u32 %v1238_v7, %v1055_v6  ;;  %v1127_v20 = vld [vmem:[%s1391_s23 + $0xd0] sm:$0xf]  ;;  %v1064_v24 = vor.u32 %v1240_v19, %v1063_v18  ;;  %v1242_v31 = vld [vmem:[%s1391_s23 + $0x64] sm:$0xf0]  ;;  %v1135_v32 = vld [vmem:[%s1391_s23 + $0xe0] sm:$0xf] }
  0x20   : > { %553 = vmatpush.bf16.msra.mxu0 %v1263_v13  ;;  %1281 = vmatpush.bf16.msra.mxu2 %v1263_v13  ;;  %v1120_v13 = vor.u32 %v1254_v9, %v1119_v8  ;;  %v1258_v33 = vld [vmem:[%s1391_s23 + $0xe4] sm:$0xf0]  ;;  %v1072_v36 = vor.u32 %v1242_v31, %v1071_v30  ;;  %v1143_v42 = vld [vmem:[%s1391_s23 + $0xf0] sm:$0xf]  ;;  %v1260_v43 = vld [vmem:[%s1391_s23 + $0xf4] sm:$0xf0] }
  0x21   : > { %v1136_v37 = vor.u32 %v1258_v33, %v1135_v32  ;;  %v1144_v46 = vor.u32 %v1260_v43, %v1143_v42  ;;  %v1245_v47 = vld [vmem:[%s1391_s23 + $0x84] sm:$0xf]  ;;  %v1089_v48 = vld [vmem:[%s1391_s23 + $0x88] sm:$0xf0] }
  0x22   : > { %v1092_v49 = vor.u32 %v1245_v47, %v1089_v48 }
  0x23   : > { %643 = vmatpush.bf16.msra.mxu1 %v1270_v14  ;;  %1289 = vmatpush.bf16.msra.mxu3 %v1270_v14  ;;  %v1239_v14 = vld [vmem:[%s1391_s23 + $0x54] sm:$0xf] }
  0x24   : > { %554 = vmatpush.bf16.msra.mxu0 %v1262_v15  ;;  %1282 = vmatpush.bf16.msra.mxu2 %v1262_v15  ;;  %v1065_v15 = vld [vmem:[%s1391_s23 + $0x58] sm:$0xf0] }
  0x25   : > { %v1068_v22 = vor.u32 %v1239_v14, %v1065_v15 }
  0x27   : > { %644 = vmatpush.bf16.msra.mxu1 %v1269_v16  ;;  %1290 = vmatpush.bf16.msra.mxu3 %v1269_v16  ;;  %v1257_v16 = vld [vmem:[%s1391_s23 + $0xe4] sm:$0xf] }
  0x28   : > { %555 = vmatpush.bf16.msra.mxu0 %v1261_v21  ;;  %1283 = vmatpush.bf16.msra.mxu2 %v1261_v21  ;;  %v1256_v21 = vld [vmem:[%s1391_s23 + $0xd4] sm:$0xf0]  ;;  %v1140_v23 = vor.u32 %v1257_v16, %v1137_v17 }
  0x29   : > { %v1128_v25 = vor.u32 %v1256_v21, %v1127_v20 }
  0x2a   : > { %1209 = vmatmul.msk.bf16.vlgmr.msra.gmra.mxu1 %vm495_vm1, %v1028_v26  ;;  %1218 = vmatmul.msk.bf16.vlgmr.msra.gmra.mxu3 %vm495_vm1, %v1100_v27  ;;  %v1241_v26 = vld [vmem:[%s1391_s23 + $0x64] sm:$0xf]  ;;  %v1073_v27 = vld [vmem:[%s1391_s23 + $0x68] sm:$0xf0] }
  0x2b   : > { %556 = vmatmul.bf16.vlgmr.msra.gmra.mxu0 %v1024_v28  ;;  %596 = vmatmul.bf16.vlgmr.msra.gmra.mxu2 %v1088_v29  ;;  %v1259_v28 = vld [vmem:[%s1391_s23 + $0xf4] sm:$0xf]  ;;  %v1145_v29 = vld [vmem:[%s1391_s23 + $0xf8] sm:$0xf0]  ;;  %v1076_v34 = vor.u32 %v1241_v26, %v1073_v27 }
  0x2c   : > { %v1148_v35 = vor.u32 %v1259_v28, %v1145_v29 }
  0x3a   : > { %1210 = vmatmul.msk.bf16.gmra.mxu1 %vm495_vm1, %v1036_v38  ;;  %1219 = vmatmul.msk.bf16.gmra.mxu3 %vm495_vm1, %v1108_v39  ;;  %v1243_v38 = vld [vmem:[%s1391_s23 + $0x74] sm:$0xf]  ;;  %v1081_v39 = vld [vmem:[%s1391_s23 + $0x78] sm:$0xf0] }
  0x3b   : > { %561 = vmatmul.bf16.gmra.mxu0 %v1032_v40  ;;  %601 = vmatmul.bf16.gmra.mxu2 %v1096_v41  ;;  %v1079_v40 = vld [vmem:[%s1391_s23 + $0x70] sm:$0xf]  ;;  %v1244_v41 = vld [vmem:[%s1391_s23 + $0x74] sm:$0xf0]  ;;  %v1084_v44 = vor.u32 %v1243_v38, %v1081_v39 }
  0x3c   : > { %v1080_v45 = vor.u32 %v1244_v41, %v1079_v40 }
  0x4a   : > { %1211 = vmatmul.msk.bf16.gmra.mxu1 %vm495_vm1, %v1044_v50  ;;  %1220 = vmatmul.msk.bf16.gmra.mxu3 %vm495_vm1, %v1116_v51 }
  0x4b   : > { %566 = vmatmul.bf16.gmra.mxu0 %v1040_v52  ;;  %606 = vmatmul.bf16.gmra.mxu2 %v1104_v53 }
  0x5a   : > { %1212 = vmatmul.msk.bf16.gmra.mxu1 %vm495_vm1, %v1052_v62  ;;  %1221 = vmatmul.msk.bf16.gmra.mxu3 %vm495_vm1, %v1124_v63 }
  0x5b   : > { %571 = vmatmul.bf16.gmra.mxu0 %v1048_v0  ;;  %611 = vmatmul.bf16.gmra.mxu2 %v1112_v1 }
  0x6a   : > { %1213 = vmatmul.msk.bf16.gmra.mxu1 %vm495_vm1, %v1060_v10  ;;  %1222 = vmatmul.msk.bf16.gmra.mxu3 %vm495_vm1, %v1132_v11 }
  0x6b   : > { %576 = vmatmul.bf16.gmra.mxu0 %v1056_v12  ;;  %616 = vmatmul.bf16.gmra.mxu2 %v1120_v13 }
  0x7a   : > { %1214 = vmatmul.msk.bf16.gmra.mxu1 %vm495_vm1, %v1068_v22  ;;  %1223 = vmatmul.msk.bf16.gmra.mxu3 %vm495_vm1, %v1140_v23 }
  0x7b   : > { %581 = vmatmul.bf16.gmra.mxu0 %v1064_v24  ;;  %621 = vmatmul.bf16.gmra.mxu2 %v1128_v25 }
  0x8a   : > { %1215 = vmatmul.msk.bf16.gmra.mxu1 %vm495_vm1, %v1076_v34  ;;  %1224 = vmatmul.msk.bf16.gmra.mxu3 %vm495_vm1, %v1148_v35 }
  0x8b   : > { %586 = vmatmul.bf16.gmra.mxu0 %v1072_v36  ;;  %626 = vmatmul.bf16.gmra.mxu2 %v1136_v37 }
  0x9a   : > { %1216 = vmatmul.msk.bf16.gmra.mxu1 %vm495_vm1, %v1084_v44 }
  0x9b   : > { %591 = vmatmul.bf16.gmra.mxu0 %v1080_v45  ;;  %631 = vmatmul.bf16.gmra.mxu2 %v1144_v46 }
  0xa7   : > { %v646_v50 = vpop.f32.mrf.mxu1 }
  0xa8   : > { %v557_v51 = vpop.f32.mrf.mxu0 }
  0xa9   : > { %v1488_v52 = vadd.f32 %v646_v50, %v557_v51 }
  0xaa   : > { %1217 = vmatmul.msk.bf16.gmra.mxu1 %vm495_vm1, %v1092_v49 }
  0xab   : > { %727 = vst.msk [vmem:[%s1486_s7] sm:$0xff] %vm726_vm2, %v1488_v52 }
  0xad   : > { %v691_v53 = vpop.f32.mrf.mxu3 }
  0xae   : > { %v1494_v55 = vpop.f32.mrf.mxu2 }
  0xaf   : > { %v648_v54 = vpop.f32.mrf.mxu1 }
  0xb0   : > { %v559_v56 = vpop.f32.mrf.mxu0 }
  0xb1   : > { %v1496_v57 = vadd.f32 %v648_v54, %v559_v56 }
  0xb3   : > { %728 = vst.msk [vmem:[%s1486_s7 + $0x8] sm:$0xff] %vm726_vm2, %v1496_v57 }
  0xb5   : > { %v693_v58 = vpop.f32.mrf.mxu3 }
  0xb6   : > { %v1501_v60 = vpop.f32.mrf.mxu2 }
  0xb7   : > { %v651_v59 = vpop.f32.mrf.mxu1 }
  0xb8   : > { %v562_v61 = vpop.f32.mrf.mxu0 }
  0xb9   : > { %v1503_v62 = vadd.f32 %v651_v59, %v562_v61 }
  0xbb   : > { %729 = vst.msk [vmem:[%s1486_s7 + $0x10] sm:$0xff] %vm726_vm2, %v1503_v62 }
  0xbd   : > { %v696_v63 = vpop.f32.mrf.mxu3 }
  0xbe   : > { %v602_v1 = vpop.f32.mrf.mxu2 }
  0xbf   : > { %v653_v0 = vpop.f32.mrf.mxu1  ;;  %v1508_v2 = vadd.f32 %v691_v53, %v602_v1 }
  0xc0   : > { %v564_v3 = vpop.f32.mrf.mxu0 }
  0xc1   : > { %745 = vst.msk [vmem:[%s1486_s7 + $0x90] sm:$0xff] %vm726_vm2, %v1508_v2  ;;  %v1513_v4 = vadd.f32 %v653_v0, %v564_v3 }
  0xc3   : > { %730 = vst.msk [vmem:[%s1486_s7 + $0x18] sm:$0xff] %vm726_vm2, %v1513_v4 }
  0xc5   : > { %v698_v5 = vpop.f32.mrf.mxu3 }
  0xc6   : > { %v604_v7 = vpop.f32.mrf.mxu2 }
  0xc7   : > { %v656_v6 = vpop.f32.mrf.mxu1  ;;  %v1518_v8 = vadd.f32 %v693_v58, %v604_v7 }
  0xc8   : > { %v567_v9 = vpop.f32.mrf.mxu0 }
  0xc9   : > { %746 = vst.msk [vmem:[%s1486_s7 + $0x98] sm:$0xff] %vm726_vm2, %v1518_v8  ;;  %v1523_v10 = vadd.f32 %v656_v6, %v567_v9 }
  0xcb   : > { %731 = vst.msk [vmem:[%s1486_s7 + $0x20] sm:$0xff] %vm726_vm2, %v1523_v10 }
  0xcd   : > { %v701_v11 = vpop.f32.mrf.mxu3 }
  0xce   : > { %v607_v13 = vpop.f32.mrf.mxu2 }
  0xcf   : > { %v658_v12 = vpop.f32.mrf.mxu1  ;;  %v1528_v14 = vadd.f32 %v696_v63, %v607_v13 }
  0xd0   : > { %v569_v15 = vpop.f32.mrf.mxu0 }
  0xd1   : > { %747 = vst.msk [vmem:[%s1486_s7 + $0xa0] sm:$0xff] %vm726_vm2, %v1528_v14  ;;  %v1533_v16 = vadd.f32 %v658_v12, %v569_v15 }
  0xd3   : > { %732 = vst.msk [vmem:[%s1486_s7 + $0x28] sm:$0xff] %vm726_vm2, %v1533_v16 }
  0xd5   : > { %v703_v17 = vpop.f32.mrf.mxu3 }
  0xd6   : > { %v609_v19 = vpop.f32.mrf.mxu2 }
  0xd7   : > { %v661_v18 = vpop.f32.mrf.mxu1  ;;  %v1538_v20 = vadd.f32 %v698_v5, %v609_v19 }
  0xd8   : > { %v572_v21 = vpop.f32.mrf.mxu0 }
  0xd9   : > { %748 = vst.msk [vmem:[%s1486_s7 + $0xa8] sm:$0xff] %vm726_vm2, %v1538_v20  ;;  %v1543_v22 = vadd.f32 %v661_v18, %v572_v21 }
  0xdb   : > { %733 = vst.msk [vmem:[%s1486_s7 + $0x30] sm:$0xff] %vm726_vm2, %v1543_v22 }
  0xdd   : > { %v706_v23 = vpop.f32.mrf.mxu3 }
  0xde   : > { %v612_v25 = vpop.f32.mrf.mxu2 }
  0xdf   : > { %v663_v24 = vpop.f32.mrf.mxu1  ;;  %v1548_v26 = vadd.f32 %v701_v11, %v612_v25 }
  0xe0   : > { %v574_v27 = vpop.f32.mrf.mxu0 }
  0xe1   : > { %749 = vst.msk [vmem:[%s1486_s7 + $0xb0] sm:$0xff] %vm726_vm2, %v1548_v26  ;;  %v1553_v28 = vadd.f32 %v663_v24, %v574_v27 }
  0xe3   : > { %734 = vst.msk [vmem:[%s1486_s7 + $0x38] sm:$0xff] %vm726_vm2, %v1553_v28 }
  0xe5   : > { %v708_v32 = vpop.f32.mrf.mxu3 }
  0xe6   : > { %v614_v30 = vpop.f32.mrf.mxu2 }
  0xe7   : > { %v666_v29 = vpop.f32.mrf.mxu1  ;;  %v1558_v31 = vadd.f32 %v703_v17, %v614_v30 }
  0xe8   : > { %v577_v33 = vpop.f32.mrf.mxu0 }
  0xe9   : > { %750 = vst.msk [vmem:[%s1486_s7 + $0xb8] sm:$0xff] %vm726_vm2, %v1558_v31  ;;  %v1563_v34 = vadd.f32 %v666_v29, %v577_v33 }
  0xeb   : > { %735 = vst.msk [vmem:[%s1486_s7 + $0x40] sm:$0xff] %vm726_vm2, %v1563_v34 }
  0xed   : > { %v711_v40 = vpop.f32.mrf.mxu3 }
  0xee   : > { %v617_v36 = vpop.f32.mrf.mxu2 }
  0xef   : > { %v668_v35 = vpop.f32.mrf.mxu1  ;;  %v1568_v37 = vadd.f32 %v706_v23, %v617_v36 }
  0xf0   : > { %v579_v38 = vpop.f32.mrf.mxu0 }
  0xf1   : > { %751 = vst.msk [vmem:[%s1486_s7 + $0xc0] sm:$0xff] %vm726_vm2, %v1568_v37  ;;  %v1573_v39 = vadd.f32 %v668_v35, %v579_v38 }
  0xf3   : > { %736 = vst.msk [vmem:[%s1486_s7 + $0x48] sm:$0xff] %vm726_vm2, %v1573_v39 }
  0xf5   : > { %v713_v46 = vpop.f32.mrf.mxu3 }
  0xf6   : > { %v619_v42 = vpop.f32.mrf.mxu2 }
  0xf7   : > { %v671_v41 = vpop.f32.mrf.mxu1  ;;  %v1578_v43 = vadd.f32 %v708_v32, %v619_v42 }
  0xf8   : > { %v582_v44 = vpop.f32.mrf.mxu0 }
  0xf9   : > { %752 = vst.msk [vmem:[%s1486_s7 + $0xc8] sm:$0xff] %vm726_vm2, %v1578_v43  ;;  %v1583_v45 = vadd.f32 %v671_v41, %v582_v44 }
  0xfb   : > { %737 = vst.msk [vmem:[%s1486_s7 + $0x50] sm:$0xff] %vm726_vm2, %v1583_v45 }
  0xfd   : > { %v716_v53 = vpop.f32.mrf.mxu3 }
  0xfe   : > { %v622_v48 = vpop.f32.mrf.mxu2 }
  0xff   : > { %v673_v47 = vpop.f32.mrf.mxu1  ;;  %v1588_v49 = vadd.f32 %v711_v40, %v622_v48 }
 0x100   : > { %v584_v50 = vpop.f32.mrf.mxu0 }
 0x101   : > { %753 = vst.msk [vmem:[%s1486_s7 + $0xd0] sm:$0xff] %vm726_vm2, %v1588_v49  ;;  %v1593_v51 = vadd.f32 %v673_v47, %v584_v50 }
 0x103   : > { %738 = vst.msk [vmem:[%s1486_s7 + $0x58] sm:$0xff] %vm726_vm2, %v1593_v51 }
 0x105   : > { %v718_v5 = vpop.f32.mrf.mxu3 }
 0x106   : > { %v624_v56 = vpop.f32.mrf.mxu2 }
 0x107   : > { %v676_v54 = vpop.f32.mrf.mxu1  ;;  %v1598_v58 = vadd.f32 %v713_v46, %v624_v56 }
 0x108   : > { %v587_v59 = vpop.f32.mrf.mxu0 }
 0x109   : > { %754 = vst.msk [vmem:[%s1486_s7 + $0xd8] sm:$0xff] %vm726_vm2, %v1598_v58  ;;  %v1603_v61 = vadd.f32 %v676_v54, %v587_v59 }
 0x10b   : > { %739 = vst.msk [vmem:[%s1486_s7 + $0x60] sm:$0xff] %vm726_vm2, %v1603_v61 }
 0x10d   : > { %v721_v15 = vpop.f32.mrf.mxu3 }
 0x10e   : > { %v627_v0 = vpop.f32.mrf.mxu2 }
 0x10f   : > { %v678_v63 = vpop.f32.mrf.mxu1  ;;  %v1608_v1 = vadd.f32 %v716_v53, %v627_v0 }
 0x110   : > { %v589_v3 = vpop.f32.mrf.mxu0 }
 0x111   : > { %755 = vst.msk [vmem:[%s1486_s7 + $0xe0] sm:$0xff] %vm726_vm2, %v1608_v1  ;;  %v1613_v6 = vadd.f32 %v678_v63, %v589_v3 }
 0x113   : > { %740 = vst.msk [vmem:[%s1486_s7 + $0x68] sm:$0xff] %vm726_vm2, %v1613_v6 }
 0x115   : > { %v723_v24 = vpop.f32.mrf.mxu3 }
 0x116   : > { %v629_v9 = vpop.f32.mrf.mxu2 }
 0x117   : > { %v681_v7 = vpop.f32.mrf.mxu1  ;;  %v1618_v11 = vadd.f32 %v718_v5, %v629_v9 }
 0x118   : > { %v592_v12 = vpop.f32.mrf.mxu0 }
 0x119   : > { %756 = vst.msk [vmem:[%s1486_s7 + $0xe8] sm:$0xff] %vm726_vm2, %v1618_v11  ;;  %v1623_v13 = vadd.f32 %v681_v7, %v592_v12 }
 0x11b   : > { %741 = vst.msk [vmem:[%s1486_s7 + $0x70] sm:$0xff] %vm726_vm2, %v1623_v13 }
 0x11e   : > { %v632_v18 = vpop.f32.mrf.mxu2 }
 0x11f   : > { %v683_v17 = vpop.f32.mrf.mxu1  ;;  %v1628_v19 = vadd.f32 %v721_v15, %v632_v18 }
 0x120   : > { %v594_v21 = vpop.f32.mrf.mxu0 }
 0x121   : > { %757 = vst.msk [vmem:[%s1486_s7 + $0xf0] sm:$0xff] %vm726_vm2, %v1628_v19  ;;  %v1633_v23 = vadd.f32 %v683_v17, %v594_v21 }
 0x123   : > { %742 = vst.msk [vmem:[%s1486_s7 + $0x78] sm:$0xff] %vm726_vm2, %v1633_v23 }
 0x126   : > { %v634_v27 = vpop.f32.mrf.mxu2 }
 0x127   : > { %v686_v25 = vpop.f32.mrf.mxu1  ;;  %v1641_v30 = vadd.f32 %v723_v24, %v634_v27 }
 0x128   : > { %v1639_v29 = vadd.f32 %v686_v25, %v1494_v55 }
 0x129   : > { %758 = vst.msk [vmem:[%s1486_s7 + $0xf8] sm:$0xff] %vm726_vm2, %v1641_v30 }
 0x12a   : > { %743 = vst.msk [vmem:[%s1486_s7 + $0x80] sm:$0xff] %vm726_vm2, %v1639_v29 }
 0x12e   : > { %762 = sbr.rel (%p1225_p4) target bundleno = 310 (0x136), region = 32 }
 0x12f   : > { %v688_v32 = vpop.f32.mrf.mxu1 }
 0x130   : > { %v1650_v33 = vadd.f32 %v688_v32, %v1501_v60 }
 0x132   : > { %744 = vst.msk [vmem:[%s1486_s7 + $0x88] sm:$0xff] %vm726_vm2, %v1650_v33 }
 0x133   : > { %vm763_vm3 = vcmask 204800   ;;  %v1308_v55 = vmov 0.0  }
 0x134   : > { %764 = vst.msk [vmem:[%s1841_s3] sm:$0x1] %vm763_vm3, %v1308_v55 }
 0x135   : > { %765 = vst.msk [vmem:[%s1842_s4] sm:$0x1] %vm763_vm3, %v1308_v55 }
 0x136 PF: > { %v767_v60 = vsel %vm726_vm2, %v1488_v52, 0.0  ;;  %v768_v35 = vsel %vm726_vm2, %v1496_v57, 0.0  ;;  %v770_v36 = vsel %vm726_vm2, %v1503_v62, 0.0  ;;  %v772_v40 = vsel %vm726_vm2, %v1513_v4, 0.0 }
 0x137   : > { %v769_v38 = vadd.f32 %v768_v35, %v767_v60  ;;  %v774_v42 = vsel %vm726_vm2, %v1523_v10, 0.0  ;;  %v776_v46 = vsel %vm726_vm2, %v1533_v16, 0.0  ;;  %v778_v48 = vsel %vm726_vm2, %v1543_v22, 0.0 }
 0x138   : > { %v840_v50 = vmul.f32 %v1488_v52, %v1488_v52  ;;  %v841_v54 = vmul.f32 %v1496_v57, %v1496_v57  ;;  %v842_v56 = vmul.f32 %v1503_v62, %v1503_v62  ;;  %v780_v59 = vsel %vm726_vm2, %v1553_v28, 0.0 }
 0x139   : > { %v771_v41 = vadd.f32 %v770_v36, %v769_v38  ;;  %v843_v0 = vmul.f32 %v1513_v4, %v1513_v4  ;;  %v782_v3 = vsel %vm726_vm2, %v1563_v34, 0.0  ;;  %v844_v7 = vmul.f32 %v1523_v10, %v1523_v10 }
 0x13a   : > { %v872_v5 = vsel %vm726_vm2, %v840_v50, 0.0  ;;  %v873_v57 = vsel %vm726_vm2, %v841_v54, 0.0  ;;  %v875_v62 = vsel %vm726_vm2, %v842_v56, 0.0  ;;  %v784_v9 = vsel %vm726_vm2, %v1573_v39, 0.0 }
 0x13b   : > { %v773_v44 = vadd.f32 %v772_v40, %v771_v41  ;;  %v874_v12 = vadd.f32 %v873_v57, %v872_v5  ;;  %v845_v4 = vmul.f32 %v1533_v16, %v1533_v16  ;;  %v877_v17 = vsel %vm726_vm2, %v843_v0, 0.0 }
 0x13c   : > { %v786_v18 = vsel %vm726_vm2, %v1583_v45, 0.0  ;;  %v846_v10 = vmul.f32 %v1543_v22, %v1543_v22  ;;  %v879_v25 = vsel %vm726_vm2, %v844_v7, 0.0  ;;  %v788_v27 = vsel %vm726_vm2, %v1593_v51, 0.0 }
 0x13d   : > { %v775_v47 = vadd.f32 %v774_v42, %v773_v44  ;;  %v876_v21 = vadd.f32 %v875_v62, %v874_v12  ;;  %v847_v16 = vmul.f32 %v1553_v28, %v1553_v28  ;;  %v881_v60 = vsel %vm726_vm2, %v845_v4, 0.0 }
 0x13e   : > { %v790_v35 = vsel %vm726_vm2, %v1603_v61, 0.0  ;;  %v848_v22 = vmul.f32 %v1563_v34, %v1563_v34  ;;  %v883_v40 = vsel %vm726_vm2, %v846_v10, 0.0  ;;  %v792_v41 = vsel %vm726_vm2, %v1613_v6, 0.0 }
 0x13f   : > { %v777_v53 = vadd.f32 %v776_v46, %v775_v47  ;;  %v878_v32 = vadd.f32 %v877_v17, %v876_v21  ;;  %v849_v28 = vmul.f32 %v1573_v39, %v1573_v39  ;;  %v885_v46 = vsel %vm726_vm2, %v847_v16, 0.0 }
 0x140   : > { %v794_v47 = vsel %vm726_vm2, %v1623_v13, 0.0  ;;  %v850_v34 = vmul.f32 %v1583_v45, %v1583_v45  ;;  %v796_v54 = vsel %vm726_vm2, %v1633_v23, 0.0  ;;  %v851_v39 = vmul.f32 %v1593_v51, %v1593_v51 }
 0x141   : > { %v779_v63 = vadd.f32 %v778_v48, %v777_v53  ;;  %v880_v36 = vadd.f32 %v879_v25, %v878_v32  ;;  %v887_v53 = vsel %vm726_vm2, %v848_v22, 0.0  ;;  %v798_v0 = vsel %vm726_vm2, %v1639_v29, 0.0 }
 0x142   : > { %v852_v45 = vmul.f32 %v1603_v61, %v1603_v61  ;;  %v800_v7 = vsel %vm726_vm2, %v1650_v33, 0.0  ;;  %v853_v51 = vmul.f32 %v1613_v6, %v1613_v6  ;;  %v802_v12 = vsel %vm726_vm2, %v1508_v2, 0.0 }
 0x143   : > { %v781_v52 = vadd.f32 %v780_v59, %v779_v63  ;;  %v882_v42 = vadd.f32 %v881_v60, %v880_v36  ;;  %v889_v63 = vsel %vm726_vm2, %v849_v28, 0.0  ;;  %v854_v61 = vmul.f32 %v1623_v13, %v1623_v13 }
 0x144   : > { %v895_v17 = vsel %vm726_vm2, %v852_v45, 0.0  ;;  %v855_v6 = vmul.f32 %v1633_v23, %v1633_v23  ;;  %v897_v10 = vsel %vm726_vm2, %v853_v51, 0.0  ;;  %v806_v25 = vsel %vm726_vm2, %v1528_v14, 0.0 }
 0x145   : > { %v783_v15 = vadd.f32 %v782_v3, %v781_v52  ;;  %v884_v48 = vadd.f32 %v883_v40, %v882_v42  ;;  %v891_v52 = vsel %vm726_vm2, %v850_v34, 0.0  ;;  %v856_v13 = vmul.f32 %v1639_v29, %v1639_v29 }
 0x146   : > { %v808_v16 = vsel %vm726_vm2, %v1538_v20, 0.0  ;;  %v857_v23 = vmul.f32 %v1650_v33, %v1650_v33  ;;  %v901_v36 = vsel %vm726_vm2, %v855_v6, 0.0  ;;  %v858_v29 = vmul.f32 %v1508_v2, %v1508_v2 }
 0x147   : > { %v785_v24 = vadd.f32 %v784_v9, %v783_v15  ;;  %v886_v56 = vadd.f32 %v885_v46, %v884_v48  ;;  %v893_v9 = vsel %vm726_vm2, %v851_v39, 0.0  ;;  %v812_v42 = vsel %vm726_vm2, %v1558_v31, 0.0 }
 0x148   : > { %v859_v33 = vmul.f32 %v1518_v8, %v1518_v8  ;;  %v905_v46 = vsel %vm726_vm2, %v857_v23, 0.0  ;;  %v860_v2 = vmul.f32 %v1528_v14, %v1528_v14  ;;  %v907_v34 = vsel %vm726_vm2, %v858_v29, 0.0 }
 0x149   : > { %v787_v55 = vadd.f32 %v786_v18, %v785_v24  ;;  %v888_v3 = vadd.f32 %v887_v53, %v886_v56  ;;  %v804_v18 = vsel %vm726_vm2, %v1518_v8, 0.0  ;;  %v816_v53 = vsel %vm726_vm2, %v1578_v43, 0.0 }
 0x14a   : > { %v861_v8 = vmul.f32 %v1538_v20, %v1538_v20  ;;  %v818_v39 = vsel %vm726_vm2, %v1588_v49, 0.0  ;;  %v862_v14 = vmul.f32 %v1548_v26, %v1548_v26  ;;  %v863_v20 = vmul.f32 %v1558_v31, %v1558_v31 }
 0x14b   : > { %v789_v38 = vadd.f32 %v788_v27, %v787_v55  ;;  %v890_v57 = vadd.f32 %v889_v63, %v888_v3  ;;  %v899_v55 = vsel %vm726_vm2, %v854_v61, 0.0  ;;  %v911_v3 = vsel %vm726_vm2, %v860_v2, 0.0 }
 0x14c   : > { %v865_v31 = vmul.f32 %v1578_v43, %v1578_v43  ;;  %v917_v61 = vsel %vm726_vm2, %v863_v20, 0.0  ;;  %v828_v6 = vsel %vm726_vm2, %v1641_v30, 0.0  ;;  %v867_v43 = vmul.f32 %v1598_v58, %v1598_v58 }
 0x14d   : > { %v791_v44 = vadd.f32 %v790_v35, %v789_v38  ;;  %v892_v15 = vadd.f32 %v891_v52, %v890_v57  ;;  %v810_v38 = vsel %vm726_vm2, %v1548_v26, 0.0  ;;  %v822_v57 = vsel %vm726_vm2, %v1608_v1, 0.0 }
 0x14e   : > { %v864_v26 = vmul.f32 %v1568_v37, %v1568_v37  ;;  %v925_v23 = vsel %vm726_vm2, %v867_v43, 0.0  ;;  %vm837_vm4 = vcmask 204800  }
 0x14f   : > { %v793_v50 = vadd.f32 %v792_v41, %v791_v44  ;;  %v894_v21 = vadd.f32 %v893_v9, %v892_v15  ;;  %v903_v41 = vsel %vm726_vm2, %v856_v13, 0.0  ;;  %v915_v9 = vsel %vm726_vm2, %v862_v14, 0.0 }
 0x151   : > { %v795_v59 = vadd.f32 %v794_v47, %v793_v50  ;;  %v896_v27 = vadd.f32 %v895_v17, %v894_v21  ;;  %v814_v47 = vsel %vm726_vm2, %v1568_v37, 0.0  ;;  %v826_v17 = vsel %vm726_vm2, %v1628_v19, 0.0 }
 0x152   : > { %v866_v37 = vmul.f32 %v1588_v49, %v1588_v49 }
 0x153   : > { %v797_v5 = vadd.f32 %v796_v54, %v795_v59  ;;  %v898_v60 = vadd.f32 %v897_v10, %v896_v27  ;;  %v909_v59 = vsel %vm726_vm2, %v859_v33, 0.0  ;;  %v921_v27 = vsel %vm726_vm2, %v865_v31, 0.0 }
 0x155   : > { %v799_v62 = vadd.f32 %v798_v0, %v797_v5  ;;  %v900_v22 = vadd.f32 %v899_v55, %v898_v60  ;;  %v820_v5 = vsel %vm726_vm2, %v1598_v58, 0.0  ;;  %v868_v55 = vmul.f32 %v1608_v1, %v1608_v1 }
 0x156   : > { %v870_v58 = vmul.f32 %v1628_v19, %v1628_v19  ;;  %v871_v1 = vmul.f32 %v1641_v30, %v1641_v30  ;;  %v766_v19 = vld [vmem:[%s1841_s3] sm:$0x1] }
 0x157   : > { %v801_v4 = vadd.f32 %v800_v7, %v799_v62  ;;  %v902_v44 = vadd.f32 %v901_v36, %v900_v22  ;;  %v913_v7 = vsel %vm726_vm2, %v861_v8, 0.0  ;;  %v927_v22 = vsel %vm726_vm2, %v868_v55, 0.0  ;;  %v839_v8 = vld [vmem:[%s1842_s4] sm:$0x1] }
 0x159   : > { %v803_v24 = vadd.f32 %v802_v12, %v801_v4  ;;  %v904_v48 = vadd.f32 %v903_v41, %v902_v44  ;;  %v824_v12 = vsel %vm726_vm2, %v1618_v11, 0.0 }
 0x15b   : > { %v805_v32 = vadd.f32 %v804_v18, %v803_v24  ;;  %v906_v54 = vadd.f32 %v905_v46, %v904_v48  ;;  %v919_v24 = vsel %vm726_vm2, %v864_v26, 0.0  ;;  %v933_v46 = vsel %vm726_vm2, %v871_v1, 0.0 }
 0x15d   : > { %v807_v35 = vadd.f32 %v806_v25, %v805_v32  ;;  %v908_v63 = vadd.f32 %v907_v34, %v906_v54 }
 0x15f   : > { %v809_v40 = vadd.f32 %v808_v16, %v807_v35  ;;  %v910_v45 = vadd.f32 %v909_v59, %v908_v63  ;;  %v923_v16 = vsel %vm726_vm2, %v866_v37, 0.0  ;;  %v869_v35 = vmul.f32 %v1618_v11, %v1618_v11 }
 0x160   : > { %v931_v11 = vsel %vm726_vm2, %v870_v58, 0.0 }
 0x161   : > { %v811_v28 = vadd.f32 %v810_v38, %v809_v40  ;;  %v912_v62 = vadd.f32 %v911_v3, %v910_v45  ;;  %v929_v41 = vsel %vm726_vm2, %v869_v35, 0.0 }
 0x163   : > { %v813_v50 = vadd.f32 %v812_v42, %v811_v28  ;;  %v914_v15 = vadd.f32 %v913_v7, %v912_v62 }
 0x165   : > { %v815_v56 = vadd.f32 %v814_v47, %v813_v50  ;;  %v916_v18 = vadd.f32 %v915_v9, %v914_v15 }
 0x167   : > { %v817_v0 = vadd.f32 %v816_v53, %v815_v56  ;;  %v918_v10 = vadd.f32 %v917_v61, %v916_v18 }
 0x169   : > { %v819_v52 = vadd.f32 %v818_v39, %v817_v0  ;;  %v920_v32 = vadd.f32 %v919_v24, %v918_v10 }
 0x16b   : > { %v821_v51 = vadd.f32 %v820_v5, %v819_v52  ;;  %v922_v49 = vadd.f32 %v921_v27, %v920_v32 }
 0x16d   : > { %v823_v4 = vadd.f32 %v822_v57, %v821_v51  ;;  %v924_v36 = vadd.f32 %v923_v16, %v922_v49 }
 0x16f   : > { %v825_v21 = vadd.f32 %v824_v12, %v823_v4  ;;  %v926_v40 = vadd.f32 %v925_v23, %v924_v36 }
 0x171   : > { %v827_v25 = vadd.f32 %v826_v17, %v825_v21  ;;  %v928_v42 = vadd.f32 %v927_v22, %v926_v40 }
 0x173   : > { %v829_v13 = vadd.f32 %v828_v6, %v827_v25  ;;  %v930_v28 = vadd.f32 %v929_v41, %v928_v42 }
 0x175   : > { %v830_v60 = vrot.slane %v829_v13, 4  ;;  %v932_v47 = vadd.f32 %v931_v11, %v930_v28 }
 0x177   : > { %v831_v38 = vadd.f32 %v830_v60, %v829_v13  ;;  %v934_v50 = vadd.f32 %v933_v46, %v932_v47 }
 0x179   : > { %v832_v29 = vrot.slane %v831_v38, 2  ;;  %v935_v30 = vrot.slane %v934_v50, 4 }
 0x17b   : > { %v833_v44 = vadd.f32 %v832_v29, %v831_v38  ;;  %v936_v34 = vadd.f32 %v935_v30, %v934_v50 }
 0x17d   : > { %v834_v33 = vrot.slane %v833_v44, 1  ;;  %v937_v53 = vrot.slane %v936_v34, 2 }
 0x17f   : > { %v835_v48 = vadd.f32 %v834_v33, %v833_v44  ;;  %v938_v54 = vadd.f32 %v937_v53, %v936_v34 }
 0x181   : > { %v836_v2 = vadd.f32 %v835_v48, %v766_v19  ;;  %v939_v56 = vrot.slane %v938_v54, 1 }
 0x183   : > { %838 = vst.msk [vmem:[%s1841_s3] sm:$0x1] %vm837_vm4, %v836_v2  ;;  %v940_v59 = vadd.f32 %v939_v56, %v938_v54 }
 0x185   : > { %v941_v39 = vadd.f32 %v940_v59, %v839_v8 }
 0x187   : > { %942 = vst.msk [vmem:[%s1842_s4] sm:$0x1] %vm837_vm4, %v941_v39 }
 0x188 PF: > { %s15_s15 = sadd.s32 1, %s1306_s15  }
 0x189   : > { %p12_p5 = scmp.ge.s32.totalorder %s15_s15, 4  }
 0x18b   :  { %14 = sbr.rel (!%p12_p5) target bundleno = 1 (0x1), region = 78 }

// kernel: bottleneck_forward_pallas.46
= control target key start
LH: loop header
LB: loop body
LE: loop exit
PB: predicated region body
PF: predicated region fallthrough
CT: control target
= control target key end

     0   :  { %s990_s15 = smov 0   ;;  %s1386_s0 = inlined_call_operand.vmem [shape: bf16[512,104], index: 0, kind: input, shape index: {}]   ;;  %s1387_s1 = inlined_call_operand.vmem [shape: bf16[104,64], index: 1, kind: input, shape index: {}]   ;;  %s1388_s2 = inlined_call_operand.vmem [shape: f32[512,64], index: 2, kind: output, shape index: {0}]   ;;  %s1389_s3 = inlined_call_operand.vmem [shape: f32[1,64], index: 3, kind: output, shape index: {1}]   ;;  %s1390_s4 = inlined_call_operand.vmem [shape: f32[1,64], index: 4, kind: output, shape index: {2}]  }
   0x1 LB: > { %s788_s16 = sadd.s32 4294967295, %s962_s15   ;;  %p792_p0 = scmp.ge.s32.totalorder %s962_s15, 1  ;;  %s962_s15 = sphi %s990_s15, %s15_s15  }
   0x2   : > { %p158_p1 = scmp.lt.s32.totalorder %s962_s15, 3 }
   0x4   : > { %p159_p2 = pnand %p792_p0, %p158_p1 }
   0x5   : > { %s793_s23 = sshll.u32 (!%p159_p2), %s788_s16, 5  ;;  %p901_p4 = scmp.ne.s32.totalorder (!%p159_p2), %s788_s16, 0 }
   0x6   : > { %162 = sbr.rel (%p159_p2) target bundleno = 320 (0x140), region = 28  ;;  %p185_p3 = scmp.lt.s32.totalorder (!%p159_p2), %s793_s23, 63 }
   0xb   : > { %v241_v0 = vld [vmem:[%s1387_s1 + $0x30] sm:$0xf]  ;;  %vm410_vm0 = vcmask 1043456   ;;  %v925_v4 = vld [vmem:[%s1387_s1 + $0x28] sm:$0xff]  ;;  %v924_v5 = vld [vmem:[%s1387_s1 + $0x20] sm:$0xff]  ;;  %s1392_s23 = smov (!%p185_p3, %s793_s23), 63 }
   0xc   : > { %v347_v1 = vunpack.c.l.b16 %v241_v0  ;;  %v923_v6 = vld [vmem:[%s1387_s1 + $0x18] sm:$0xff]  ;;  %v922_v7 = vld [vmem:[%s1387_s1 + $0x10] sm:$0xff]  ;;  %v921_v8 = vld [vmem:[%s1387_s1 + $0x8] sm:$0xff]  ;;  %s794_s30 = sshll.u32 %s1392_s23, 2  ;;  %vm361_vm1 = vcmask 850944   ;;  %s796_s10 = sshll.u32 %s1392_s23, 3 }
   0xd   : > { %v920_v9 = vld [vmem:[%s1387_s1] sm:$0xff]  ;;  %s1027_s9 = scalar_lea.vmem %s1386_s0, %s794_s30  ;;  %s1065_s13 = scalar_lea.vmem %s1388_s2, %s796_s10  ;;  %vm503_vm2 = vcmask 523264  }
   0xe   : > { %v354_v2 = vpack.c.b16 %v347_v1, %v347_v1  ;;  %v904_v10 = vld [vmem:[%s1027_s9] sm:$0xff]  ;;  %v905_v14 = vld [vmem:[%s1027_s9 + $0x8] sm:$0xff]  ;;  %v906_v18 = vld [vmem:[%s1027_s9 + $0x10] sm:$0xff] }
   0xf   : > { %v908_v11 = vld [vmem:[%s1027_s9 + $0x20] sm:$0xff]  ;;  %v909_v15 = vld [vmem:[%s1027_s9 + $0x28] sm:$0xff]  ;;  %v910_v19 = vld [vmem:[%s1027_s9 + $0x30] sm:$0xff] }
  0x10   : > { %v412_v3 = vsel %vm410_vm0, %v354_v2, 0  ;;  %v912_v12 = vld [vmem:[%s1027_s9 + $0x40] sm:$0xff]  ;;  %v913_v16 = vld [vmem:[%s1027_s9 + $0x48] sm:$0xff]  ;;  %v914_v20 = vld [vmem:[%s1027_s9 + $0x50] sm:$0xff] }
  0x11   : > { %415 = vmatpush.bf16.msra.mxu0 %v412_v3  ;;  %926 = vmatpush.bf16.msra.mxu1 %v412_v3  ;;  %v916_v13 = vld [vmem:[%s1027_s9 + $0x60] sm:$0xff]  ;;  %v917_v17 = vld [vmem:[%s1027_s9 + $0x68] sm:$0xff]  ;;  %v918_v21 = vld [vmem:[%s1027_s9 + $0x70] sm:$0xff] }
  0x12   : > { %927 = vmatpush.bf16.msra.mxu2 %v412_v3  ;;  %928 = vmatpush.bf16.msra.mxu3 %v412_v3  ;;  %v907_v22 = vld [vmem:[%s1027_s9 + $0x18] sm:$0xff] }
  0x13   : > { %v911_v23 = vld [vmem:[%s1027_s9 + $0x38] sm:$0xff] }
  0x14   : > { %v915_v24 = vld [vmem:[%s1027_s9 + $0x58] sm:$0xff] }
  0x15   : > { %416 = vmatpush.bf16.msra.mxu0 %v925_v4  ;;  %929 = vmatpush.bf16.msra.mxu1 %v925_v4  ;;  %v919_v25 = vld [vmem:[%s1027_s9 + $0x78] sm:$0xff] }
  0x16   : > { %930 = vmatpush.bf16.msra.mxu2 %v925_v4  ;;  %931 = vmatpush.bf16.msra.mxu3 %v925_v4 }
  0x19   : > { %417 = vmatpush.bf16.msra.mxu0 %v924_v5  ;;  %932 = vmatpush.bf16.msra.mxu1 %v924_v5 }
  0x1a   : > { %933 = vmatpush.bf16.msra.mxu2 %v924_v5  ;;  %934 = vmatpush.bf16.msra.mxu3 %v924_v5 }
  0x1d   : > { %418 = vmatpush.bf16.msra.mxu0 %v923_v6  ;;  %935 = vmatpush.bf16.msra.mxu1 %v923_v6 }
  0x1e   : > { %936 = vmatpush.bf16.msra.mxu2 %v923_v6  ;;  %937 = vmatpush.bf16.msra.mxu3 %v923_v6 }
  0x21   : > { %419 = vmatpush.bf16.msra.mxu0 %v922_v7  ;;  %938 = vmatpush.bf16.msra.mxu1 %v922_v7 }
  0x22   : > { %939 = vmatpush.bf16.msra.mxu2 %v922_v7  ;;  %940 = vmatpush.bf16.msra.mxu3 %v922_v7 }
  0x25   : > { %420 = vmatpush.bf16.msra.mxu0 %v921_v8  ;;  %941 = vmatpush.bf16.msra.mxu1 %v921_v8 }
  0x26   : > { %942 = vmatpush.bf16.msra.mxu2 %v921_v8  ;;  %943 = vmatpush.bf16.msra.mxu3 %v921_v8 }
  0x29   : > { %421 = vmatpush.bf16.msra.mxu0 %v920_v9  ;;  %944 = vmatpush.bf16.msra.mxu1 %v920_v9 }
  0x2a   : > { %945 = vmatpush.bf16.msra.mxu2 %v920_v9  ;;  %946 = vmatpush.bf16.msra.mxu3 %v920_v9 }
  0x2c   : > { %885 = vmatmul.msk.bf16.vlgmr.msra.gmra.mxu0 %vm361_vm1, %v904_v10  ;;  %889 = vmatmul.msk.bf16.vlgmr.msra.gmra.mxu1 %vm361_vm1, %v908_v11 }
  0x2d   : > { %893 = vmatmul.msk.bf16.vlgmr.msra.gmra.mxu2 %vm361_vm1, %v912_v12  ;;  %897 = vmatmul.msk.bf16.vlgmr.msra.gmra.mxu3 %vm361_vm1, %v916_v13 }
  0x3c   : > { %886 = vmatmul.msk.bf16.gmra.mxu0 %vm361_vm1, %v905_v14  ;;  %890 = vmatmul.msk.bf16.gmra.mxu1 %vm361_vm1, %v909_v15 }
  0x3d   : > { %894 = vmatmul.msk.bf16.gmra.mxu2 %vm361_vm1, %v913_v16  ;;  %898 = vmatmul.msk.bf16.gmra.mxu3 %vm361_vm1, %v917_v17 }
  0x4c   : > { %887 = vmatmul.msk.bf16.gmra.mxu0 %vm361_vm1, %v906_v18  ;;  %891 = vmatmul.msk.bf16.gmra.mxu1 %vm361_vm1, %v910_v19 }
  0x4d   : > { %895 = vmatmul.msk.bf16.gmra.mxu2 %vm361_vm1, %v914_v20  ;;  %899 = vmatmul.msk.bf16.gmra.mxu3 %vm361_vm1, %v918_v21 }
  0x5c   : > { %888 = vmatmul.msk.bf16.gmra.mxu0 %vm361_vm1, %v907_v22  ;;  %892 = vmatmul.msk.bf16.gmra.mxu1 %vm361_vm1, %v911_v23 }
  0x5d   : > { %896 = vmatmul.msk.bf16.gmra.mxu2 %vm361_vm1, %v915_v24  ;;  %900 = vmatmul.msk.bf16.gmra.mxu3 %vm361_vm1, %v919_v25 }
  0xa9   : > { %v1067_v26 = vpop.f32.mrf.mxu0  ;;  %v1069_v27 = vpop.f32.mrf.mxu1 }
  0xaa   : > { %504 = vst.msk [vmem:[%s1065_s13] sm:$0xff] %vm503_vm2, %v1067_v26 }
  0xab   : > { %512 = vst.msk [vmem:[%s1065_s13 + $0x40] sm:$0xff] %vm503_vm2, %v1069_v27 }
  0xb0   : > { %v1077_v28 = vpop.f32.mrf.mxu2  ;;  %v1079_v29 = vpop.f32.mrf.mxu3 }
  0xb1   : > { %520 = vst.msk [vmem:[%s1065_s13 + $0x80] sm:$0xff] %vm503_vm2, %v1077_v28  ;;  %v1084_v30 = vpop.f32.mrf.mxu0  ;;  %v1086_v31 = vpop.f32.mrf.mxu1 }
  0xb2   : > { %528 = vst.msk [vmem:[%s1065_s13 + $0xc0] sm:$0xff] %vm503_vm2, %v1079_v29 }
  0xb3   : > { %505 = vst.msk [vmem:[%s1065_s13 + $0x8] sm:$0xff] %vm503_vm2, %v1084_v30 }
  0xb4   : > { %513 = vst.msk [vmem:[%s1065_s13 + $0x48] sm:$0xff] %vm503_vm2, %v1086_v31 }
  0xb8   : > { %v1097_v32 = vpop.f32.mrf.mxu2  ;;  %v1099_v33 = vpop.f32.mrf.mxu3 }
  0xb9   : > { %521 = vst.msk [vmem:[%s1065_s13 + $0x88] sm:$0xff] %vm503_vm2, %v1097_v32  ;;  %v1104_v34 = vpop.f32.mrf.mxu0  ;;  %v1106_v35 = vpop.f32.mrf.mxu1 }
  0xba   : > { %529 = vst.msk [vmem:[%s1065_s13 + $0xc8] sm:$0xff] %vm503_vm2, %v1099_v33 }
  0xbb   : > { %506 = vst.msk [vmem:[%s1065_s13 + $0x10] sm:$0xff] %vm503_vm2, %v1104_v34 }
  0xbc   : > { %514 = vst.msk [vmem:[%s1065_s13 + $0x50] sm:$0xff] %vm503_vm2, %v1106_v35 }
  0xc0   : > { %v1117_v36 = vpop.f32.mrf.mxu2  ;;  %v1119_v37 = vpop.f32.mrf.mxu3 }
  0xc1   : > { %522 = vst.msk [vmem:[%s1065_s13 + $0x90] sm:$0xff] %vm503_vm2, %v1117_v36  ;;  %v1124_v38 = vpop.f32.mrf.mxu0  ;;  %v1126_v39 = vpop.f32.mrf.mxu1 }
  0xc2   : > { %530 = vst.msk [vmem:[%s1065_s13 + $0xd0] sm:$0xff] %vm503_vm2, %v1119_v37 }
  0xc3   : > { %507 = vst.msk [vmem:[%s1065_s13 + $0x18] sm:$0xff] %vm503_vm2, %v1124_v38 }
  0xc4   : > { %515 = vst.msk [vmem:[%s1065_s13 + $0x58] sm:$0xff] %vm503_vm2, %v1126_v39 }
  0xc8   : > { %v1137_v40 = vpop.f32.mrf.mxu2  ;;  %v1139_v41 = vpop.f32.mrf.mxu3 }
  0xc9   : > { %523 = vst.msk [vmem:[%s1065_s13 + $0x98] sm:$0xff] %vm503_vm2, %v1137_v40  ;;  %v433_v42 = vpop.f32.mrf.mxu0  ;;  %v1144_v43 = vpop.f32.mrf.mxu1 }
  0xca   : > { %531 = vst.msk [vmem:[%s1065_s13 + $0xd8] sm:$0xff] %vm503_vm2, %v1139_v41 }
  0xcb   : > { %508 = vst.msk [vmem:[%s1065_s13 + $0x20] sm:$0xff] %vm503_vm2, %v433_v42 }
  0xcc   : > { %516 = vst.msk [vmem:[%s1065_s13 + $0x60] sm:$0xff] %vm503_vm2, %v1144_v43 }
  0xd0   : > { %v1154_v44 = vpop.f32.mrf.mxu2  ;;  %v1156_v45 = vpop.f32.mrf.mxu3 }
  0xd1   : > { %524 = vst.msk [vmem:[%s1065_s13 + $0xa0] sm:$0xff] %vm503_vm2, %v1154_v44  ;;  %v435_v46 = vpop.f32.mrf.mxu0  ;;  %v1161_v47 = vpop.f32.mrf.mxu1 }
  0xd2   : > { %532 = vst.msk [vmem:[%s1065_s13 + $0xe0] sm:$0xff] %vm503_vm2, %v1156_v45 }
  0xd3   : > { %509 = vst.msk [vmem:[%s1065_s13 + $0x28] sm:$0xff] %vm503_vm2, %v435_v46 }
  0xd4   : > { %517 = vst.msk [vmem:[%s1065_s13 + $0x68] sm:$0xff] %vm503_vm2, %v1161_v47 }
  0xd8   : > { %v1171_v48 = vpop.f32.mrf.mxu2  ;;  %v1173_v49 = vpop.f32.mrf.mxu3 }
  0xd9   : > { %525 = vst.msk [vmem:[%s1065_s13 + $0xa8] sm:$0xff] %vm503_vm2, %v1171_v48  ;;  %v438_v50 = vpop.f32.mrf.mxu0  ;;  %v1178_v51 = vpop.f32.mrf.mxu1 }
  0xda   : > { %533 = vst.msk [vmem:[%s1065_s13 + $0xe8] sm:$0xff] %vm503_vm2, %v1173_v49 }
  0xdb   : > { %510 = vst.msk [vmem:[%s1065_s13 + $0x30] sm:$0xff] %vm503_vm2, %v438_v50 }
  0xdc   : > { %518 = vst.msk [vmem:[%s1065_s13 + $0x70] sm:$0xff] %vm503_vm2, %v1178_v51 }
  0xe0   : > { %v1188_v52 = vpop.f32.mrf.mxu2  ;;  %v1190_v53 = vpop.f32.mrf.mxu3 }
  0xe1   : > { %526 = vst.msk [vmem:[%s1065_s13 + $0xb0] sm:$0xff] %vm503_vm2, %v1188_v52  ;;  %v440_v54 = vpop.f32.mrf.mxu0  ;;  %v1195_v55 = vpop.f32.mrf.mxu1 }
  0xe2   : > { %534 = vst.msk [vmem:[%s1065_s13 + $0xf0] sm:$0xff] %vm503_vm2, %v1190_v53 }
  0xe3   : > { %511 = vst.msk [vmem:[%s1065_s13 + $0x38] sm:$0xff] %vm503_vm2, %v440_v54 }
  0xe4   : > { %519 = vst.msk [vmem:[%s1065_s13 + $0x78] sm:$0xff] %vm503_vm2, %v1195_v55 }
  0xe6   : > { %539 = sbr.rel (%p901_p4) target bundleno = 238 (0xee), region = 32 }
  0xe8   : > { %v1205_v56 = vpop.f32.mrf.mxu2  ;;  %v1207_v57 = vpop.f32.mrf.mxu3 }
  0xe9   : > { %527 = vst.msk [vmem:[%s1065_s13 + $0xb8] sm:$0xff] %vm503_vm2, %v1205_v56 }
  0xea   : > { %535 = vst.msk [vmem:[%s1065_s13 + $0xf8] sm:$0xff] %vm503_vm2, %v1207_v57 }
  0xeb   : > { %vm540_vm3 = vcmask 516096   ;;  %v964_v58 = vmov 0.0  }
  0xec   : > { %541 = vst.msk [vmem:[%s1389_s3] sm:$0x1] %vm540_vm3, %v964_v58 }
  0xed   : > { %542 = vst.msk [vmem:[%s1390_s4] sm:$0x1] %vm540_vm3, %v964_v58 }
  0xee PF: > { %v544_v59 = vsel %vm503_vm2, %v1067_v26, 0.0  ;;  %v545_v60 = vsel %vm503_vm2, %v1084_v30, 0.0  ;;  %v547_v61 = vsel %vm503_vm2, %v1104_v34, 0.0  ;;  %v549_v63 = vsel %vm503_vm2, %v1124_v38, 0.0 }
  0xef   : > { %v546_v62 = vadd.f32 %v545_v60, %v544_v59  ;;  %v551_v1 = vsel %vm503_vm2, %v433_v42, 0.0  ;;  %v553_v3 = vsel %vm503_vm2, %v435_v46, 0.0  ;;  %v555_v5 = vsel %vm503_vm2, %v438_v50, 0.0 }
  0xf0   : > { %v617_v6 = vmul.f32 %v1067_v26, %v1067_v26  ;;  %v618_v8 = vmul.f32 %v1084_v30, %v1084_v30  ;;  %v619_v9 = vmul.f32 %v1104_v34, %v1104_v34  ;;  %v557_v10 = vsel %vm503_vm2, %v440_v54, 0.0 }
  0xf1   : > { %v548_v0 = vadd.f32 %v547_v61, %v546_v62  ;;  %v620_v12 = vmul.f32 %v1124_v38, %v1124_v38  ;;  %v559_v13 = vsel %vm503_vm2, %v1069_v27, 0.0  ;;  %v621_v16 = vmul.f32 %v433_v42, %v433_v42 }
  0xf2   : > { %v649_v14 = vsel %vm503_vm2, %v617_v6, 0.0  ;;  %v650_v17 = vsel %vm503_vm2, %v618_v8, 0.0  ;;  %v652_v18 = vsel %vm503_vm2, %v619_v9, 0.0  ;;  %v561_v19 = vsel %vm503_vm2, %v1086_v31, 0.0 }
  0xf3   : > { %v550_v2 = vadd.f32 %v549_v63, %v548_v0  ;;  %v651_v20 = vadd.f32 %v650_v17, %v649_v14  ;;  %v622_v22 = vmul.f32 %v435_v46, %v435_v46  ;;  %v654_v23 = vsel %vm503_vm2, %v620_v12, 0.0 }
  0xf4   : > { %v563_v24 = vsel %vm503_vm2, %v1106_v35, 0.0  ;;  %v623_v30 = vmul.f32 %v438_v50, %v438_v50  ;;  %v656_v34 = vsel %vm503_vm2, %v621_v16, 0.0  ;;  %v565_v38 = vsel %vm503_vm2, %v1126_v39, 0.0 }
  0xf5   : > { %v552_v4 = vadd.f32 %v551_v1, %v550_v2  ;;  %v653_v25 = vadd.f32 %v652_v18, %v651_v20  ;;  %v624_v59 = vmul.f32 %v440_v54, %v440_v54  ;;  %v658_v60 = vsel %vm503_vm2, %v622_v22, 0.0 }
  0xf6   : > { %v567_v46 = vsel %vm503_vm2, %v1144_v43, 0.0  ;;  %v625_v63 = vmul.f32 %v1069_v27, %v1069_v27  ;;  %v660_v50 = vsel %vm503_vm2, %v623_v30, 0.0  ;;  %v569_v0 = vsel %vm503_vm2, %v1161_v47, 0.0 }
  0xf7   : > { %v554_v7 = vadd.f32 %v553_v3, %v552_v4  ;;  %v655_v42 = vadd.f32 %v654_v23, %v653_v25  ;;  %v626_v54 = vmul.f32 %v1086_v31, %v1086_v31  ;;  %v662_v3 = vsel %vm503_vm2, %v624_v59, 0.0 }
  0xf8   : > { %v571_v4 = vsel %vm503_vm2, %v1178_v51, 0.0  ;;  %v627_v27 = vmul.f32 %v1106_v35, %v1106_v35  ;;  %v573_v8 = vsel %vm503_vm2, %v1195_v55, 0.0  ;;  %v628_v31 = vmul.f32 %v1126_v39, %v1126_v39 }
  0xf9   : > { %v556_v11 = vadd.f32 %v555_v5, %v554_v7  ;;  %v657_v61 = vadd.f32 %v656_v34, %v655_v42  ;;  %v664_v7 = vsel %vm503_vm2, %v625_v63, 0.0  ;;  %v575_v12 = vsel %vm503_vm2, %v1077_v28, 0.0 }
  0xfa   : > { %v629_v35 = vmul.f32 %v1144_v43, %v1144_v43  ;;  %v577_v16 = vsel %vm503_vm2, %v1097_v32, 0.0  ;;  %v630_v39 = vmul.f32 %v1161_v47, %v1161_v47  ;;  %v579_v20 = vsel %vm503_vm2, %v1117_v36, 0.0 }
  0xfb   : > { %v558_v15 = vadd.f32 %v557_v10, %v556_v11  ;;  %v659_v1 = vadd.f32 %v658_v60, %v657_v61  ;;  %v666_v11 = vsel %vm503_vm2, %v626_v54, 0.0  ;;  %v631_v43 = vmul.f32 %v1178_v51, %v1178_v51 }
  0xfc   : > { %v672_v23 = vsel %vm503_vm2, %v629_v35, 0.0  ;;  %v632_v47 = vmul.f32 %v1195_v55, %v1195_v55  ;;  %v674_v30 = vsel %vm503_vm2, %v630_v39, 0.0  ;;  %v583_v34 = vsel %vm503_vm2, %v1154_v44, 0.0 }
  0xfd   : > { %v560_v21 = vadd.f32 %v559_v13, %v558_v15  ;;  %v661_v5 = vadd.f32 %v660_v50, %v659_v1  ;;  %v668_v15 = vsel %vm503_vm2, %v627_v27, 0.0  ;;  %v633_v51 = vmul.f32 %v1077_v28, %v1077_v28 }
  0xfe   : > { %v585_v59 = vsel %vm503_vm2, %v1171_v48, 0.0  ;;  %v634_v55 = vmul.f32 %v1097_v32, %v1097_v32  ;;  %v678_v61 = vsel %vm503_vm2, %v632_v47, 0.0  ;;  %v635_v28 = vmul.f32 %v1117_v36, %v1117_v36 }
  0xff   : > { %v562_v26 = vadd.f32 %v561_v19, %v560_v21  ;;  %v663_v9 = vadd.f32 %v662_v3, %v661_v5  ;;  %v670_v19 = vsel %vm503_vm2, %v628_v31, 0.0  ;;  %v589_v1 = vsel %vm503_vm2, %v1205_v56, 0.0 }
 0x100   : > { %v636_v32 = vmul.f32 %v1137_v40, %v1137_v40  ;;  %v682_v3 = vsel %vm503_vm2, %v634_v55, 0.0  ;;  %v637_v36 = vmul.f32 %v1154_v44, %v1154_v44  ;;  %v684_v27 = vsel %vm503_vm2, %v635_v28, 0.0 }
 0x101   : > { %v564_v58 = vadd.f32 %v563_v24, %v562_v26  ;;  %v665_v13 = vadd.f32 %v664_v7, %v663_v9  ;;  %v581_v24 = vsel %vm503_vm2, %v1137_v40, 0.0  ;;  %v593_v7 = vsel %vm503_vm2, %v1099_v33, 0.0 }
 0x102   : > { %v638_v40 = vmul.f32 %v1171_v48, %v1171_v48  ;;  %v595_v31 = vsel %vm503_vm2, %v1119_v37, 0.0  ;;  %v639_v44 = vmul.f32 %v1188_v52, %v1188_v52  ;;  %v640_v48 = vmul.f32 %v1205_v56, %v1205_v56 }
 0x103   : > { %v566_v62 = vadd.f32 %v565_v38, %v564_v58  ;;  %v667_v17 = vadd.f32 %v666_v11, %v665_v13  ;;  %v676_v58 = vsel %vm503_vm2, %v631_v43, 0.0  ;;  %v688_v13 = vsel %vm503_vm2, %v637_v36, 0.0 }
 0x104   : > { %v642_v56 = vmul.f32 %v1099_v33, %v1099_v33  ;;  %v694_v43 = vsel %vm503_vm2, %v640_v48, 0.0  ;;  %v605_v47 = vsel %vm503_vm2, %v1207_v57, 0.0  ;;  %v644_v33 = vmul.f32 %v1139_v41, %v1139_v41 }
 0x105   : > { %v568_v2 = vadd.f32 %v567_v46, %v566_v62  ;;  %v669_v21 = vadd.f32 %v668_v15, %v667_v17  ;;  %v587_v62 = vsel %vm503_vm2, %v1188_v52, 0.0  ;;  %v599_v17 = vsel %vm503_vm2, %v1156_v45, 0.0 }
 0x106   : > { %v641_v52 = vmul.f32 %v1079_v29, %v1079_v29  ;;  %v702_v55 = vsel %vm503_vm2, %v644_v33, 0.0  ;;  %vm614_vm4 = vcmask 516096  }
 0x107   : > { %v570_v6 = vadd.f32 %v569_v0, %v568_v2  ;;  %v671_v25 = vadd.f32 %v670_v19, %v669_v21  ;;  %v680_v0 = vsel %vm503_vm2, %v633_v51, 0.0  ;;  %v692_v19 = vsel %vm503_vm2, %v639_v44, 0.0 }
 0x109   : > { %v572_v10 = vadd.f32 %v571_v4, %v570_v6  ;;  %v673_v38 = vadd.f32 %v672_v23, %v671_v25  ;;  %v591_v4 = vsel %vm503_vm2, %v1079_v29, 0.0  ;;  %v603_v23 = vsel %vm503_vm2, %v1190_v53, 0.0 }
 0x10a   : > { %v643_v29 = vmul.f32 %v1119_v37, %v1119_v37 }
 0x10b   : > { %v574_v14 = vadd.f32 %v573_v8, %v572_v10  ;;  %v675_v60 = vadd.f32 %v674_v30, %v673_v38  ;;  %v686_v10 = vsel %vm503_vm2, %v636_v32, 0.0  ;;  %v698_v38 = vsel %vm503_vm2, %v642_v56, 0.0 }
 0x10d   : > { %v576_v18 = vadd.f32 %v575_v12, %v574_v14  ;;  %v677_v63 = vadd.f32 %v676_v58, %v675_v60  ;;  %v597_v14 = vsel %vm503_vm2, %v1139_v41, 0.0  ;;  %v645_v58 = vmul.f32 %v1156_v45, %v1156_v45 }
 0x10e   : > { %v647_v41 = vmul.f32 %v1190_v53, %v1190_v53  ;;  %v648_v45 = vmul.f32 %v1207_v57, %v1207_v57  ;;  %v543_v53 = vld [vmem:[%s1389_s3] sm:$0x1] }
 0x10f   : > { %v578_v22 = vadd.f32 %v577_v16, %v576_v18  ;;  %v679_v2 = vadd.f32 %v678_v61, %v677_v63  ;;  %v690_v16 = vsel %vm503_vm2, %v638_v40, 0.0  ;;  %v704_v63 = vsel %vm503_vm2, %v645_v58, 0.0  ;;  %v616_v40 = vld [vmem:[%s1390_s4] sm:$0x1] }
 0x111   : > { %v580_v26 = vadd.f32 %v579_v20, %v578_v22  ;;  %v681_v5 = vadd.f32 %v680_v0, %v679_v2  ;;  %v601_v20 = vsel %vm503_vm2, %v1173_v49, 0.0 }
 0x113   : > { %v582_v42 = vadd.f32 %v581_v24, %v580_v26  ;;  %v683_v8 = vadd.f32 %v682_v3, %v681_v5  ;;  %v696_v26 = vsel %vm503_vm2, %v641_v52, 0.0  ;;  %v710_v3 = vsel %vm503_vm2, %v648_v45, 0.0 }
 0x115   : > { %v584_v46 = vadd.f32 %v583_v34, %v582_v42  ;;  %v685_v11 = vadd.f32 %v684_v27, %v683_v8 }
 0x117   : > { %v586_v50 = vadd.f32 %v585_v59, %v584_v46  ;;  %v687_v35 = vadd.f32 %v686_v10, %v685_v11  ;;  %v700_v59 = vsel %vm503_vm2, %v643_v29, 0.0  ;;  %v646_v46 = vmul.f32 %v1173_v49, %v1173_v49 }
 0x118   : > { %v708_v49 = vsel %vm503_vm2, %v647_v41, 0.0 }
 0x119   : > { %v588_v54 = vadd.f32 %v587_v62, %v586_v50  ;;  %v689_v18 = vadd.f32 %v688_v13, %v687_v35  ;;  %v706_v0 = vsel %vm503_vm2, %v646_v46, 0.0 }
 0x11b   : > { %v590_v6 = vadd.f32 %v589_v1, %v588_v54  ;;  %v691_v21 = vadd.f32 %v690_v16, %v689_v18 }
 0x11d   : > { %v592_v9 = vadd.f32 %v591_v4, %v590_v6  ;;  %v693_v24 = vadd.f32 %v692_v19, %v691_v21 }
 0x11f   : > { %v594_v12 = vadd.f32 %v593_v7, %v592_v9  ;;  %v695_v30 = vadd.f32 %v694_v43, %v693_v24 }
 0x121   : > { %v596_v15 = vadd.f32 %v595_v31, %v594_v12  ;;  %v697_v42 = vadd.f32 %v696_v26, %v695_v30 }
 0x123   : > { %v598_v39 = vadd.f32 %v597_v14, %v596_v15  ;;  %v699_v37 = vadd.f32 %v698_v38, %v697_v42 }
 0x125   : > { %v600_v22 = vadd.f32 %v599_v17, %v598_v39  ;;  %v701_v61 = vadd.f32 %v700_v59, %v699_v37 }
 0x127   : > { %v602_v25 = vadd.f32 %v601_v20, %v600_v22  ;;  %v703_v50 = vadd.f32 %v702_v55, %v701_v61 }
 0x129   : > { %v604_v34 = vadd.f32 %v603_v23, %v602_v25  ;;  %v705_v1 = vadd.f32 %v704_v63, %v703_v50 }
 0x12b   : > { %v606_v51 = vadd.f32 %v605_v47, %v604_v34  ;;  %v707_v54 = vadd.f32 %v706_v0, %v705_v1 }
 0x12d   : > { %v607_v60 = vrot.slane %v606_v51, 4  ;;  %v709_v4 = vadd.f32 %v708_v49, %v707_v54 }
 0x12f   : > { %v608_v62 = vadd.f32 %v607_v60, %v606_v51  ;;  %v711_v6 = vadd.f32 %v710_v3, %v709_v4 }
 0x131   : > { %v609_v28 = vrot.slane %v608_v62, 2  ;;  %v712_v57 = vrot.slane %v711_v6, 4 }
 0x133   : > { %v610_v2 = vadd.f32 %v609_v28, %v608_v62  ;;  %v713_v27 = vadd.f32 %v712_v57, %v711_v6 }
 0x135   : > { %v611_v32 = vrot.slane %v610_v2, 1  ;;  %v714_v7 = vrot.slane %v713_v27, 2 }
 0x137   : > { %v612_v5 = vadd.f32 %v611_v32, %v610_v2  ;;  %v715_v8 = vadd.f32 %v714_v7, %v713_v27 }
 0x139   : > { %v613_v36 = vadd.f32 %v612_v5, %v543_v53  ;;  %v716_v9 = vrot.slane %v715_v8, 1 }
 0x13b   : > { %615 = vst.msk [vmem:[%s1389_s3] sm:$0x1] %vm614_vm4, %v613_v36  ;;  %v717_v10 = vadd.f32 %v716_v9, %v715_v8 }
 0x13d   : > { %v718_v31 = vadd.f32 %v717_v10, %v616_v40 }
 0x13f   : > { %719 = vst.msk [vmem:[%s1390_s4] sm:$0x1] %vm614_vm4, %v718_v31 }
 0x140 PF: > { %s15_s15 = sadd.s32 1, %s962_s15  }
 0x141   : > { %p12_p5 = scmp.ge.s32.totalorder %s15_s15, 4  }
 0x143   :  { %14 = sbr.rel (!%p12_p5) target bundleno = 1 (0x1), region = 78 }

// kernel: bottleneck_forward_pallas.47
= control target key start
LH: loop header
LB: loop body
LE: loop exit
PB: predicated region body
PF: predicated region fallthrough
CT: control target
= control target key end

     0   :  { %11 = vsyncpa [#allocation3], 0  ;;  %s1096_s0 = inlined_call_operand.vmem [shape: f32[512,64], index: 0, kind: input, shape index: {}]   ;;  %s1097_s1 = inlined_call_operand.vmem [shape: f32[1,64], index: 1, kind: input, shape index: {}]   ;;  %s1098_s2 = inlined_call_operand.vmem [shape: f32[1,64], index: 2, kind: input, shape index: {}]   ;;  %s1099_s3 = inlined_call_operand.vmem [shape: f32[1,64], index: 3, kind: input, shape index: {}]   ;;  %s1100_s4 = inlined_call_operand.vmem [shape: f32[1,64], index: 4, kind: input, shape index: {}]   ;;  %s1101_s5 = inlined_call_operand.vmem [shape: f32[512,64], index: 5, kind: input, shape index: {}]   ;;  %s1102_s6 = inlined_call_operand.hbm [shape: f32[512,64], index: 6, kind: output, shape index: {}]  }
   0x1   :  { %13 = vsyncpa [#allocation3 + $0x1], 0  ;;  %s778_s21 = smov 0   ;;  %s780_s22 = smov 0  }
   0x2   :  { %s782_s23 = smov 0   ;;  %s784_s24 = smov 0  }
   0x3 LB: > { %s799_s25 = sadd.s32 4294967295, %s739_s24   ;;  %s619_s26 = sadd.s32 4294967294, %s739_s24   ;;  %s739_s24 = sphi %s784_s24, %s1108_s24   ;;  %s735_s23 = sphi %s782_s23, %s1107_s23   ;;  %s731_s22 = sphi %s780_s22, %s1106_s22   ;;  %s727_s21 = sphi %s778_s21, %s1105_s21  }
   0x4   : > { %s803_s27 = sadd.s32 1, %s739_s24   ;;  %s162_s28 = sadd.s32 1, %s735_s23 }
   0x5   : > { %s159_s29 = ssub.s32 %s739_s24, %s803_s27  ;;  %p172_p0 = scmp.ne.s32.totalorder %s735_s23, %s731_s22 }
   0x6   : > { %p160_p1 = scmp.eq.s32.totalorder %s159_s29, 0  ;;  %p173_p2 = scmp.eq.s32.totalorder %s799_s25, 1 }
   0x7   : > { %p178_p3 = scmp.ne.s32.totalorder %s731_s22, %s727_s21  ;;  %p179_p4 = scmp.eq.s32.totalorder %s619_s26, 1 }
   0x8   : > { %s814_s30 = scalar_select %p160_p1, %s735_s23, %s162_s28  }
   0x9   : > { %p816_p5 = por %p173_p2, %p172_p0  ;;  %p820_p6 = por %p179_p4, %p178_p3 }
   0xa   : > { %p622_p7 = scmp.ge.s32.totalorder %s739_s24, 1  ;;  %p227_p8 = scmp.lt.s32.totalorder %s739_s24, 3 }
   0xc   : > { %p228_p9 = pnand %p622_p7, %p227_p8 }
   0xd   : > { %s624_s13 = sshll.u32 (!%p228_p9), %s799_s25, 5  ;;  %s259_s10 = sand.u32 (!%p228_p9), 1, %s731_s22  }
   0xe   : > { %231 = sbr.rel (%p228_p9) target bundleno = 97 (0x61), region = 44  ;;  %p263_p10 = scmp.lt.s32.totalorder (!%p228_p9), %s624_s13, 63 }
   0xf   : > { %s889_s11 = sshll.u32 (!%p228_p9), %s259_s10, 8  ;;  %s530_s18 = scalar_lea.sflag (!%p228_p9), [#allocation3], %s259_s10 }
  0x10   : > { %s912_s12 = scalar_lea.vmem (!%p228_p9), [#allocation2], %s889_s11  ;;  %s697_s29 = scalar_lea.hbm (!%p228_p9), %s1102_s6, 512 }
  0x11   : > { %s542_s16 = sshll.u32 (!%p228_p9), %s912_s12, 4  ;;  %s543_s16 = int_to_ptr.vmem [resolvable:$true] %s542_s16 }
  0x13   : > { %v275_v0 = vld [vmem:[%s1097_s1] sm:$0x1]  ;;  %s1110_s13 = smov (!%p263_p10, %s624_s13), 63  ;;  %vm496_vm3 = vcmask 523264  }
  0x14   : > { %v277_v1 = vld [vmem:[%s1098_s2] sm:$0x1]  ;;  %v276_v2 = vmul.f32 0.001953125, %v275_v0  ;;  %s625_s14 = sshll.u32 %s1110_s13, 3  ;;  %s633_s13 = sshll.u32 %s799_s25, 8 }
  0x15   : > { %v278_v3 = vmul.f32 0.001953125, %v277_v1  ;;  %s836_s17 = scalar_lea.vmem %s1096_s0, %s625_s14  ;;  %v282_v13 = vld [vmem:[%s1099_s3] sm:$0x1]  ;;  %s857_s9 = scalar_lea.vmem %s1101_s5, %s625_s14 }
  0x16   : > { %v279_v4 = vmul.f32 %v276_v2, %v276_v2  ;;  %v295_v17 = vld [vmem:[%s1100_s4] sm:$0x1]  ;;  %v299_v19 = vld [vmem:[%s836_s17 + $0x8] sm:$0xff]  ;;  %v300_v20 = vld [vmem:[%s836_s17 + $0x10] sm:$0xff]  ;;  %s541_s15 = scalar_lea.hbm %s1102_s6, %s633_s13 }
  0x17   : > { %v298_v18 = vld [vmem:[%s836_s17] sm:$0xff]  ;;  %v301_v21 = vld [vmem:[%s836_s17 + $0x18] sm:$0xff]  ;;  %v303_v25 = vld [vmem:[%s836_s17 + $0x28] sm:$0xff] }
  0x18   : > { %v280_v5 = vsub.f32 %v278_v3, %v279_v4  ;;  %v302_v22 = vld [vmem:[%s836_s17 + $0x20] sm:$0xff]  ;;  %v304_v26 = vld [vmem:[%s836_s17 + $0x30] sm:$0xff]  ;;  %v305_v27 = vld [vmem:[%s836_s17 + $0x38] sm:$0xff] }
  0x19   : > { %v306_v28 = vld [vmem:[%s836_s17 + $0x40] sm:$0xff]  ;;  %v307_v29 = vld [vmem:[%s836_s17 + $0x48] sm:$0xff]  ;;  %v308_v30 = vld [vmem:[%s836_s17 + $0x50] sm:$0xff] }
  0x1a   : > { %v281_v6 = vmax.f32 %v280_v5, 0.0  ;;  %v309_v35 = vld [vmem:[%s836_s17 + $0x58] sm:$0xff]  ;;  %v310_v36 = vld [vmem:[%s836_s17 + $0x60] sm:$0xff]  ;;  %v311_v37 = vld [vmem:[%s836_s17 + $0x68] sm:$0xff] }
  0x1b   : > { %v400_v43 = vld [vmem:[%s857_s9] sm:$0xff]  ;;  %v401_v44 = vld [vmem:[%s857_s9 + $0x8] sm:$0xff]  ;;  %v402_v48 = vld [vmem:[%s857_s9 + $0x10] sm:$0xff] }
  0x1c   : > { %v283_v7 = vadd.f32 1e-05, %v281_v6  ;;  %v403_v49 = vld [vmem:[%s857_s9 + $0x18] sm:$0xff]  ;;  %v404_v50 = vld [vmem:[%s857_s9 + $0x20] sm:$0xff]  ;;  %v405_v59 = vld [vmem:[%s857_s9 + $0x28] sm:$0xff] }
  0x1d   : > { %v406_v60 = vld [vmem:[%s857_s9 + $0x30] sm:$0xff]  ;;  %v407_v61 = vld [vmem:[%s857_s9 + $0x38] sm:$0xff] }
  0x1e   : > { %675 = vrsqrt.f32 %v283_v7  ;;  %vm290_vm0 = vweird.f32 %v283_v7 }
  0x24   : > { %v676_v8 = vpop.eup %675 }
  0x25   : > { %v285_v9 = vmul.f32 %v676_v8, %v283_v7  ;;  %vm291_vm1 = vweird.f32 %v676_v8 }
  0x26   : > { %vm292_vm2 = vmor %vm290_vm0, %vm291_vm1 }
  0x27   : > { %v286_v10 = vmul.f32 %v676_v8, %v285_v9 }
  0x29   : > { %v287_v11 = vmul.f32 0.5, %v286_v10  ;;  %v408_v10 = vld [vmem:[%s857_s9 + $0x40] sm:$0xff] }
  0x2b   : > { %v288_v12 = vsub.f32 1.5, %v287_v11  ;;  %v409_v11 = vld [vmem:[%s857_s9 + $0x48] sm:$0xff] }
  0x2d   : > { %v289_v14 = vmul.f32 %v676_v8, %v288_v12 }
  0x2f   : > { %v293_v15 = vsel %vm292_vm2, %v676_v8, %v289_v14 }
  0x30   : > { %v294_v16 = vmul.f32 %v293_v15, %v282_v13 }
  0x32   : > { %v296_v23 = vmul.f32 %v294_v16, %v276_v2  ;;  %v849_v24 = vperm.slane %v294_v16, 0  ;;  %v312_v16 = vld [vmem:[%s836_s17 + $0x70] sm:$0xff] }
  0x34   : > { %v297_v31 = vsub.f32 %v295_v17, %v296_v23  ;;  %v333_v32 = vmul.f32 %v849_v24, %v298_v18  ;;  %v334_v33 = vmul.f32 %v849_v24, %v299_v19  ;;  %v335_v34 = vmul.f32 %v849_v24, %v300_v20  ;;  %v313_v17 = vld [vmem:[%s836_s17 + $0x78] sm:$0xff] }
  0x35   : > { %v336_v38 = vmul.f32 %v849_v24, %v301_v21  ;;  %v337_v39 = vmul.f32 %v849_v24, %v302_v22  ;;  %v338_v40 = vmul.f32 %v849_v24, %v303_v25  ;;  %v339_v41 = vmul.f32 %v849_v24, %v304_v26  ;;  %v410_v22 = vld [vmem:[%s857_s9 + $0x50] sm:$0xff]  ;;  %v411_v23 = vld [vmem:[%s857_s9 + $0x58] sm:$0xff] }
  0x36   : > { %v873_v42 = vperm.slane %v297_v31, 0  ;;  %v340_v45 = vmul.f32 %v849_v24, %v305_v27  ;;  %v341_v46 = vmul.f32 %v849_v24, %v306_v28  ;;  %v342_v47 = vmul.f32 %v849_v24, %v307_v29  ;;  %v412_v29 = vld [vmem:[%s857_s9 + $0x60] sm:$0xff] }
  0x37   : > { %v343_v51 = vmul.f32 %v849_v24, %v308_v30  ;;  %v344_v52 = vmul.f32 %v849_v24, %v309_v35  ;;  %v345_v53 = vmul.f32 %v849_v24, %v310_v36  ;;  %v346_v54 = vmul.f32 %v849_v24, %v311_v37  ;;  %v413_v30 = vld [vmem:[%s857_s9 + $0x68] sm:$0xff]  ;;  %v314_v35 = vld [vmem:[%s836_s17 + $0x80] sm:$0xff] }
  0x38   : > { %v368_v55 = vadd.f32 %v873_v42, %v333_v32  ;;  %v369_v56 = vadd.f32 %v873_v42, %v334_v33  ;;  %v370_v57 = vadd.f32 %v873_v42, %v335_v34  ;;  %v371_v58 = vadd.f32 %v873_v42, %v336_v38 }
  0x39   : > { %v372_v62 = vadd.f32 %v873_v42, %v337_v39  ;;  %v373_v63 = vadd.f32 %v873_v42, %v338_v40  ;;  %v374_v0 = vadd.f32 %v873_v42, %v339_v41  ;;  %v375_v1 = vadd.f32 %v873_v42, %v340_v45  ;;  %v414_v40 = vld [vmem:[%s857_s9 + $0x70] sm:$0xff]  ;;  %v415_v41 = vld [vmem:[%s857_s9 + $0x78] sm:$0xff] }
  0x3a   : > { %v432_v2 = vadd.f32 %v400_v43, %v368_v55  ;;  %v433_v3 = vadd.f32 %v401_v44, %v369_v56  ;;  %v434_v4 = vadd.f32 %v402_v48, %v370_v57  ;;  %v435_v5 = vadd.f32 %v403_v49, %v371_v58  ;;  %v315_v43 = vld [vmem:[%s836_s17 + $0x88] sm:$0xff]  ;;  %v316_v48 = vld [vmem:[%s836_s17 + $0x90] sm:$0xff]  ;;  %v317_v49 = vld [vmem:[%s836_s17 + $0x98] sm:$0xff] }
  0x3b   : > { %v436_v6 = vadd.f32 %v404_v50, %v372_v62  ;;  %v437_v7 = vadd.f32 %v405_v59, %v373_v63  ;;  %v438_v8 = vadd.f32 %v406_v60, %v374_v0  ;;  %v902_v9 = vadd.f32 %v407_v61, %v375_v1  ;;  %v318_v50 = vld [vmem:[%s836_s17 + $0xa0] sm:$0xff]  ;;  %v319_v55 = vld [vmem:[%s836_s17 + $0xa8] sm:$0xff]  ;;  %v320_v1 = vld [vmem:[%s836_s17 + $0xb0] sm:$0xff] }
  0x3c   : > { %v464_v12 = vmax.f32 %v432_v2, 0.0  ;;  %v465_v13 = vmax.f32 %v433_v3, 0.0  ;;  %v466_v14 = vmax.f32 %v434_v4, 0.0  ;;  %v467_v15 = vmax.f32 %v435_v5, 0.0  ;;  %v416_v61 = vld [vmem:[%s857_s9 + $0x80] sm:$0xff]  ;;  %v321_v2 = vld [vmem:[%s836_s17 + $0xb8] sm:$0xff] }
  0x3d   : > { %v468_v18 = vmax.f32 %v436_v6, 0.0  ;;  %v469_v19 = vmax.f32 %v437_v7, 0.0  ;;  %v470_v20 = vmax.f32 %v438_v8, 0.0  ;;  %v471_v21 = vmax.f32 %v902_v9, 0.0  ;;  %v417_v5 = vld [vmem:[%s857_s9 + $0x88] sm:$0xff]  ;;  %v418_v6 = vld [vmem:[%s857_s9 + $0x90] sm:$0xff] }
  0x3e   : > { %497 = vst.msk [vmem:[%s912_s12] sm:$0xff] %vm496_vm3, %v464_v12  ;;  %v376_v25 = vadd.f32 %v873_v42, %v341_v46  ;;  %v377_v26 = vadd.f32 %v873_v42, %v342_v47  ;;  %v378_v27 = vadd.f32 %v873_v42, %v343_v51  ;;  %v379_v28 = vadd.f32 %v873_v42, %v344_v52  ;;  %v419_v7 = vld [vmem:[%s857_s9 + $0x98] sm:$0xff] }
  0x3f   : > { %498 = vst.msk [vmem:[%s912_s12 + $0x8] sm:$0xff] %vm496_vm3, %v465_v13  ;;  %v380_v31 = vadd.f32 %v873_v42, %v345_v53  ;;  %v381_v32 = vadd.f32 %v873_v42, %v346_v54  ;;  %v347_v33 = vmul.f32 %v849_v24, %v312_v16  ;;  %v348_v34 = vmul.f32 %v849_v24, %v313_v17 }
  0x40   : > { %499 = vst.msk [vmem:[%s912_s12 + $0x10] sm:$0xff] %vm496_vm3, %v466_v14  ;;  %v440_v36 = vadd.f32 %v408_v10, %v376_v25  ;;  %v441_v37 = vadd.f32 %v409_v11, %v377_v26  ;;  %v442_v38 = vadd.f32 %v410_v22, %v378_v27  ;;  %v443_v39 = vadd.f32 %v411_v23, %v379_v28  ;;  %v420_v14 = vld [vmem:[%s857_s9 + $0xa0] sm:$0xff]  ;;  %v422_v25 = vld [vmem:[%s857_s9 + $0xb0] sm:$0xff] }
  0x41   : > { %500 = vst.msk [vmem:[%s912_s12 + $0x18] sm:$0xff] %vm496_vm3, %v467_v15  ;;  %v444_v44 = vadd.f32 %v412_v29, %v380_v31  ;;  %v936_v45 = vadd.f32 %v413_v30, %v381_v32  ;;  %v382_v46 = vadd.f32 %v873_v42, %v347_v33  ;;  %v383_v47 = vadd.f32 %v873_v42, %v348_v34  ;;  %v421_v15 = vld [vmem:[%s857_s9 + $0xa8] sm:$0xff]  ;;  %v322_v26 = vld [vmem:[%s836_s17 + $0xc0] sm:$0xff]  ;;  %v324_v32 = vld [vmem:[%s836_s17 + $0xd0] sm:$0xff] }
  0x42   : > { %501 = vst.msk [vmem:[%s912_s12 + $0x20] sm:$0xff] %vm496_vm3, %v468_v18  ;;  %v472_v51 = vmax.f32 %v440_v36, 0.0  ;;  %v473_v52 = vmax.f32 %v441_v37, 0.0  ;;  %v474_v53 = vmax.f32 %v442_v38, 0.0  ;;  %v475_v54 = vmax.f32 %v443_v39, 0.0  ;;  %v323_v31 = vld [vmem:[%s836_s17 + $0xc8] sm:$0xff] }
  0x43   : > { %502 = vst.msk [vmem:[%s912_s12 + $0x28] sm:$0xff] %vm496_vm3, %v469_v19  ;;  %v476_v56 = vmax.f32 %v444_v44, 0.0  ;;  %v477_v57 = vmax.f32 %v936_v45, 0.0  ;;  %v446_v58 = vadd.f32 %v414_v40, %v382_v46  ;;  %v949_v59 = vadd.f32 %v415_v41, %v383_v47  ;;  %v325_v33 = vld [vmem:[%s836_s17 + $0xd8] sm:$0xff]  ;;  %v326_v37 = vld [vmem:[%s836_s17 + $0xe0] sm:$0xff]  ;;  %v327_v38 = vld [vmem:[%s836_s17 + $0xe8] sm:$0xff] }
  0x44   : > { %503 = vst.msk [vmem:[%s912_s12 + $0x30] sm:$0xff] %vm496_vm3, %v470_v20  ;;  %v349_v60 = vmul.f32 %v849_v24, %v314_v35  ;;  %v350_v62 = vmul.f32 %v849_v24, %v315_v43  ;;  %v351_v63 = vmul.f32 %v849_v24, %v316_v48  ;;  %v352_v0 = vmul.f32 %v849_v24, %v317_v49  ;;  %v423_v36 = vld [vmem:[%s857_s9 + $0xb8] sm:$0xff]  ;;  %v328_v48 = vld [vmem:[%s836_s17 + $0xf0] sm:$0xff] }
  0x45   : > { %504 = vst.msk [vmem:[%s912_s12 + $0x38] sm:$0xff] %vm496_vm3, %v471_v21  ;;  %v478_v3 = vmax.f32 %v446_v58, 0.0  ;;  %v479_v4 = vmax.f32 %v949_v59, 0.0  ;;  %v353_v8 = vmul.f32 %v849_v24, %v318_v50  ;;  %v354_v9 = vmul.f32 %v849_v24, %v319_v55  ;;  %v329_v49 = vld [vmem:[%s836_s17 + $0xf8] sm:$0xff]  ;;  %s544_s17 = sshll.u32 %s541_s15, 4  ;;  %s545_s17 = int_to_ptr.hbm [resolvable:$true] %s544_s17 }
  0x46   : > { %505 = vst.msk [vmem:[%s912_s12 + $0x40] sm:$0xff] %vm496_vm3, %v472_v51  ;;  %v384_v10 = vadd.f32 %v873_v42, %v349_v60  ;;  %v385_v11 = vadd.f32 %v873_v42, %v350_v62  ;;  %v386_v12 = vadd.f32 %v873_v42, %v351_v63  ;;  %v387_v13 = vadd.f32 %v873_v42, %v352_v0  ;;  %v428_v63 = vld [vmem:[%s857_s9 + $0xe0] sm:$0xff]  ;;  %s691_s19 = sshra.s32 %s545_s17, 4  ;;  %s692_s19 = int_to_ptr.hbm [resolvable:$true] %s691_s19 }
  0x47   : > { %506 = vst.msk [vmem:[%s912_s12 + $0x48] sm:$0xff] %vm496_vm3, %v473_v52  ;;  %v388_v16 = vadd.f32 %v873_v42, %v353_v8  ;;  %v389_v17 = vadd.f32 %v873_v42, %v354_v9  ;;  %v355_v18 = vmul.f32 %v849_v24, %v320_v1  ;;  %v356_v19 = vmul.f32 %v849_v24, %v321_v2  ;;  %v424_v52 = vld [vmem:[%s857_s9 + $0xc0] sm:$0xff]  ;;  %s693_s20 = scalar_lea.hbm %s692_s19, 256  ;;  %p698_p0 = scmp.lt.s32.totalorder %s692_s19, %s1102_s6 }
  0x48   : > { %507 = vst.msk [vmem:[%s912_s12 + $0x50] sm:$0xff] %vm496_vm3, %v474_v53  ;;  %v448_v20 = vadd.f32 %v416_v61, %v384_v10  ;;  %v449_v21 = vadd.f32 %v417_v5, %v385_v11  ;;  %v450_v22 = vadd.f32 %v418_v6, %v386_v12  ;;  %v451_v23 = vadd.f32 %v419_v7, %v387_v13  ;;  %v425_v53 = vld [vmem:[%s857_s9 + $0xc8] sm:$0xff]  ;;  %v427_v61 = vld [vmem:[%s857_s9 + $0xd8] sm:$0xff]  ;;  %v430_v11 = vld [vmem:[%s857_s9 + $0xf0] sm:$0xff]  ;;  %p694_p11 = scmp.ne.s32.totalorder %s692_s19, %s693_s20  ;;  %p699_p1 = scmp.lt.s32.totalorder %s697_s29, %s693_s20 }
  0x49   : > { %508 = vst.msk [vmem:[%s912_s12 + $0x58] sm:$0xff] %vm496_vm3, %v475_v54  ;;  %v452_v27 = vadd.f32 %v420_v14, %v388_v16  ;;  %v453_v28 = vadd.f32 %v421_v15, %v389_v17  ;;  %v390_v29 = vadd.f32 %v873_v42, %v355_v18  ;;  %v391_v30 = vadd.f32 %v873_v42, %v356_v19  ;;  %v426_v54 = vld [vmem:[%s857_s9 + $0xd0] sm:$0xff]  ;;  %v429_v7 = vld [vmem:[%s857_s9 + $0xe8] sm:$0xff]  ;;  %v431_v14 = vld [vmem:[%s857_s9 + $0xf8] sm:$0xff] }
  0x4a   : > { %509 = vst.msk [vmem:[%s912_s12 + $0x60] sm:$0xff] %vm496_vm3, %v476_v56  ;;  %v480_v34 = vmax.f32 %v448_v20, 0.0  ;;  %v481_v35 = vmax.f32 %v449_v21, 0.0  ;;  %v482_v39 = vmax.f32 %v450_v22, 0.0  ;;  %v483_v40 = vmax.f32 %v451_v23, 0.0  ;;  %p695_p12 = pnand %p694_p11, %p816_p5  ;;  %p700_p2 = por %p699_p1, %p698_p0 }
  0x4b   : > { %510 = vst.msk [vmem:[%s912_s12 + $0x68] sm:$0xff] %vm496_vm3, %v477_v57  ;;  %v484_v41 = vmax.f32 %v452_v27, 0.0  ;;  %v454_v43 = vadd.f32 %v422_v25, %v390_v29  ;;  %v357_v44 = vmul.f32 %v849_v24, %v322_v26  ;;  %v358_v45 = vmul.f32 %v849_v24, %v323_v31 }
  0x4c   : > { %511 = vst.msk [vmem:[%s912_s12 + $0x70] sm:$0xff] %vm496_vm3, %v478_v3  ;;  %v359_v46 = vmul.f32 %v849_v24, %v324_v32  ;;  %v360_v47 = vmul.f32 %v849_v24, %v325_v33  ;;  %v485_v50 = vmax.f32 %v453_v28, 0.0  ;;  %v455_v51 = vadd.f32 %v423_v36, %v391_v30  ;;  %p696_p13 = pneg %p695_p12 }
  0x4d   : > { %512 = vst.msk [vmem:[%s912_s12 + $0x78] sm:$0xff] %vm496_vm3, %v479_v4  ;;  %v361_v55 = vmul.f32 %v849_v24, %v326_v37  ;;  %v362_v56 = vmul.f32 %v849_v24, %v327_v38  ;;  %v392_v57 = vadd.f32 %v873_v42, %v357_v44  ;;  %v393_v58 = vadd.f32 %v873_v42, %v358_v45 }
  0x4e   : > { %513 = vst.msk [vmem:[%s912_s12 + $0x80] sm:$0xff] %vm496_vm3, %v480_v34  ;;  %v394_v59 = vadd.f32 %v873_v42, %v359_v46  ;;  %v395_v60 = vadd.f32 %v873_v42, %v360_v47  ;;  %v363_v1 = vmul.f32 %v849_v24, %v328_v48  ;;  %v364_v2 = vmul.f32 %v849_v24, %v329_v49  ;;  %p701_p3 = pnand %p700_p2, %p696_p13 }
  0x4f   : > { %514 = vst.msk [vmem:[%s912_s12 + $0x88] sm:$0xff] %vm496_vm3, %v481_v35  ;;  %v396_v62 = vadd.f32 %v873_v42, %v361_v55  ;;  %v397_v0 = vadd.f32 %v873_v42, %v362_v56  ;;  %v486_v3 = vmax.f32 %v454_v43, 0.0  ;;  %v456_v4 = vadd.f32 %v424_v52, %v392_v57 }
  0x50   : > { %515 = vst.msk [vmem:[%s912_s12 + $0x90] sm:$0xff] %vm496_vm3, %v482_v39  ;;  %v457_v5 = vadd.f32 %v425_v53, %v393_v58  ;;  %v458_v6 = vadd.f32 %v426_v54, %v394_v59  ;;  %v487_v8 = vmax.f32 %v455_v51, 0.0  ;;  %v459_v9 = vadd.f32 %v427_v61, %v395_v60 }
  0x51   : > { %516 = vst.msk [vmem:[%s912_s12 + $0x98] sm:$0xff] %vm496_vm3, %v483_v40  ;;  %v398_v10 = vadd.f32 %v873_v42, %v363_v1  ;;  %v399_v24 = vadd.f32 %v873_v42, %v364_v2  ;;  %v488_v12 = vmax.f32 %v456_v4, 0.0  ;;  %v460_v13 = vadd.f32 %v428_v63, %v396_v62 }
  0x52   : > { %517 = vst.msk [vmem:[%s912_s12 + $0xa0] sm:$0xff] %vm496_vm3, %v484_v41  ;;  %v489_v15 = vmax.f32 %v457_v5, 0.0  ;;  %v461_v16 = vadd.f32 %v429_v7, %v397_v0  ;;  %v490_v17 = vmax.f32 %v458_v6, 0.0  ;;  %v491_v18 = vmax.f32 %v459_v9, 0.0 }
  0x53   : > { %518 = vst.msk [vmem:[%s912_s12 + $0xa8] sm:$0xff] %vm496_vm3, %v485_v50  ;;  %v462_v42 = vadd.f32 %v430_v11, %v398_v10  ;;  %v463_v19 = vadd.f32 %v431_v14, %v399_v24  ;;  %v492_v20 = vmax.f32 %v460_v13, 0.0 }
  0x54   : > { %519 = vst.msk [vmem:[%s912_s12 + $0xb0] sm:$0xff] %vm496_vm3, %v486_v3  ;;  %v493_v21 = vmax.f32 %v461_v16, 0.0 }
  0x55   : > { %520 = vst.msk [vmem:[%s912_s12 + $0xb8] sm:$0xff] %vm496_vm3, %v487_v8  ;;  %v494_v22 = vmax.f32 %v462_v42, 0.0  ;;  %v495_v23 = vmax.f32 %v463_v19, 0.0 }
  0x56   : > { %521 = vst.msk [vmem:[%s912_s12 + $0xc0] sm:$0xff] %vm496_vm3, %v488_v12 }
  0x57   : > { %522 = vst.msk [vmem:[%s912_s12 + $0xc8] sm:$0xff] %vm496_vm3, %v489_v15 }
  0x58   : > { %523 = vst.msk [vmem:[%s912_s12 + $0xd0] sm:$0xff] %vm496_vm3, %v490_v17 }
  0x59   : > { %524 = vst.msk [vmem:[%s912_s12 + $0xd8] sm:$0xff] %vm496_vm3, %v491_v18 }
  0x5a   : > { %525 = vst.msk [vmem:[%s912_s12 + $0xe0] sm:$0xff] %vm496_vm3, %v492_v20 }
  0x5b   : > { %526 = vst.msk [vmem:[%s912_s12 + $0xe8] sm:$0xff] %vm496_vm3, %v493_v21 }
  0x5c   : > { %527 = vst.msk [vmem:[%s912_s12 + $0xf0] sm:$0xff] %vm496_vm3, %v494_v22 }
  0x5d   : > { %528 = vst.msk [vmem:[%s912_s12 + $0xf8] sm:$0xff] %vm496_vm3, %v495_v23 }
  0x5e   : > { %704 = shalt.err (!%p701_p3)
}
  0x5f   : > { %s741_s10 = smov 128   ;;  %s742_s12 = smov 8  }
  0x60   : > { %634 = dma.vmem_to_hbm [thread:$0]  (%p816_p5), %s543_s16, 4096, %s545_s17, %s530_s18, %s741_s10, %s741_s10, %s742_s12  }
  0x61 PF: > { %p640_p4 = scmp.ge.s32.totalorder %s739_s24, 2  ;;  %s559_s13 = sand.u32 1, %s727_s21  }
  0x62   : > { %s560_s14 = scalar_lea.sflag [#allocation3], %s559_s13 }
  0x63   : > { %p637_p7 = pnand %p640_p4, %p820_p6 }
  0x65   : > { %p638_p8 = pneg %p637_p7 }
  0x67   : > { %722 = dma.done.wait (%p638_p8), %s560_s14, 4096  }
  0x68   : > { %724 = vsyncadd (%p638_p8), %s560_s14, 4294963200  ;;  %p16_p9 = scmp.ge.s32.totalorder %s803_s27, 4   ;;  %s1105_s21 = smov %s731_s22 }
  0x69   : > { %s1106_s22 = smov %s735_s23  ;;  %s1107_s23 = smov %s814_s30 }
  0x6a   : > { %s1108_s24 = smov %s803_s27  ;;  %18 = sbr.rel (!%p16_p9) target bundleno = 3 (0x3), region = 82 }
  0x6f   :  { %566 = vsyncpa [#allocation3], 1 }
  0x70   :  { %568 = vsyncpa [#allocation3 + $0x1], 1 }

</bundles_post_ra>
